<compile_context>
chip_gen: v7x
topology: tpu7x:2x2x1
jax: 0.10.0
libtpu: 0.0.40
codegen_flags: <defaults>
</compile_context>

<pallas_src>
import functools

import jax
import jax.numpy as jnp
from jax.experimental import pallas as pl
from jax.experimental.pallas import tpu as pltpu


# ----------------------------- kernel helpers ------------------------------

def _layer_norm(x, w, b, eps=1e-5):
    # x: (NB, L, E) f32; w, b: (1, E) f32
    mean = jnp.mean(x, axis=-1, keepdims=True)
    var = jnp.mean((x - mean) ** 2, axis=-1, keepdims=True)
    return (x - mean) * jax.lax.rsqrt(var + eps) * w + b


def _attention_proj(Q, K, V, wout_ref, bout_ref, nhead):
    """softmax(Q K^T) V fused with the output projection, per head.

    Q: (NB, Lq, E) bf16 (1/sqrt(dh) already folded into the Q projection),
    K/V: (NB, Lk, E) bf16.  Each head's (NB*Lq, dh) context is matmul'd with
    that head's (dh, E) slice of W_out and accumulated in f32: no lane-axis
    concat and no (NB*Lq, E) attention intermediate.  Returns (NB*Lq, E) f32.
    """
    NB, Lq, E = Q.shape
    dh = E // nhead
    f32, bf16 = jnp.float32, jnp.bfloat16

    wout = wout_ref[...]                               # (E, E) bf16
    acc = jnp.zeros((NB * Lq, E), f32)
    for h in range(nhead):
        sl = slice(h * dh, (h + 1) * dh)
        s = jnp.einsum('bqd,bkd->bqk', Q[:, :, sl], K[:, :, sl],
                       preferred_element_type=f32)     # (NB, Lq, Lk)
        s = s - jnp.max(s, axis=-1, keepdims=True)
        p = jnp.exp(s)
        p = p * pl.reciprocal(jnp.sum(p, axis=-1, keepdims=True), approx=True)
        c = jnp.einsum('bqk,bkd->bqd', p.astype(bf16), V[:, :, sl],
                       preferred_element_type=f32)     # (NB, Lq, dh)
        acc = acc + jnp.dot(c.reshape(NB * Lq, dh).astype(bf16), wout[sl, :],
                            preferred_element_type=f32)
    return acc + bout_ref[...]


# --------------------------------- kernel ----------------------------------

def _decoder_layer_kernel(nhead,
                          tgt_ref, mem_ref, qpos_ref, memk_ref,
                          sa_wqk_ref, sa_wv_ref, sa_wout_ref,
                          ca_wq_ref, ca_wk_ref, ca_wv_ref, ca_wout_ref,
                          fc1_w_ref, fc2_w_ref,
                          sa_bqk_ref, sa_bv_ref, sa_bout_ref,
                          ca_bq_ref, ca_bk_ref, ca_bv_ref, ca_bout_ref,
                          fc1_b_ref, fc2_b_ref,
                          n1w_ref, n1b_ref, n2w_ref, n2b_ref,
                          out_ref):
    f32, bf16 = jnp.float32, jnp.bfloat16

    tgt = tgt_ref[...]          # (NB, L, E) f32  (residual / LayerNorm path)
    qpos = qpos_ref[...]        # (NB, L, E) bf16

    NB, L, E = tgt.shape
    S = mem_ref.shape[1]

    def proj(x2d, w_ref, b_ref):
        # x2d: (rows, F_in) bf16; w_ref: (F_in, F_out) bf16; b_ref: (1, F_out)
        return jnp.dot(x2d, w_ref[...], preferred_element_type=f32) + b_ref[...]

    # ----- self attention: q = k = tgt + query_pos, value = tgt ------------
    q_in = (tgt + qpos).reshape(NB * L, E).astype(bf16)
    qk = proj(q_in, sa_wqk_ref, sa_bqk_ref).astype(bf16)          # (NB*L, 2E)
    Q = qk[:, :E].reshape(NB, L, E)
    K = qk[:, E:].reshape(NB, L, E)
    V = proj(tgt.astype(bf16).reshape(NB * L, E),
             sa_wv_ref, sa_bv_ref).astype(bf16).reshape(NB, L, E)

    sa_out = _attention_proj(Q, K, V, sa_wout_ref, sa_bout_ref, nhead)
    tgt = tgt + sa_out.reshape(NB, L, E)                          # dropout1 == id
    tgt = _layer_norm(tgt, n1w_ref[...], n1b_ref[...])

    # ----- cross attention: q = tgt + query_pos, k = memory + pos, v = memory
    cq = (tgt + qpos).reshape(NB * L, E).astype(bf16)
    Q = proj(cq, ca_wq_ref, ca_bq_ref).astype(bf16).reshape(NB, L, E)
    K = proj(memk_ref[...].reshape(NB * S, E),
             ca_wk_ref, ca_bk_ref).astype(bf16).reshape(NB, S, E)
    V = proj(mem_ref[...].reshape(NB * S, E),
             ca_wv_ref, ca_bv_ref).astype(bf16).reshape(NB, S, E)
    ca_out = _attention_proj(Q, K, V, ca_wout_ref, ca_bout_ref, nhead)

    # ----- FFN applied to the raw cross-attention output (per module) ------
    h = jnp.maximum(proj(ca_out.astype(bf16), fc1_w_ref, fc1_b_ref), 0.0)
    ffn_out = proj(h.astype(bf16), fc2_w_ref, fc2_b_ref)          # (NB*L, E)

    tgt = tgt + ffn_out.reshape(NB, L, E)
    tgt = _layer_norm(tgt, n2w_ref[...], n2b_ref[...])
    out_ref[...] = tgt


# -------------------------------- wrapper -----------------------------------

def _vmem_tile_bytes(nb, L, S, E):
    """Rough per-core VMEM footprint for batch-block size nb (bytes)."""
    f32b, bf16b = 4, 2
    # double-buffered streamed blocks (inputs + output)
    io = 2 * nb * E * (L * f32b          # tgt (f32 in)
                       + L * bf16b       # query_pos (bf16 in)
                       + 2 * S * bf16b   # memory and memory+pos (bf16 in)
                       + L * f32b)       # output (f32)
    # grid-invariant weights (default pipelining still double-buffers -> 2x)
    wts = 2 * (11 * E * E * bf16b + 16 * E * f32b)
    # rough bound on live in-body intermediates
    body = (nb * E * (3 * L + 2 * S) * bf16b       # Q/K/V bf16
            + nb * L * max(L, S) * f32b            # per-head scores
            + nb * L * 2 * E * f32b                # FFN hidden
            + 3 * nb * L * E * f32b)               # acc / residual / LN temps
    return io + wts + body


def transformer_pose_decoder_layer(tgt, memory, pos, query_pos, params, nhead,
                                   target_rows=256, block_n=None):
    """tgt: (L, N, E), memory: (S, N, E), pos: (S, N, E), query_pos: (L, N, E)."""
    L, N, E = tgt.shape
    S = memory.shape[0]
    assert E % nhead == 0
    dh = E // nhead
    f32, bf16 = jnp.float32, jnp.bfloat16

    # ---- VMEM budget / limit (v7x has only 64 MiB physical VMEM) ----------
    try:
        phys_vmem = int(pltpu.get_tpu_info().vmem_capacity_bytes)
    except Exception:
        phys_vmem = 64 * 1024 * 1024          # conservative (v7x per-core)
    vmem_limit = int(phys_vmem * 0.75)        # leave Mosaic scratch headroom

    # ---- batch block: target >= `target_rows` flattened MXU rows ----------
    if block_n is None:
        block_n = max(1, pl.cdiv(target_rows, L))
    NB = min(block_n, N)
    while NB > 1 and _vmem_tile_bytes(NB, L, S, E) > vmem_limit:
        NB = max(1, NB // 2)

    # Megacore (v7x): prefer an even block count so ("parallel",) can give
    # both TensorCores work, as long as each block keeps >= 128 MXU rows.
    n_blocks = pl.cdiv(N, NB)
    if n_blocks % 2 == 1:
        nb_even = pl.cdiv(N, n_blocks + 1)
        if nb_even * L >= 128:
            NB = nb_even
            n_blocks = pl.cdiv(N, NB)
    N_pad = n_blocks * NB

    # Batch-first activations.  tgt stays f32 (residual / LayerNorm path);
    # memory, memory+pos and query_pos are only ever bf16 matmul inputs, so
    # stream them as bf16.
    tgt_b = jnp.transpose(tgt, (1, 0, 2)).astype(f32)
    mem_b = jnp.transpose(memory, (1, 0, 2)).astype(bf16)
    qpos_b = jnp.transpose(query_pos, (1, 0, 2)).astype(bf16)
    memk_b = jnp.transpose(memory + pos, (1, 0, 2)).astype(bf16)

    if N_pad != N:
        # Padded rows produce garbage through LayerNorm (var=0) but are
        # sliced off below — harmless.
        padw = ((0, N_pad - N), (0, 0), (0, 0))
        tgt_b = jnp.pad(tgt_b, padw)
        mem_b = jnp.pad(mem_b, padw)
        qpos_b = jnp.pad(qpos_b, padw)
        memk_b = jnp.pad(memk_b, padw)

    def row(v):
        return jnp.asarray(v).reshape(1, -1).astype(f32)

    sa_w_in, sa_b_in = params['sa_w_in'], params['sa_b_in']
    ca_w_in, ca_b_in = params['ca_w_in'], params['ca_b_in']
    scale = 1.0 / (dh ** 0.5)   # folded into the Q projections (weights+bias)

    # Pre-transposed / pre-split / pre-fused bf16 matmul weights (done once).
    matmul_ws = [
        jnp.concatenate([(sa_w_in[:E] * scale).T, sa_w_in[E:2 * E].T],
                        axis=1).astype(bf16),          # sa_wqk  (E, 2E)
        sa_w_in[2 * E:].T.astype(bf16),                # sa_wv   (E, E)
        params['sa_w_out'].T.astype(bf16),             # sa_wout (E, E)
        (ca_w_in[:E] * scale).T.astype(bf16),          # ca_wq   (E, E)
        ca_w_in[E:2 * E].T.astype(bf16),               # ca_wk   (E, E)
        ca_w_in[2 * E:].T.astype(bf16),                # ca_wv   (E, E)
        params['ca_w_out'].T.astype(bf16),             # ca_wout (E, E)
        params['fc1_w'].T.astype(bf16),                # fc1     (E, 2E)
        params['fc2_w'].T.astype(bf16),                # fc2     (2E, E)
    ]
    vec_ws = [
        row(jnp.concatenate([sa_b_in[:E] * scale, sa_b_in[E:2 * E]])),  # (1,2E)
        row(sa_b_in[2 * E:]),                                           # v bias
        row(params['sa_b_out']),
        row(ca_b_in[:E] * scale), row(ca_b_in[E:2 * E]), row(ca_b_in[2 * E:]),
        row(params['ca_b_out']),
        row(params['fc1_b']), row(params['fc2_b']),
        row(params['n1_w']), row(params['n1_b']),
        row(params['n2_w']), row(params['n2_b']),
    ]
    weights = matmul_ws + vec_ws

    def act_spec(seq_len):
        return pl.BlockSpec((NB, seq_len, E), lambda b: (b, 0, 0))

    in_specs = [act_spec(L), act_spec(S), act_spec(L), act_spec(S)]
    # Grid-invariant weights; their default double-buffering is already
    # charged 2x in _vmem_tile_bytes.
    in_specs += [pl.BlockSpec(w.shape, lambda b: (0, 0)) for w in weights]

    out = pl.pallas_call(
        functools.partial(_decoder_layer_kernel, nhead),
        out_shape=jax.ShapeDtypeStruct((N_pad, L, E), f32),
        grid=(n_blocks,),
        in_specs=in_specs,
        out_specs=pl.BlockSpec((NB, L, E), lambda b: (b, 0, 0)),
        compiler_params=pltpu.CompilerParams(
            dimension_semantics=("parallel",),      # independent batch blocks
            vmem_limit_bytes=vmem_limit),
    )(tgt_b, mem_b, qpos_b, memk_b, *weights)

    return jnp.transpose(out[:N], (1, 0, 2))  # back to (L, N, E)


# ---------------------------- pure-JAX reference ----------------------------

def _mha_ref(q, k, v, w_in, b_in, w_out, b_out, nhead):
    N, Lq, E = q.shape
    dh = E // nhead
    Q = q @ w_in[:E].T + b_in[:E]
    K = k @ w_in[E:2 * E].T + b_in[E:2 * E]
    V = v @ w_in[2 * E:].T + b_in[2 * E:]
    Q = Q.reshape(N, Lq, nhead, dh)
    K = K.reshape(N, -1, nhead, dh)
    V = V.reshape(N, -1, nhead, dh)
    s = jnp.einsum('nqhd,nkhd->nhqk', Q, K) / jnp.sqrt(dh).astype(jnp.float32)
    p = jax.nn.softmax(s, axis=-1)
    o = jnp.einsum('nhqk,nkhd->nqhd', p, V).reshape(N, Lq, E)
    return o @ w_out.T + b_out


def _ln_ref(x, w, b, eps=1e-5):
    m = x.mean(-1, keepdims=True)
    v = ((x - m) ** 2).mean(-1, keepdims=True)
    return (x - m) / jnp.sqrt(v + eps) * w + b


def decoder_layer_ref(tgt, memory, pos, query_pos, p, nhead):
    t = jnp.transpose(tgt, (1, 0, 2))
    m = jnp.transpose(memory, (1, 0, 2))
    qp = jnp.transpose(query_pos, (1, 0, 2))
    pp = jnp.transpose(pos, (1, 0, 2))
    q = t + qp
    t2 = _mha_ref(q, q, t, p['sa_w_in'], p['sa_b_in'],
                  p['sa_w_out'], p['sa_b_out'], nhead)
    t = _ln_ref(t + t2, p['n1_w'], p['n1_b'])
    t2 = _mha_ref(t + qp, m + pp, m, p['ca_w_in'], p['ca_b_in'],
                  p['ca_w_out'], p['ca_b_out'], nhead)
    h = jnp.maximum(t2 @ p['fc1_w'].T + p['fc1_b'], 0.0)
    t2 = h @ p['fc2_w'].T + p['fc2_b']
    t = _ln_ref(t + t2, p['n2_w'], p['n2_b'])
    return jnp.transpose(t, (1, 0, 2))


# ------------------------------- params init --------------------------------

def init_params(key, d_model):
    ks = jax.random.split(key, 12)
    s = 0.05
    f32 = jnp.float32
    return {
        'sa_w_in':  s * jax.random.normal(ks[0], (3 * d_model, d_model), f32),
        'sa_b_in':  s * jax.random.normal(ks[1], (3 * d_model,), f32),
        'sa_w_out': s * jax.random.normal(ks[2], (d_model, d_model), f32),
        'sa_b_out': s * jax.random.normal(ks[3], (d_model,), f32),
        'ca_w_in':  s * jax.random.normal(ks[4], (3 * d_model, d_model), f32),
        'ca_b_in':  s * jax.random.normal(ks[5], (3 * d_model,), f32),
        'ca_w_out': s * jax.random.normal(ks[6], (d_model, d_model), f32),
        'ca_b_out': s * jax.random.normal(ks[7], (d_model,), f32),
        'n1_w': jnp.ones((d_model,), f32),
        'n1_b': jnp.zeros((d_model,), f32),
        'n2_w': jnp.ones((d_model,), f32),
        'n2_b': jnp.zeros((d_model,), f32),
        'fc1_w': s * jax.random.normal(ks[8], (2 * d_model, d_model), f32),
        'fc1_b': s * jax.random.normal(ks[9], (2 * d_model,), f32),
        'fc2_w': s * jax.random.normal(ks[10], (d_model, 2 * d_model), f32),
        'fc2_b': s * jax.random.normal(ks[11], (d_model,), f32),
    }


if __name__ == "__main__":
    # E is kept a multiple of 128 so matmul operands / output stay lane-dense
    # (the earlier E=32 test only exercised masked vregs).
    L, S, N, E, nhead = 8, 16, 4, 128, 4  # tgt-len, mem-len, batch, d_model, heads
    key = jax.random.PRNGKey(0)
    k1, k2, k3, k4, kp = jax.random.split(key, 5)

    tgt = jax.random.normal(k1, (L, N, E), jnp.float32)
    memory = jax.random.normal(k2, (S, N, E), jnp.float32)
    query_pos = jax.random.normal(k3, (L, N, E), jnp.float32)
    pos = jax.random.normal(k4, (S, N, E), jnp.float32)
    params = init_params(kp, E)

    out = transformer_pose_decoder_layer(tgt, memory, pos, query_pos,
                                         params, nhead)
    out = jax.block_until_ready(out)

    ref = decoder_layer_ref(tgt, memory, pos, query_pos, params, nhead)
    assert out.shape == (L, N, E), out.shape
    max_err = float(jnp.max(jnp.abs(out - ref)))
    assert max_err < 5e-2, f"max abs error {max_err}"
    print("KERNEL_OK")
</pallas_src>

<mosaic_0001>
module attributes {stable_mosaic.version = 11 : i64} {
  func.func @_decoder_layer_kernel(%arg0: i32, %arg1: memref<4x8x128xf32, #tpu.memory_space<vmem>>, %arg2: memref<4x16x128xbf16, #tpu.memory_space<vmem>>, %arg3: memref<4x8x128xbf16, #tpu.memory_space<vmem>>, %arg4: memref<4x16x128xbf16, #tpu.memory_space<vmem>>, %arg5: memref<128x256xbf16, #tpu.memory_space<vmem>>, %arg6: memref<128x128xbf16, #tpu.memory_space<vmem>>, %arg7: memref<128x128xbf16, #tpu.memory_space<vmem>>, %arg8: memref<128x128xbf16, #tpu.memory_space<vmem>>, %arg9: memref<128x128xbf16, #tpu.memory_space<vmem>>, %arg10: memref<128x128xbf16, #tpu.memory_space<vmem>>, %arg11: memref<128x128xbf16, #tpu.memory_space<vmem>>, %arg12: memref<128x256xbf16, #tpu.memory_space<vmem>>, %arg13: memref<256x128xbf16, #tpu.memory_space<vmem>>, %arg14: memref<1x256xf32, #tpu.memory_space<vmem>>, %arg15: memref<1x128xf32, #tpu.memory_space<vmem>>, %arg16: memref<1x128xf32, #tpu.memory_space<vmem>>, %arg17: memref<1x128xf32, #tpu.memory_space<vmem>>, %arg18: memref<1x128xf32, #tpu.memory_space<vmem>>, %arg19: memref<1x128xf32, #tpu.memory_space<vmem>>, %arg20: memref<1x128xf32, #tpu.memory_space<vmem>>, %arg21: memref<1x256xf32, #tpu.memory_space<vmem>>, %arg22: memref<1x128xf32, #tpu.memory_space<vmem>>, %arg23: memref<1x128xf32, #tpu.memory_space<vmem>>, %arg24: memref<1x128xf32, #tpu.memory_space<vmem>>, %arg25: memref<1x128xf32, #tpu.memory_space<vmem>>, %arg26: memref<1x128xf32, #tpu.memory_space<vmem>>, %arg27: memref<4x8x128xf32, #tpu.memory_space<vmem>>) attributes {dimension_semantics = [#tpu.dimension_semantics<parallel>], iteration_bounds = array<i64: 1>, scalar_prefetch = 0 : i64, scratch_operands = 0 : i64, tpu.core_type = #tpu.core_type<tc>, window_params = [{transform_indices = @transform_0, window_bounds = array<i64: 4, 8, 128>}, {transform_indices = @transform_1, window_bounds = array<i64: 4, 16, 128>}, {transform_indices = @transform_2, window_bounds = array<i64: 4, 8, 128>}, {transform_indices = @transform_3, window_bounds = array<i64: 4, 16, 128>}, {pipeline_mode = #tpu.pipeline_mode<synchronous>, transform_indices = @transform_4, window_bounds = array<i64: 128, 256>}, {pipeline_mode = #tpu.pipeline_mode<synchronous>, transform_indices = @transform_5, window_bounds = array<i64: 128, 128>}, {pipeline_mode = #tpu.pipeline_mode<synchronous>, transform_indices = @transform_6, window_bounds = array<i64: 128, 128>}, {pipeline_mode = #tpu.pipeline_mode<synchronous>, transform_indices = @transform_7, window_bounds = array<i64: 128, 128>}, {pipeline_mode = #tpu.pipeline_mode<synchronous>, transform_indices = @transform_8, window_bounds = array<i64: 128, 128>}, {pipeline_mode = #tpu.pipeline_mode<synchronous>, transform_indices = @transform_9, window_bounds = array<i64: 128, 128>}, {pipeline_mode = #tpu.pipeline_mode<synchronous>, transform_indices = @transform_10, window_bounds = array<i64: 128, 128>}, {pipeline_mode = #tpu.pipeline_mode<synchronous>, transform_indices = @transform_11, window_bounds = array<i64: 128, 256>}, {pipeline_mode = #tpu.pipeline_mode<synchronous>, transform_indices = @transform_12, window_bounds = array<i64: 256, 128>}, {pipeline_mode = #tpu.pipeline_mode<synchronous>, transform_indices = @transform_13, window_bounds = array<i64: 1, 256>}, {pipeline_mode = #tpu.pipeline_mode<synchronous>, transform_indices = @transform_14, window_bounds = array<i64: 1, 128>}, {pipeline_mode = #tpu.pipeline_mode<synchronous>, transform_indices = @transform_15, window_bounds = array<i64: 1, 128>}, {pipeline_mode = #tpu.pipeline_mode<synchronous>, transform_indices = @transform_16, window_bounds = array<i64: 1, 128>}, {pipeline_mode = #tpu.pipeline_mode<synchronous>, transform_indices = @transform_17, window_bounds = array<i64: 1, 128>}, {pipeline_mode = #tpu.pipeline_mode<synchronous>, transform_indices = @transform_18, window_bounds = array<i64: 1, 128>}, {pipeline_mode = #tpu.pipeline_mode<synchronous>, transform_indices = @transform_19, window_bounds = array<i64: 1, 128>}, {pipeline_mode = #tpu.pipeline_mode<synchronous>, transform_indices = @transform_20, window_bounds = array<i64: 1, 256>}, {pipeline_mode = #tpu.pipeline_mode<synchronous>, transform_indices = @transform_21, window_bounds = array<i64: 1, 128>}, {pipeline_mode = #tpu.pipeline_mode<synchronous>, transform_indices = @transform_22, window_bounds = array<i64: 1, 128>}, {pipeline_mode = #tpu.pipeline_mode<synchronous>, transform_indices = @transform_23, window_bounds = array<i64: 1, 128>}, {pipeline_mode = #tpu.pipeline_mode<synchronous>, transform_indices = @transform_24, window_bounds = array<i64: 1, 128>}, {pipeline_mode = #tpu.pipeline_mode<synchronous>, transform_indices = @transform_25, window_bounds = array<i64: 1, 128>}, {transform_indices = @transform_26, window_bounds = array<i64: 4, 8, 128>}]} {
    %c0 = arith.constant 0 : index
    %c0_0 = arith.constant 0 : index
    %c0_1 = arith.constant 0 : index
    %0 = vector.load %arg1[%c0, %c0_0, %c0_1] : memref<4x8x128xf32, #tpu.memory_space<vmem>>, vector<4x8x128xf32>
    %c0_2 = arith.constant 0 : index
    %c0_3 = arith.constant 0 : index
    %c0_4 = arith.constant 0 : index
    %1 = vector.load %arg3[%c0_2, %c0_3, %c0_4] : memref<4x8x128xbf16, #tpu.memory_space<vmem>>, vector<4x8x128xbf16>
    %2 = arith.extf %1 : vector<4x8x128xbf16> to vector<4x8x128xf32>
    %3 = arith.addf %0, %2 : vector<4x8x128xf32>
    %4 = vector.shape_cast %3 : vector<4x8x128xf32> to vector<32x128xf32>
    %5 = arith.truncf %4 : vector<32x128xf32> to vector<32x128xbf16>
    %c0_5 = arith.constant 0 : index
    %c0_6 = arith.constant 0 : index
    %6 = vector.load %arg5[%c0_5, %c0_6] : memref<128x256xbf16, #tpu.memory_space<vmem>>, vector<128x256xbf16>
    %cst = arith.constant dense<0.000000e+00> : vector<32x256xf32>
    %7 = tpu.matmul %5, %6, %cst {dimension_numbers = #tpu.dot_dimension_numbers<[1], [0], [0], [1], [0, 0, 1, 1], [], []>} : vector<32x128xbf16>, vector<128x256xbf16>, vector<32x256xf32> -> vector<32x256xf32>
    %c0_7 = arith.constant 0 : index
    %c0_8 = arith.constant 0 : index
    %8 = vector.load %arg14[%c0_7, %c0_8] : memref<1x256xf32, #tpu.memory_space<vmem>>, vector<1x256xf32>
    %9 = vector.broadcast %8 : vector<1x256xf32> to vector<32x256xf32>
    %10 = arith.addf %7, %9 : vector<32x256xf32>
    %11 = arith.truncf %10 : vector<32x256xf32> to vector<32x256xbf16>
    %12 = vector.extract_strided_slice %11 {offsets = [0, 0], sizes = [32, 128], strides = [1, 1]} : vector<32x256xbf16> to vector<32x128xbf16>
    %13 = vector.shape_cast %12 : vector<32x128xbf16> to vector<4x8x128xbf16>
    %14 = vector.extract_strided_slice %11 {offsets = [0, 128], sizes = [32, 128], strides = [1, 1]} : vector<32x256xbf16> to vector<32x128xbf16>
    %15 = vector.shape_cast %14 : vector<32x128xbf16> to vector<4x8x128xbf16>
    %16 = arith.truncf %0 : vector<4x8x128xf32> to vector<4x8x128xbf16>
    %17 = vector.shape_cast %16 : vector<4x8x128xbf16> to vector<32x128xbf16>
    %c0_9 = arith.constant 0 : index
    %c0_10 = arith.constant 0 : index
    %18 = vector.load %arg6[%c0_9, %c0_10] : memref<128x128xbf16, #tpu.memory_space<vmem>>, vector<128x128xbf16>
    %cst_11 = arith.constant dense<0.000000e+00> : vector<32x128xf32>
    %19 = tpu.matmul %17, %18, %cst_11 {dimension_numbers = #tpu.dot_dimension_numbers<[1], [0], [0], [1], [0, 0, 1, 1], [], []>} : vector<32x128xbf16>, vector<128x128xbf16>, vector<32x128xf32> -> vector<32x128xf32>
    %c0_12 = arith.constant 0 : index
    %c0_13 = arith.constant 0 : index
    %20 = vector.load %arg15[%c0_12, %c0_13] : memref<1x128xf32, #tpu.memory_space<vmem>>, vector<1x128xf32>
    %21 = vector.broadcast %20 : vector<1x128xf32> to vector<32x128xf32>
    %22 = arith.addf %19, %21 : vector<32x128xf32>
    %23 = arith.truncf %22 : vector<32x128xf32> to vector<32x128xbf16>
    %24 = vector.shape_cast %23 : vector<32x128xbf16> to vector<4x8x128xbf16>
    %c0_14 = arith.constant 0 : index
    %c0_15 = arith.constant 0 : index
    %25 = vector.load %arg7[%c0_14, %c0_15] : memref<128x128xbf16, #tpu.memory_space<vmem>>, vector<128x128xbf16>
    %cst_16 = arith.constant 0.000000e+00 : f32
    %26 = vector.broadcast %cst_16 : f32 to vector<32x128xf32>
    %27 = vector.extract_strided_slice %13 {offsets = [0, 0, 0], sizes = [4, 8, 32], strides = [1, 1, 1]} : vector<4x8x128xbf16> to vector<4x8x32xbf16>
    %28 = vector.extract_strided_slice %15 {offsets = [0, 0, 0], sizes = [4, 8, 32], strides = [1, 1, 1]} : vector<4x8x128xbf16> to vector<4x8x32xbf16>
    "tpu.trace_start"() <{level = 10 : i32, message = "bqd,bkd->bqk"}> : () -> ()
    %cst_17 = arith.constant dense<0.000000e+00> : vector<4x8x8xf32>
    %29 = tpu.matmul %27, %28, %cst_17 {dimension_numbers = #tpu.dot_dimension_numbers<[2], [2], [1], [1], [0, 0, 0, 1, 1, 1], [0], [0]>} : vector<4x8x32xbf16>, vector<4x8x32xbf16>, vector<4x8x8xf32> -> vector<4x8x8xf32>
    "tpu.trace_stop"() : () -> ()
    %cst_18 = arith.constant dense<0xFF800000> : vector<4x8xf32>
    %30 = vector.multi_reduction <maximumf>, %29, %cst_18 [2] : vector<4x8x8xf32> to vector<4x8xf32>
    %31 = vector.shape_cast %30 : vector<4x8xf32> to vector<4x8x1xf32>
    %32 = vector.broadcast %31 : vector<4x8x1xf32> to vector<4x8x8xf32>
    %33 = arith.subf %29, %32 : vector<4x8x8xf32>
    %34 = math.exp %33 : vector<4x8x8xf32>
    %cst_19 = arith.constant dense<0.000000e+00> : vector<4x8xf32>
    %35 = vector.multi_reduction <add>, %34, %cst_19 [2] : vector<4x8x8xf32> to vector<4x8xf32>
    %36 = vector.shape_cast %35 : vector<4x8xf32> to vector<4x8x1xf32>
    %37 = tpu.reciprocal %36 {approx = true} : vector<4x8x1xf32> -> vector<4x8x1xf32>
    %38 = vector.broadcast %37 : vector<4x8x1xf32> to vector<4x8x8xf32>
    %39 = arith.mulf %34, %38 : vector<4x8x8xf32>
    %40 = arith.truncf %39 : vector<4x8x8xf32> to vector<4x8x8xbf16>
    %41 = vector.extract_strided_slice %24 {offsets = [0, 0, 0], sizes = [4, 8, 32], strides = [1, 1, 1]} : vector<4x8x128xbf16> to vector<4x8x32xbf16>
    "tpu.trace_start"() <{level = 10 : i32, message = "bqk,bkd->bqd"}> : () -> ()
    %cst_20 = arith.constant dense<0.000000e+00> : vector<4x8x32xf32>
    %42 = tpu.matmul %40, %41, %cst_20 {dimension_numbers = #tpu.dot_dimension_numbers<[2], [1], [1], [2], [0, 0, 0, 1, 1, 2], [0], [0]>} : vector<4x8x8xbf16>, vector<4x8x32xbf16>, vector<4x8x32xf32> -> vector<4x8x32xf32>
    "tpu.trace_stop"() : () -> ()
    %43 = vector.shape_cast %42 : vector<4x8x32xf32> to vector<32x32xf32>
    %44 = arith.truncf %43 : vector<32x32xf32> to vector<32x32xbf16>
    %45 = vector.extract_strided_slice %25 {offsets = [0, 0], sizes = [32, 128], strides = [1, 1]} : vector<128x128xbf16> to vector<32x128xbf16>
    %cst_21 = arith.constant dense<0.000000e+00> : vector<32x128xf32>
    %46 = tpu.matmul %44, %45, %cst_21 {dimension_numbers = #tpu.dot_dimension_numbers<[1], [0], [0], [1], [0, 0, 1, 1], [], []>} : vector<32x32xbf16>, vector<32x128xbf16>, vector<32x128xf32> -> vector<32x128xf32>
    %47 = arith.addf %26, %46 : vector<32x128xf32>
    %48 = vector.extract_strided_slice %13 {offsets = [0, 0, 32], sizes = [4, 8, 32], strides = [1, 1, 1]} : vector<4x8x128xbf16> to vector<4x8x32xbf16>
    %49 = vector.extract_strided_slice %15 {offsets = [0, 0, 32], sizes = [4, 8, 32], strides = [1, 1, 1]} : vector<4x8x128xbf16> to vector<4x8x32xbf16>
    "tpu.trace_start"() <{level = 10 : i32, message = "bqd,bkd->bqk"}> : () -> ()
    %cst_22 = arith.constant dense<0.000000e+00> : vector<4x8x8xf32>
    %50 = tpu.matmul %48, %49, %cst_22 {dimension_numbers = #tpu.dot_dimension_numbers<[2], [2], [1], [1], [0, 0, 0, 1, 1, 1], [0], [0]>} : vector<4x8x32xbf16>, vector<4x8x32xbf16>, vector<4x8x8xf32> -> vector<4x8x8xf32>
    "tpu.trace_stop"() : () -> ()
    %cst_23 = arith.constant dense<0xFF800000> : vector<4x8xf32>
    %51 = vector.multi_reduction <maximumf>, %50, %cst_23 [2] : vector<4x8x8xf32> to vector<4x8xf32>
    %52 = vector.shape_cast %51 : vector<4x8xf32> to vector<4x8x1xf32>
    %53 = vector.broadcast %52 : vector<4x8x1xf32> to vector<4x8x8xf32>
    %54 = arith.subf %50, %53 : vector<4x8x8xf32>
    %55 = math.exp %54 : vector<4x8x8xf32>
    %cst_24 = arith.constant dense<0.000000e+00> : vector<4x8xf32>
    %56 = vector.multi_reduction <add>, %55, %cst_24 [2] : vector<4x8x8xf32> to vector<4x8xf32>
    %57 = vector.shape_cast %56 : vector<4x8xf32> to vector<4x8x1xf32>
    %58 = tpu.reciprocal %57 {approx = true} : vector<4x8x1xf32> -> vector<4x8x1xf32>
    %59 = vector.broadcast %58 : vector<4x8x1xf32> to vector<4x8x8xf32>
    %60 = arith.mulf %55, %59 : vector<4x8x8xf32>
    %61 = arith.truncf %60 : vector<4x8x8xf32> to vector<4x8x8xbf16>
    %62 = vector.extract_strided_slice %24 {offsets = [0, 0, 32], sizes = [4, 8, 32], strides = [1, 1, 1]} : vector<4x8x128xbf16> to vector<4x8x32xbf16>
    "tpu.trace_start"() <{level = 10 : i32, message = "bqk,bkd->bqd"}> : () -> ()
    %cst_25 = arith.constant dense<0.000000e+00> : vector<4x8x32xf32>
    %63 = tpu.matmul %61, %62, %cst_25 {dimension_numbers = #tpu.dot_dimension_numbers<[2], [1], [1], [2], [0, 0, 0, 1, 1, 2], [0], [0]>} : vector<4x8x8xbf16>, vector<4x8x32xbf16>, vector<4x8x32xf32> -> vector<4x8x32xf32>
    "tpu.trace_stop"() : () -> ()
    %64 = vector.shape_cast %63 : vector<4x8x32xf32> to vector<32x32xf32>
    %65 = arith.truncf %64 : vector<32x32xf32> to vector<32x32xbf16>
    %66 = vector.extract_strided_slice %25 {offsets = [32, 0], sizes = [32, 128], strides = [1, 1]} : vector<128x128xbf16> to vector<32x128xbf16>
    %cst_26 = arith.constant dense<0.000000e+00> : vector<32x128xf32>
    %67 = tpu.matmul %65, %66, %cst_26 {dimension_numbers = #tpu.dot_dimension_numbers<[1], [0], [0], [1], [0, 0, 1, 1], [], []>} : vector<32x32xbf16>, vector<32x128xbf16>, vector<32x128xf32> -> vector<32x128xf32>
    %68 = arith.addf %47, %67 : vector<32x128xf32>
    %69 = vector.extract_strided_slice %13 {offsets = [0, 0, 64], sizes = [4, 8, 32], strides = [1, 1, 1]} : vector<4x8x128xbf16> to vector<4x8x32xbf16>
    %70 = vector.extract_strided_slice %15 {offsets = [0, 0, 64], sizes = [4, 8, 32], strides = [1, 1, 1]} : vector<4x8x128xbf16> to vector<4x8x32xbf16>
    "tpu.trace_start"() <{level = 10 : i32, message = "bqd,bkd->bqk"}> : () -> ()
    %cst_27 = arith.constant dense<0.000000e+00> : vector<4x8x8xf32>
    %71 = tpu.matmul %69, %70, %cst_27 {dimension_numbers = #tpu.dot_dimension_numbers<[2], [2], [1], [1], [0, 0, 0, 1, 1, 1], [0], [0]>} : vector<4x8x32xbf16>, vector<4x8x32xbf16>, vector<4x8x8xf32> -> vector<4x8x8xf32>
    "tpu.trace_stop"() : () -> ()
    %cst_28 = arith.constant dense<0xFF800000> : vector<4x8xf32>
    %72 = vector.multi_reduction <maximumf>, %71, %cst_28 [2] : vector<4x8x8xf32> to vector<4x8xf32>
    %73 = vector.shape_cast %72 : vector<4x8xf32> to vector<4x8x1xf32>
    %74 = vector.broadcast %73 : vector<4x8x1xf32> to vector<4x8x8xf32>
    %75 = arith.subf %71, %74 : vector<4x8x8xf32>
    %76 = math.exp %75 : vector<4x8x8xf32>
    %cst_29 = arith.constant dense<0.000000e+00> : vector<4x8xf32>
    %77 = vector.multi_reduction <add>, %76, %cst_29 [2] : vector<4x8x8xf32> to vector<4x8xf32>
    %78 = vector.shape_cast %77 : vector<4x8xf32> to vector<4x8x1xf32>
    %79 = tpu.reciprocal %78 {approx = true} : vector<4x8x1xf32> -> vector<4x8x1xf32>
    %80 = vector.broadcast %79 : vector<4x8x1xf32> to vector<4x8x8xf32>
    %81 = arith.mulf %76, %80 : vector<4x8x8xf32>
    %82 = arith.truncf %81 : vector<4x8x8xf32> to vector<4x8x8xbf16>
    %83 = vector.extract_strided_slice %24 {offsets = [0, 0, 64], sizes = [4, 8, 32], strides = [1, 1, 1]} : vector<4x8x128xbf16> to vector<4x8x32xbf16>
    "tpu.trace_start"() <{level = 10 : i32, message = "bqk,bkd->bqd"}> : () -> ()
    %cst_30 = arith.constant dense<0.000000e+00> : vector<4x8x32xf32>
    %84 = tpu.matmul %82, %83, %cst_30 {dimension_numbers = #tpu.dot_dimension_numbers<[2], [1], [1], [2], [0, 0, 0, 1, 1, 2], [0], [0]>} : vector<4x8x8xbf16>, vector<4x8x32xbf16>, vector<4x8x32xf32> -> vector<4x8x32xf32>
    "tpu.trace_stop"() : () -> ()
    %85 = vector.shape_cast %84 : vector<4x8x32xf32> to vector<32x32xf32>
    %86 = arith.truncf %85 : vector<32x32xf32> to vector<32x32xbf16>
    %87 = vector.extract_strided_slice %25 {offsets = [64, 0], sizes = [32, 128], strides = [1, 1]} : vector<128x128xbf16> to vector<32x128xbf16>
    %cst_31 = arith.constant dense<0.000000e+00> : vector<32x128xf32>
    %88 = tpu.matmul %86, %87, %cst_31 {dimension_numbers = #tpu.dot_dimension_numbers<[1], [0], [0], [1], [0, 0, 1, 1], [], []>} : vector<32x32xbf16>, vector<32x128xbf16>, vector<32x128xf32> -> vector<32x128xf32>
    %89 = arith.addf %68, %88 : vector<32x128xf32>
    %90 = vector.extract_strided_slice %13 {offsets = [0, 0, 96], sizes = [4, 8, 32], strides = [1, 1, 1]} : vector<4x8x128xbf16> to vector<4x8x32xbf16>
    %91 = vector.extract_strided_slice %15 {offsets = [0, 0, 96], sizes = [4, 8, 32], strides = [1, 1, 1]} : vector<4x8x128xbf16> to vector<4x8x32xbf16>
    "tpu.trace_start"() <{level = 10 : i32, message = "bqd,bkd->bqk"}> : () -> ()
    %cst_32 = arith.constant dense<0.000000e+00> : vector<4x8x8xf32>
    %92 = tpu.matmul %90, %91, %cst_32 {dimension_numbers = #tpu.dot_dimension_numbers<[2], [2], [1], [1], [0, 0, 0, 1, 1, 1], [0], [0]>} : vector<4x8x32xbf16>, vector<4x8x32xbf16>, vector<4x8x8xf32> -> vector<4x8x8xf32>
    "tpu.trace_stop"() : () -> ()
    %cst_33 = arith.constant dense<0xFF800000> : vector<4x8xf32>
    %93 = vector.multi_reduction <maximumf>, %92, %cst_33 [2] : vector<4x8x8xf32> to vector<4x8xf32>
    %94 = vector.shape_cast %93 : vector<4x8xf32> to vector<4x8x1xf32>
    %95 = vector.broadcast %94 : vector<4x8x1xf32> to vector<4x8x8xf32>
    %96 = arith.subf %92, %95 : vector<4x8x8xf32>
    %97 = math.exp %96 : vector<4x8x8xf32>
    %cst_34 = arith.constant dense<0.000000e+00> : vector<4x8xf32>
    %98 = vector.multi_reduction <add>, %97, %cst_34 [2] : vector<4x8x8xf32> to vector<4x8xf32>
    %99 = vector.shape_cast %98 : vector<4x8xf32> to vector<4x8x1xf32>
    %100 = tpu.reciprocal %99 {approx = true} : vector<4x8x1xf32> -> vector<4x8x1xf32>
    %101 = vector.broadcast %100 : vector<4x8x1xf32> to vector<4x8x8xf32>
    %102 = arith.mulf %97, %101 : vector<4x8x8xf32>
    %103 = arith.truncf %102 : vector<4x8x8xf32> to vector<4x8x8xbf16>
    %104 = vector.extract_strided_slice %24 {offsets = [0, 0, 96], sizes = [4, 8, 32], strides = [1, 1, 1]} : vector<4x8x128xbf16> to vector<4x8x32xbf16>
    "tpu.trace_start"() <{level = 10 : i32, message = "bqk,bkd->bqd"}> : () -> ()
    %cst_35 = arith.constant dense<0.000000e+00> : vector<4x8x32xf32>
    %105 = tpu.matmul %103, %104, %cst_35 {dimension_numbers = #tpu.dot_dimension_numbers<[2], [1], [1], [2], [0, 0, 0, 1, 1, 2], [0], [0]>} : vector<4x8x8xbf16>, vector<4x8x32xbf16>, vector<4x8x32xf32> -> vector<4x8x32xf32>
    "tpu.trace_stop"() : () -> ()
    %106 = vector.shape_cast %105 : vector<4x8x32xf32> to vector<32x32xf32>
    %107 = arith.truncf %106 : vector<32x32xf32> to vector<32x32xbf16>
    %108 = vector.extract_strided_slice %25 {offsets = [96, 0], sizes = [32, 128], strides = [1, 1]} : vector<128x128xbf16> to vector<32x128xbf16>
    %cst_36 = arith.constant dense<0.000000e+00> : vector<32x128xf32>
    %109 = tpu.matmul %107, %108, %cst_36 {dimension_numbers = #tpu.dot_dimension_numbers<[1], [0], [0], [1], [0, 0, 1, 1], [], []>} : vector<32x32xbf16>, vector<32x128xbf16>, vector<32x128xf32> -> vector<32x128xf32>
    %110 = arith.addf %89, %109 : vector<32x128xf32>
    %c0_37 = arith.constant 0 : index
    %c0_38 = arith.constant 0 : index
    %111 = vector.load %arg16[%c0_37, %c0_38] : memref<1x128xf32, #tpu.memory_space<vmem>>, vector<1x128xf32>
    %112 = vector.broadcast %111 : vector<1x128xf32> to vector<32x128xf32>
    %113 = arith.addf %110, %112 : vector<32x128xf32>
    %114 = vector.shape_cast %113 : vector<32x128xf32> to vector<4x8x128xf32>
    %115 = arith.addf %0, %114 : vector<4x8x128xf32>
    %c0_39 = arith.constant 0 : index
    %c0_40 = arith.constant 0 : index
    %116 = vector.load %arg23[%c0_39, %c0_40] : memref<1x128xf32, #tpu.memory_space<vmem>>, vector<1x128xf32>
    %c0_41 = arith.constant 0 : index
    %c0_42 = arith.constant 0 : index
    %117 = vector.load %arg24[%c0_41, %c0_42] : memref<1x128xf32, #tpu.memory_space<vmem>>, vector<1x128xf32>
    %cst_43 = arith.constant dense<0.000000e+00> : vector<4x8xf32>
    %118 = vector.multi_reduction <add>, %115, %cst_43 [2] : vector<4x8x128xf32> to vector<4x8xf32>
    %119 = vector.shape_cast %118 : vector<4x8xf32> to vector<4x8x1xf32>
    %cst_44 = arith.constant 1.280000e+02 : f32
    %120 = vector.broadcast %cst_44 : f32 to vector<4x8x1xf32>
    %121 = arith.divf %119, %120 : vector<4x8x1xf32>
    %122 = vector.broadcast %121 : vector<4x8x1xf32> to vector<4x8x128xf32>
    %123 = arith.subf %115, %122 : vector<4x8x128xf32>
    %124 = arith.mulf %123, %123 : vector<4x8x128xf32>
    %cst_45 = arith.constant dense<0.000000e+00> : vector<4x8xf32>
    %125 = vector.multi_reduction <add>, %124, %cst_45 [2] : vector<4x8x128xf32> to vector<4x8xf32>
    %126 = vector.shape_cast %125 : vector<4x8xf32> to vector<4x8x1xf32>
    %cst_46 = arith.constant 1.280000e+02 : f32
    %127 = vector.broadcast %cst_46 : f32 to vector<4x8x1xf32>
    %128 = arith.divf %126, %127 : vector<4x8x1xf32>
    %129 = vector.broadcast %121 : vector<4x8x1xf32> to vector<4x8x128xf32>
    %130 = arith.subf %115, %129 : vector<4x8x128xf32>
    %cst_47 = arith.constant 9.99999974E-6 : f32
    %131 = vector.broadcast %cst_47 : f32 to vector<4x8x1xf32>
    %132 = arith.addf %128, %131 : vector<4x8x1xf32>
    %133 = math.rsqrt %132 : vector<4x8x1xf32>
    %134 = vector.broadcast %133 : vector<4x8x1xf32> to vector<4x8x128xf32>
    %135 = arith.mulf %130, %134 : vector<4x8x128xf32>
    %136 = vector.shape_cast %116 : vector<1x128xf32> to vector<1x1x128xf32>
    %137 = vector.broadcast %136 : vector<1x1x128xf32> to vector<4x8x128xf32>
    %138 = arith.mulf %135, %137 : vector<4x8x128xf32>
    %139 = vector.shape_cast %117 : vector<1x128xf32> to vector<1x1x128xf32>
    %140 = vector.broadcast %139 : vector<1x1x128xf32> to vector<4x8x128xf32>
    %141 = arith.addf %138, %140 : vector<4x8x128xf32>
    %142 = arith.extf %1 : vector<4x8x128xbf16> to vector<4x8x128xf32>
    %143 = arith.addf %141, %142 : vector<4x8x128xf32>
    %144 = vector.shape_cast %143 : vector<4x8x128xf32> to vector<32x128xf32>
    %145 = arith.truncf %144 : vector<32x128xf32> to vector<32x128xbf16>
    %c0_48 = arith.constant 0 : index
    %c0_49 = arith.constant 0 : index
    %146 = vector.load %arg8[%c0_48, %c0_49] : memref<128x128xbf16, #tpu.memory_space<vmem>>, vector<128x128xbf16>
    %cst_50 = arith.constant dense<0.000000e+00> : vector<32x128xf32>
    %147 = tpu.matmul %145, %146, %cst_50 {dimension_numbers = #tpu.dot_dimension_numbers<[1], [0], [0], [1], [0, 0, 1, 1], [], []>} : vector<32x128xbf16>, vector<128x128xbf16>, vector<32x128xf32> -> vector<32x128xf32>
    %c0_51 = arith.constant 0 : index
    %c0_52 = arith.constant 0 : index
    %148 = vector.load %arg17[%c0_51, %c0_52] : memref<1x128xf32, #tpu.memory_space<vmem>>, vector<1x128xf32>
    %149 = vector.broadcast %148 : vector<1x128xf32> to vector<32x128xf32>
    %150 = arith.addf %147, %149 : vector<32x128xf32>
    %151 = arith.truncf %150 : vector<32x128xf32> to vector<32x128xbf16>
    %152 = vector.shape_cast %151 : vector<32x128xbf16> to vector<4x8x128xbf16>
    %c0_53 = arith.constant 0 : index
    %c0_54 = arith.constant 0 : index
    %c0_55 = arith.constant 0 : index
    %153 = vector.load %arg4[%c0_53, %c0_54, %c0_55] : memref<4x16x128xbf16, #tpu.memory_space<vmem>>, vector<4x16x128xbf16>
    %154 = vector.shape_cast %153 : vector<4x16x128xbf16> to vector<64x128xbf16>
    %c0_56 = arith.constant 0 : index
    %c0_57 = arith.constant 0 : index
    %155 = vector.load %arg9[%c0_56, %c0_57] : memref<128x128xbf16, #tpu.memory_space<vmem>>, vector<128x128xbf16>
    %cst_58 = arith.constant dense<0.000000e+00> : vector<64x128xf32>
    %156 = tpu.matmul %154, %155, %cst_58 {dimension_numbers = #tpu.dot_dimension_numbers<[1], [0], [0], [1], [0, 0, 1, 1], [], []>} : vector<64x128xbf16>, vector<128x128xbf16>, vector<64x128xf32> -> vector<64x128xf32>
    %c0_59 = arith.constant 0 : index
    %c0_60 = arith.constant 0 : index
    %157 = vector.load %arg18[%c0_59, %c0_60] : memref<1x128xf32, #tpu.memory_space<vmem>>, vector<1x128xf32>
    %158 = vector.broadcast %157 : vector<1x128xf32> to vector<64x128xf32>
    %159 = arith.addf %156, %158 : vector<64x128xf32>
    %160 = arith.truncf %159 : vector<64x128xf32> to vector<64x128xbf16>
    %161 = vector.shape_cast %160 : vector<64x128xbf16> to vector<4x16x128xbf16>
    %c0_61 = arith.constant 0 : index
    %c0_62 = arith.constant 0 : index
    %c0_63 = arith.constant 0 : index
    %162 = vector.load %arg2[%c0_61, %c0_62, %c0_63] : memref<4x16x128xbf16, #tpu.memory_space<vmem>>, vector<4x16x128xbf16>
    %163 = vector.shape_cast %162 : vector<4x16x128xbf16> to vector<64x128xbf16>
    %c0_64 = arith.constant 0 : index
    %c0_65 = arith.constant 0 : index
    %164 = vector.load %arg10[%c0_64, %c0_65] : memref<128x128xbf16, #tpu.memory_space<vmem>>, vector<128x128xbf16>
    %cst_66 = arith.constant dense<0.000000e+00> : vector<64x128xf32>
    %165 = tpu.matmul %163, %164, %cst_66 {dimension_numbers = #tpu.dot_dimension_numbers<[1], [0], [0], [1], [0, 0, 1, 1], [], []>} : vector<64x128xbf16>, vector<128x128xbf16>, vector<64x128xf32> -> vector<64x128xf32>
    %c0_67 = arith.constant 0 : index
    %c0_68 = arith.constant 0 : index
    %166 = vector.load %arg19[%c0_67, %c0_68] : memref<1x128xf32, #tpu.memory_space<vmem>>, vector<1x128xf32>
    %167 = vector.broadcast %166 : vector<1x128xf32> to vector<64x128xf32>
    %168 = arith.addf %165, %167 : vector<64x128xf32>
    %169 = arith.truncf %168 : vector<64x128xf32> to vector<64x128xbf16>
    %170 = vector.shape_cast %169 : vector<64x128xbf16> to vector<4x16x128xbf16>
    %c0_69 = arith.constant 0 : index
    %c0_70 = arith.constant 0 : index
    %171 = vector.load %arg11[%c0_69, %c0_70] : memref<128x128xbf16, #tpu.memory_space<vmem>>, vector<128x128xbf16>
    %cst_71 = arith.constant 0.000000e+00 : f32
    %172 = vector.broadcast %cst_71 : f32 to vector<32x128xf32>
    %173 = vector.extract_strided_slice %152 {offsets = [0, 0, 0], sizes = [4, 8, 32], strides = [1, 1, 1]} : vector<4x8x128xbf16> to vector<4x8x32xbf16>
    %174 = vector.extract_strided_slice %161 {offsets = [0, 0, 0], sizes = [4, 16, 32], strides = [1, 1, 1]} : vector<4x16x128xbf16> to vector<4x16x32xbf16>
    "tpu.trace_start"() <{level = 10 : i32, message = "bqd,bkd->bqk"}> : () -> ()
    %cst_72 = arith.constant dense<0.000000e+00> : vector<4x8x16xf32>
    %175 = tpu.matmul %173, %174, %cst_72 {dimension_numbers = #tpu.dot_dimension_numbers<[2], [2], [1], [1], [0, 0, 0, 1, 1, 1], [0], [0]>} : vector<4x8x32xbf16>, vector<4x16x32xbf16>, vector<4x8x16xf32> -> vector<4x8x16xf32>
    "tpu.trace_stop"() : () -> ()
    %cst_73 = arith.constant dense<0xFF800000> : vector<4x8xf32>
    %176 = vector.multi_reduction <maximumf>, %175, %cst_73 [2] : vector<4x8x16xf32> to vector<4x8xf32>
    %177 = vector.shape_cast %176 : vector<4x8xf32> to vector<4x8x1xf32>
    %178 = vector.broadcast %177 : vector<4x8x1xf32> to vector<4x8x16xf32>
    %179 = arith.subf %175, %178 : vector<4x8x16xf32>
    %180 = math.exp %179 : vector<4x8x16xf32>
    %cst_74 = arith.constant dense<0.000000e+00> : vector<4x8xf32>
    %181 = vector.multi_reduction <add>, %180, %cst_74 [2] : vector<4x8x16xf32> to vector<4x8xf32>
    %182 = vector.shape_cast %181 : vector<4x8xf32> to vector<4x8x1xf32>
    %183 = tpu.reciprocal %182 {approx = true} : vector<4x8x1xf32> -> vector<4x8x1xf32>
    %184 = vector.broadcast %183 : vector<4x8x1xf32> to vector<4x8x16xf32>
    %185 = arith.mulf %180, %184 : vector<4x8x16xf32>
    %186 = arith.truncf %185 : vector<4x8x16xf32> to vector<4x8x16xbf16>
    %187 = vector.extract_strided_slice %170 {offsets = [0, 0, 0], sizes = [4, 16, 32], strides = [1, 1, 1]} : vector<4x16x128xbf16> to vector<4x16x32xbf16>
    "tpu.trace_start"() <{level = 10 : i32, message = "bqk,bkd->bqd"}> : () -> ()
    %cst_75 = arith.constant dense<0.000000e+00> : vector<4x8x32xf32>
    %188 = tpu.matmul %186, %187, %cst_75 {dimension_numbers = #tpu.dot_dimension_numbers<[2], [1], [1], [2], [0, 0, 0, 1, 1, 2], [0], [0]>} : vector<4x8x16xbf16>, vector<4x16x32xbf16>, vector<4x8x32xf32> -> vector<4x8x32xf32>
    "tpu.trace_stop"() : () -> ()
    %189 = vector.shape_cast %188 : vector<4x8x32xf32> to vector<32x32xf32>
    %190 = arith.truncf %189 : vector<32x32xf32> to vector<32x32xbf16>
    %191 = vector.extract_strided_slice %171 {offsets = [0, 0], sizes = [32, 128], strides = [1, 1]} : vector<128x128xbf16> to vector<32x128xbf16>
    %cst_76 = arith.constant dense<0.000000e+00> : vector<32x128xf32>
    %192 = tpu.matmul %190, %191, %cst_76 {dimension_numbers = #tpu.dot_dimension_numbers<[1], [0], [0], [1], [0, 0, 1, 1], [], []>} : vector<32x32xbf16>, vector<32x128xbf16>, vector<32x128xf32> -> vector<32x128xf32>
    %193 = arith.addf %172, %192 : vector<32x128xf32>
    %194 = vector.extract_strided_slice %152 {offsets = [0, 0, 32], sizes = [4, 8, 32], strides = [1, 1, 1]} : vector<4x8x128xbf16> to vector<4x8x32xbf16>
    %195 = vector.extract_strided_slice %161 {offsets = [0, 0, 32], sizes = [4, 16, 32], strides = [1, 1, 1]} : vector<4x16x128xbf16> to vector<4x16x32xbf16>
    "tpu.trace_start"() <{level = 10 : i32, message = "bqd,bkd->bqk"}> : () -> ()
    %cst_77 = arith.constant dense<0.000000e+00> : vector<4x8x16xf32>
    %196 = tpu.matmul %194, %195, %cst_77 {dimension_numbers = #tpu.dot_dimension_numbers<[2], [2], [1], [1], [0, 0, 0, 1, 1, 1], [0], [0]>} : vector<4x8x32xbf16>, vector<4x16x32xbf16>, vector<4x8x16xf32> -> vector<4x8x16xf32>
    "tpu.trace_stop"() : () -> ()
    %cst_78 = arith.constant dense<0xFF800000> : vector<4x8xf32>
    %197 = vector.multi_reduction <maximumf>, %196, %cst_78 [2] : vector<4x8x16xf32> to vector<4x8xf32>
    %198 = vector.shape_cast %197 : vector<4x8xf32> to vector<4x8x1xf32>
    %199 = vector.broadcast %198 : vector<4x8x1xf32> to vector<4x8x16xf32>
    %200 = arith.subf %196, %199 : vector<4x8x16xf32>
    %201 = math.exp %200 : vector<4x8x16xf32>
    %cst_79 = arith.constant dense<0.000000e+00> : vector<4x8xf32>
    %202 = vector.multi_reduction <add>, %201, %cst_79 [2] : vector<4x8x16xf32> to vector<4x8xf32>
    %203 = vector.shape_cast %202 : vector<4x8xf32> to vector<4x8x1xf32>
    %204 = tpu.reciprocal %203 {approx = true} : vector<4x8x1xf32> -> vector<4x8x1xf32>
    %205 = vector.broadcast %204 : vector<4x8x1xf32> to vector<4x8x16xf32>
    %206 = arith.mulf %201, %205 : vector<4x8x16xf32>
    %207 = arith.truncf %206 : vector<4x8x16xf32> to vector<4x8x16xbf16>
    %208 = vector.extract_strided_slice %170 {offsets = [0, 0, 32], sizes = [4, 16, 32], strides = [1, 1, 1]} : vector<4x16x128xbf16> to vector<4x16x32xbf16>
    "tpu.trace_start"() <{level = 10 : i32, message = "bqk,bkd->bqd"}> : () -> ()
    %cst_80 = arith.constant dense<0.000000e+00> : vector<4x8x32xf32>
    %209 = tpu.matmul %207, %208, %cst_80 {dimension_numbers = #tpu.dot_dimension_numbers<[2], [1], [1], [2], [0, 0, 0, 1, 1, 2], [0], [0]>} : vector<4x8x16xbf16>, vector<4x16x32xbf16>, vector<4x8x32xf32> -> vector<4x8x32xf32>
    "tpu.trace_stop"() : () -> ()
    %210 = vector.shape_cast %209 : vector<4x8x32xf32> to vector<32x32xf32>
    %211 = arith.truncf %210 : vector<32x32xf32> to vector<32x32xbf16>
    %212 = vector.extract_strided_slice %171 {offsets = [32, 0], sizes = [32, 128], strides = [1, 1]} : vector<128x128xbf16> to vector<32x128xbf16>
    %cst_81 = arith.constant dense<0.000000e+00> : vector<32x128xf32>
    %213 = tpu.matmul %211, %212, %cst_81 {dimension_numbers = #tpu.dot_dimension_numbers<[1], [0], [0], [1], [0, 0, 1, 1], [], []>} : vector<32x32xbf16>, vector<32x128xbf16>, vector<32x128xf32> -> vector<32x128xf32>
    %214 = arith.addf %193, %213 : vector<32x128xf32>
    %215 = vector.extract_strided_slice %152 {offsets = [0, 0, 64], sizes = [4, 8, 32], strides = [1, 1, 1]} : vector<4x8x128xbf16> to vector<4x8x32xbf16>
    %216 = vector.extract_strided_slice %161 {offsets = [0, 0, 64], sizes = [4, 16, 32], strides = [1, 1, 1]} : vector<4x16x128xbf16> to vector<4x16x32xbf16>
    "tpu.trace_start"() <{level = 10 : i32, message = "bqd,bkd->bqk"}> : () -> ()
    %cst_82 = arith.constant dense<0.000000e+00> : vector<4x8x16xf32>
    %217 = tpu.matmul %215, %216, %cst_82 {dimension_numbers = #tpu.dot_dimension_numbers<[2], [2], [1], [1], [0, 0, 0, 1, 1, 1], [0], [0]>} : vector<4x8x32xbf16>, vector<4x16x32xbf16>, vector<4x8x16xf32> -> vector<4x8x16xf32>
    "tpu.trace_stop"() : () -> ()
    %cst_83 = arith.constant dense<0xFF800000> : vector<4x8xf32>
    %218 = vector.multi_reduction <maximumf>, %217, %cst_83 [2] : vector<4x8x16xf32> to vector<4x8xf32>
    %219 = vector.shape_cast %218 : vector<4x8xf32> to vector<4x8x1xf32>
    %220 = vector.broadcast %219 : vector<4x8x1xf32> to vector<4x8x16xf32>
    %221 = arith.subf %217, %220 : vector<4x8x16xf32>
    %222 = math.exp %221 : vector<4x8x16xf32>
    %cst_84 = arith.constant dense<0.000000e+00> : vector<4x8xf32>
    %223 = vector.multi_reduction <add>, %222, %cst_84 [2] : vector<4x8x16xf32> to vector<4x8xf32>
    %224 = vector.shape_cast %223 : vector<4x8xf32> to vector<4x8x1xf32>
    %225 = tpu.reciprocal %224 {approx = true} : vector<4x8x1xf32> -> vector<4x8x1xf32>
    %226 = vector.broadcast %225 : vector<4x8x1xf32> to vector<4x8x16xf32>
    %227 = arith.mulf %222, %226 : vector<4x8x16xf32>
    %228 = arith.truncf %227 : vector<4x8x16xf32> to vector<4x8x16xbf16>
    %229 = vector.extract_strided_slice %170 {offsets = [0, 0, 64], sizes = [4, 16, 32], strides = [1, 1, 1]} : vector<4x16x128xbf16> to vector<4x16x32xbf16>
    "tpu.trace_start"() <{level = 10 : i32, message = "bqk,bkd->bqd"}> : () -> ()
    %cst_85 = arith.constant dense<0.000000e+00> : vector<4x8x32xf32>
    %230 = tpu.matmul %228, %229, %cst_85 {dimension_numbers = #tpu.dot_dimension_numbers<[2], [1], [1], [2], [0, 0, 0, 1, 1, 2], [0], [0]>} : vector<4x8x16xbf16>, vector<4x16x32xbf16>, vector<4x8x32xf32> -> vector<4x8x32xf32>
    "tpu.trace_stop"() : () -> ()
    %231 = vector.shape_cast %230 : vector<4x8x32xf32> to vector<32x32xf32>
    %232 = arith.truncf %231 : vector<32x32xf32> to vector<32x32xbf16>
    %233 = vector.extract_strided_slice %171 {offsets = [64, 0], sizes = [32, 128], strides = [1, 1]} : vector<128x128xbf16> to vector<32x128xbf16>
    %cst_86 = arith.constant dense<0.000000e+00> : vector<32x128xf32>
    %234 = tpu.matmul %232, %233, %cst_86 {dimension_numbers = #tpu.dot_dimension_numbers<[1], [0], [0], [1], [0, 0, 1, 1], [], []>} : vector<32x32xbf16>, vector<32x128xbf16>, vector<32x128xf32> -> vector<32x128xf32>
    %235 = arith.addf %214, %234 : vector<32x128xf32>
    %236 = vector.extract_strided_slice %152 {offsets = [0, 0, 96], sizes = [4, 8, 32], strides = [1, 1, 1]} : vector<4x8x128xbf16> to vector<4x8x32xbf16>
    %237 = vector.extract_strided_slice %161 {offsets = [0, 0, 96], sizes = [4, 16, 32], strides = [1, 1, 1]} : vector<4x16x128xbf16> to vector<4x16x32xbf16>
    "tpu.trace_start"() <{level = 10 : i32, message = "bqd,bkd->bqk"}> : () -> ()
    %cst_87 = arith.constant dense<0.000000e+00> : vector<4x8x16xf32>
    %238 = tpu.matmul %236, %237, %cst_87 {dimension_numbers = #tpu.dot_dimension_numbers<[2], [2], [1], [1], [0, 0, 0, 1, 1, 1], [0], [0]>} : vector<4x8x32xbf16>, vector<4x16x32xbf16>, vector<4x8x16xf32> -> vector<4x8x16xf32>
    "tpu.trace_stop"() : () -> ()
    %cst_88 = arith.constant dense<0xFF800000> : vector<4x8xf32>
    %239 = vector.multi_reduction <maximumf>, %238, %cst_88 [2] : vector<4x8x16xf32> to vector<4x8xf32>
    %240 = vector.shape_cast %239 : vector<4x8xf32> to vector<4x8x1xf32>
    %241 = vector.broadcast %240 : vector<4x8x1xf32> to vector<4x8x16xf32>
    %242 = arith.subf %238, %241 : vector<4x8x16xf32>
    %243 = math.exp %242 : vector<4x8x16xf32>
    %cst_89 = arith.constant dense<0.000000e+00> : vector<4x8xf32>
    %244 = vector.multi_reduction <add>, %243, %cst_89 [2] : vector<4x8x16xf32> to vector<4x8xf32>
    %245 = vector.shape_cast %244 : vector<4x8xf32> to vector<4x8x1xf32>
    %246 = tpu.reciprocal %245 {approx = true} : vector<4x8x1xf32> -> vector<4x8x1xf32>
    %247 = vector.broadcast %246 : vector<4x8x1xf32> to vector<4x8x16xf32>
    %248 = arith.mulf %243, %247 : vector<4x8x16xf32>
    %249 = arith.truncf %248 : vector<4x8x16xf32> to vector<4x8x16xbf16>
    %250 = vector.extract_strided_slice %170 {offsets = [0, 0, 96], sizes = [4, 16, 32], strides = [1, 1, 1]} : vector<4x16x128xbf16> to vector<4x16x32xbf16>
    "tpu.trace_start"() <{level = 10 : i32, message = "bqk,bkd->bqd"}> : () -> ()
    %cst_90 = arith.constant dense<0.000000e+00> : vector<4x8x32xf32>
    %251 = tpu.matmul %249, %250, %cst_90 {dimension_numbers = #tpu.dot_dimension_numbers<[2], [1], [1], [2], [0, 0, 0, 1, 1, 2], [0], [0]>} : vector<4x8x16xbf16>, vector<4x16x32xbf16>, vector<4x8x32xf32> -> vector<4x8x32xf32>
    "tpu.trace_stop"() : () -> ()
    %252 = vector.shape_cast %251 : vector<4x8x32xf32> to vector<32x32xf32>
    %253 = arith.truncf %252 : vector<32x32xf32> to vector<32x32xbf16>
    %254 = vector.extract_strided_slice %171 {offsets = [96, 0], sizes = [32, 128], strides = [1, 1]} : vector<128x128xbf16> to vector<32x128xbf16>
    %cst_91 = arith.constant dense<0.000000e+00> : vector<32x128xf32>
    %255 = tpu.matmul %253, %254, %cst_91 {dimension_numbers = #tpu.dot_dimension_numbers<[1], [0], [0], [1], [0, 0, 1, 1], [], []>} : vector<32x32xbf16>, vector<32x128xbf16>, vector<32x128xf32> -> vector<32x128xf32>
    %256 = arith.addf %235, %255 : vector<32x128xf32>
    %c0_92 = arith.constant 0 : index
    %c0_93 = arith.constant 0 : index
    %257 = vector.load %arg20[%c0_92, %c0_93] : memref<1x128xf32, #tpu.memory_space<vmem>>, vector<1x128xf32>
    %258 = vector.broadcast %257 : vector<1x128xf32> to vector<32x128xf32>
    %259 = arith.addf %256, %258 : vector<32x128xf32>
    %260 = arith.truncf %259 : vector<32x128xf32> to vector<32x128xbf16>
    %c0_94 = arith.constant 0 : index
    %c0_95 = arith.constant 0 : index
    %261 = vector.load %arg12[%c0_94, %c0_95] : memref<128x256xbf16, #tpu.memory_space<vmem>>, vector<128x256xbf16>
    %cst_96 = arith.constant dense<0.000000e+00> : vector<32x256xf32>
    %262 = tpu.matmul %260, %261, %cst_96 {dimension_numbers = #tpu.dot_dimension_numbers<[1], [0], [0], [1], [0, 0, 1, 1], [], []>} : vector<32x128xbf16>, vector<128x256xbf16>, vector<32x256xf32> -> vector<32x256xf32>
    %c0_97 = arith.constant 0 : index
    %c0_98 = arith.constant 0 : index
    %263 = vector.load %arg21[%c0_97, %c0_98] : memref<1x256xf32, #tpu.memory_space<vmem>>, vector<1x256xf32>
    %264 = vector.broadcast %263 : vector<1x256xf32> to vector<32x256xf32>
    %265 = arith.addf %262, %264 : vector<32x256xf32>
    %cst_99 = arith.constant 0.000000e+00 : f32
    %266 = vector.broadcast %cst_99 : f32 to vector<32x256xf32>
    %267 = arith.maximumf %265, %266 : vector<32x256xf32>
    %268 = arith.truncf %267 : vector<32x256xf32> to vector<32x256xbf16>
    %c0_100 = arith.constant 0 : index
    %c0_101 = arith.constant 0 : index
    %269 = vector.load %arg13[%c0_100, %c0_101] : memref<256x128xbf16, #tpu.memory_space<vmem>>, vector<256x128xbf16>
    %cst_102 = arith.constant dense<0.000000e+00> : vector<32x128xf32>
    %270 = tpu.matmul %268, %269, %cst_102 {dimension_numbers = #tpu.dot_dimension_numbers<[1], [0], [0], [1], [0, 0, 1, 1], [], []>} : vector<32x256xbf16>, vector<256x128xbf16>, vector<32x128xf32> -> vector<32x128xf32>
    %c0_103 = arith.constant 0 : index
    %c0_104 = arith.constant 0 : index
    %271 = vector.load %arg22[%c0_103, %c0_104] : memref<1x128xf32, #tpu.memory_space<vmem>>, vector<1x128xf32>
    %272 = vector.broadcast %271 : vector<1x128xf32> to vector<32x128xf32>
    %273 = arith.addf %270, %272 : vector<32x128xf32>
    %274 = vector.shape_cast %273 : vector<32x128xf32> to vector<4x8x128xf32>
    %275 = arith.addf %141, %274 : vector<4x8x128xf32>
    %c0_105 = arith.constant 0 : index
    %c0_106 = arith.constant 0 : index
    %276 = vector.load %arg25[%c0_105, %c0_106] : memref<1x128xf32, #tpu.memory_space<vmem>>, vector<1x128xf32>
    %c0_107 = arith.constant 0 : index
    %c0_108 = arith.constant 0 : index
    %277 = vector.load %arg26[%c0_107, %c0_108] : memref<1x128xf32, #tpu.memory_space<vmem>>, vector<1x128xf32>
    %cst_109 = arith.constant dense<0.000000e+00> : vector<4x8xf32>
    %278 = vector.multi_reduction <add>, %275, %cst_109 [2] : vector<4x8x128xf32> to vector<4x8xf32>
    %279 = vector.shape_cast %278 : vector<4x8xf32> to vector<4x8x1xf32>
    %cst_110 = arith.constant 1.280000e+02 : f32
    %280 = vector.broadcast %cst_110 : f32 to vector<4x8x1xf32>
    %281 = arith.divf %279, %280 : vector<4x8x1xf32>
    %282 = vector.broadcast %281 : vector<4x8x1xf32> to vector<4x8x128xf32>
    %283 = arith.subf %275, %282 : vector<4x8x128xf32>
    %284 = arith.mulf %283, %283 : vector<4x8x128xf32>
    %cst_111 = arith.constant dense<0.000000e+00> : vector<4x8xf32>
    %285 = vector.multi_reduction <add>, %284, %cst_111 [2] : vector<4x8x128xf32> to vector<4x8xf32>
    %286 = vector.shape_cast %285 : vector<4x8xf32> to vector<4x8x1xf32>
    %cst_112 = arith.constant 1.280000e+02 : f32
    %287 = vector.broadcast %cst_112 : f32 to vector<4x8x1xf32>
    %288 = arith.divf %286, %287 : vector<4x8x1xf32>
    %289 = vector.broadcast %281 : vector<4x8x1xf32> to vector<4x8x128xf32>
    %290 = arith.subf %275, %289 : vector<4x8x128xf32>
    %cst_113 = arith.constant 9.99999974E-6 : f32
    %291 = vector.broadcast %cst_113 : f32 to vector<4x8x1xf32>
    %292 = arith.addf %288, %291 : vector<4x8x1xf32>
    %293 = math.rsqrt %292 : vector<4x8x1xf32>
    %294 = vector.broadcast %293 : vector<4x8x1xf32> to vector<4x8x128xf32>
    %295 = arith.mulf %290, %294 : vector<4x8x128xf32>
    %296 = vector.shape_cast %276 : vector<1x128xf32> to vector<1x1x128xf32>
    %297 = vector.broadcast %296 : vector<1x1x128xf32> to vector<4x8x128xf32>
    %298 = arith.mulf %295, %297 : vector<4x8x128xf32>
    %299 = vector.shape_cast %277 : vector<1x128xf32> to vector<1x1x128xf32>
    %300 = vector.broadcast %299 : vector<1x1x128xf32> to vector<4x8x128xf32>
    %301 = arith.addf %298, %300 : vector<4x8x128xf32>
    %c0_114 = arith.constant 0 : index
    %c0_115 = arith.constant 0 : index
    %c0_116 = arith.constant 0 : index
    %302 = vector.load %arg27[%c0_114, %c0_115, %c0_116] : memref<4x8x128xf32, #tpu.memory_space<vmem>>, vector<4x8x128xf32>
    tpu.vector_store %arg27[%c0_114, %c0_115, %c0_116], %301 {strides = array<i32>} : memref<4x8x128xf32, #tpu.memory_space<vmem>>, vector<4x8x128xf32>,
    return
  }
  func.func @transform_0(%arg0: i32) -> (i32, i32, i32) {
    %c0_i32 = arith.constant 0 : i32
    %c0_i32_0 = arith.constant 0 : i32
    %c0_i32_1 = arith.constant 0 : i32
    return %arg0, %c0_i32, %c0_i32_0 : i32, i32, i32
  }
  func.func @transform_1(%arg0: i32) -> (i32, i32, i32) {
    %c0_i32 = arith.constant 0 : i32
    %c0_i32_0 = arith.constant 0 : i32
    %c0_i32_1 = arith.constant 0 : i32
    return %arg0, %c0_i32, %c0_i32_0 : i32, i32, i32
  }
  func.func @transform_2(%arg0: i32) -> (i32, i32, i32) {
    %c0_i32 = arith.constant 0 : i32
    %c0_i32_0 = arith.constant 0 : i32
    %c0_i32_1 = arith.constant 0 : i32
    return %arg0, %c0_i32, %c0_i32_0 : i32, i32, i32
  }
  func.func @transform_3(%arg0: i32) -> (i32, i32, i32) {
    %c0_i32 = arith.constant 0 : i32
    %c0_i32_0 = arith.constant 0 : i32
    %c0_i32_1 = arith.constant 0 : i32
    return %arg0, %c0_i32, %c0_i32_0 : i32, i32, i32
  }
  func.func @transform_4(%arg0: i32) -> (i32, i32) {
    %c0_i32 = arith.constant 0 : i32
    %c0_i32_0 = arith.constant 0 : i32
    %c0_i32_1 = arith.constant 0 : i32
    return %c0_i32, %c0_i32_0 : i32, i32
  }
  func.func @transform_5(%arg0: i32) -> (i32, i32) {
    %c0_i32 = arith.constant 0 : i32
    %c0_i32_0 = arith.constant 0 : i32
    %c0_i32_1 = arith.constant 0 : i32
    return %c0_i32, %c0_i32_0 : i32, i32
  }
  func.func @transform_6(%arg0: i32) -> (i32, i32) {
    %c0_i32 = arith.constant 0 : i32
    %c0_i32_0 = arith.constant 0 : i32
    %c0_i32_1 = arith.constant 0 : i32
    return %c0_i32, %c0_i32_0 : i32, i32
  }
  func.func @transform_7(%arg0: i32) -> (i32, i32) {
    %c0_i32 = arith.constant 0 : i32
    %c0_i32_0 = arith.constant 0 : i32
    %c0_i32_1 = arith.constant 0 : i32
    return %c0_i32, %c0_i32_0 : i32, i32
  }
  func.func @transform_8(%arg0: i32) -> (i32, i32) {
    %c0_i32 = arith.constant 0 : i32
    %c0_i32_0 = arith.constant 0 : i32
    %c0_i32_1 = arith.constant 0 : i32
    return %c0_i32, %c0_i32_0 : i32, i32
  }
  func.func @transform_9(%arg0: i32) -> (i32, i32) {
    %c0_i32 = arith.constant 0 : i32
    %c0_i32_0 = arith.constant 0 : i32
    %c0_i32_1 = arith.constant 0 : i32
    return %c0_i32, %c0_i32_0 : i32, i32
  }
  func.func @transform_10(%arg0: i32) -> (i32, i32) {
    %c0_i32 = arith.constant 0 : i32
    %c0_i32_0 = arith.constant 0 : i32
    %c0_i32_1 = arith.constant 0 : i32
    return %c0_i32, %c0_i32_0 : i32, i32
  }
  func.func @transform_11(%arg0: i32) -> (i32, i32) {
    %c0_i32 = arith.constant 0 : i32
    %c0_i32_0 = arith.constant 0 : i32
    %c0_i32_1 = arith.constant 0 : i32
    return %c0_i32, %c0_i32_0 : i32, i32
  }
  func.func @transform_12(%arg0: i32) -> (i32, i32) {
    %c0_i32 = arith.constant 0 : i32
    %c0_i32_0 = arith.constant 0 : i32
    %c0_i32_1 = arith.constant 0 : i32
    return %c0_i32, %c0_i32_0 : i32, i32
  }
  func.func @transform_13(%arg0: i32) -> (i32, i32) {
    %c0_i32 = arith.constant 0 : i32
    %c0_i32_0 = arith.constant 0 : i32
    %c0_i32_1 = arith.constant 0 : i32
    return %c0_i32, %c0_i32_0 : i32, i32
  }
  func.func @transform_14(%arg0: i32) -> (i32, i32) {
    %c0_i32 = arith.constant 0 : i32
    %c0_i32_0 = arith.constant 0 : i32
    %c0_i32_1 = arith.constant 0 : i32
    return %c0_i32, %c0_i32_0 : i32, i32
  }
  func.func @transform_15(%arg0: i32) -> (i32, i32) {
    %c0_i32 = arith.constant 0 : i32
    %c0_i32_0 = arith.constant 0 : i32
    %c0_i32_1 = arith.constant 0 : i32
    return %c0_i32, %c0_i32_0 : i32, i32
  }
  func.func @transform_16(%arg0: i32) -> (i32, i32) {
    %c0_i32 = arith.constant 0 : i32
    %c0_i32_0 = arith.constant 0 : i32
    %c0_i32_1 = arith.constant 0 : i32
    return %c0_i32, %c0_i32_0 : i32, i32
  }
  func.func @transform_17(%arg0: i32) -> (i32, i32) {
    %c0_i32 = arith.constant 0 : i32
    %c0_i32_0 = arith.constant 0 : i32
    %c0_i32_1 = arith.constant 0 : i32
    return %c0_i32, %c0_i32_0 : i32, i32
  }
  func.func @transform_18(%arg0: i32) -> (i32, i32) {
    %c0_i32 = arith.constant 0 : i32
    %c0_i32_0 = arith.constant 0 : i32
    %c0_i32_1 = arith.constant 0 : i32
    return %c0_i32, %c0_i32_0 : i32, i32
  }
  func.func @transform_19(%arg0: i32) -> (i32, i32) {
    %c0_i32 = arith.constant 0 : i32
    %c0_i32_0 = arith.constant 0 : i32
    %c0_i32_1 = arith.constant 0 : i32
    return %c0_i32, %c0_i32_0 : i32, i32
  }
  func.func @transform_20(%arg0: i32) -> (i32, i32) {
    %c0_i32 = arith.constant 0 : i32
    %c0_i32_0 = arith.constant 0 : i32
    %c0_i32_1 = arith.constant 0 : i32
    return %c0_i32, %c0_i32_0 : i32, i32
  }
  func.func @transform_21(%arg0: i32) -> (i32, i32) {
    %c0_i32 = arith.constant 0 : i32
    %c0_i32_0 = arith.constant 0 : i32
    %c0_i32_1 = arith.constant 0 : i32
    return %c0_i32, %c0_i32_0 : i32, i32
  }
  func.func @transform_22(%arg0: i32) -> (i32, i32) {
    %c0_i32 = arith.constant 0 : i32
    %c0_i32_0 = arith.constant 0 : i32
    %c0_i32_1 = arith.constant 0 : i32
    return %c0_i32, %c0_i32_0 : i32, i32
  }
  func.func @transform_23(%arg0: i32) -> (i32, i32) {
    %c0_i32 = arith.constant 0 : i32
    %c0_i32_0 = arith.constant 0 : i32
    %c0_i32_1 = arith.constant 0 : i32
    return %c0_i32, %c0_i32_0 : i32, i32
  }
  func.func @transform_24(%arg0: i32) -> (i32, i32) {
    %c0_i32 = arith.constant 0 : i32
    %c0_i32_0 = arith.constant 0 : i32
    %c0_i32_1 = arith.constant 0 : i32
    return %c0_i32, %c0_i32_0 : i32, i32
  }
  func.func @transform_25(%arg0: i32) -> (i32, i32) {
    %c0_i32 = arith.constant 0 : i32
    %c0_i32_0 = arith.constant 0 : i32
    %c0_i32_1 = arith.constant 0 : i32
    return %c0_i32, %c0_i32_0 : i32, i32
  }
  func.func @transform_26(%arg0: i32) -> (i32, i32, i32) {
    %c0_i32 = arith.constant 0 : i32
    %c0_i32_0 = arith.constant 0 : i32
    %c0_i32_1 = arith.constant 0 : i32
    return %arg0, %c0_i32, %c0_i32_0 : i32, i32, i32
  }
}

</mosaic_0001>

<bundles_post_ra>
// kernel: tpu_custom_call.1
= control target key start
LH: loop header
LB: loop body
LE: loop exit
PB: predicated region body
PF: predicated region fallthrough
CT: control target
= control target key end

     0   :  { %s8465_s0 = inlined_call_operand.hbm [shape: f32[4,8,128], index: 0, kind: input, shape index: {}]   ;;  %s8466_s1 = inlined_call_operand.hbm [shape: bf16[4,16,128], index: 1, kind: input, shape index: {}]   ;;  %s8467_s2 = inlined_call_operand.hbm [shape: bf16[4,8,128], index: 2, kind: input, shape index: {}]   ;;  %s8468_s3 = inlined_call_operand.hbm [shape: bf16[4,16,128], index: 3, kind: input, shape index: {}]   ;;  %s8469_s4 = inlined_call_operand.hbm [shape: bf16[128,256], index: 4, kind: input, shape index: {}]   ;;  %s8470_s5 = inlined_call_operand.hbm [shape: bf16[128,128], index: 5, kind: input, shape index: {}]   ;;  %s8471_s6 = inlined_call_operand.hbm [shape: bf16[128,128], index: 6, kind: input, shape index: {}]   ;;  %s8472_s7 = inlined_call_operand.hbm [shape: bf16[128,128], index: 7, kind: input, shape index: {}]   ;;  %s8473_s8 = inlined_call_operand.hbm [shape: bf16[128,128], index: 8, kind: input, shape index: {}]   ;;  %s8474_s9 = inlined_call_operand.hbm [shape: bf16[128,128], index: 9, kind: input, shape index: {}]   ;;  %s8475_s10 = inlined_call_operand.hbm [shape: bf16[128,128], index: 10, kind: input, shape index: {}]   ;;  %s8476_s11 = inlined_call_operand.hbm [shape: bf16[128,256], index: 11, kind: input, shape index: {}]   ;;  %s8477_s12 = inlined_call_operand.hbm [shape: bf16[256,128], index: 12, kind: input, shape index: {}]   ;;  %s8478_s13 = inlined_call_operand.vmem [shape: f32[1,256], index: 13, kind: input, shape index: {}]   ;;  %s8479_s14 = inlined_call_operand.vmem [shape: f32[1,128], index: 14, kind: input, shape index: {}]   ;;  %s8480_s15 = inlined_call_operand.vmem [shape: f32[1,128], index: 15, kind: input, shape index: {}]   ;;  %s8481_s16 = inlined_call_operand.vmem [shape: f32[1,128], index: 16, kind: input, shape index: {}]   ;;  %s8482_s17 = inlined_call_operand.vmem [shape: f32[1,128], index: 17, kind: input, shape index: {}]   ;;  %s8483_s18 = inlined_call_operand.vmem [shape: f32[1,128], index: 18, kind: input, shape index: {}]   ;;  %s8484_s19 = inlined_call_operand.vmem [shape: f32[1,128], index: 19, kind: input, shape index: {}]   ;;  %s8485_s20 = inlined_call_operand.vmem [shape: f32[1,256], index: 20, kind: input, shape index: {}]   ;;  %s8486_s21 = inlined_call_operand.vmem [shape: f32[1,128], index: 21, kind: input, shape index: {}]   ;;  %s8487_s22 = inlined_call_operand.vmem [shape: f32[1,128], index: 22, kind: input, shape index: {}]   ;;  %s8488_s23 = inlined_call_operand.vmem [shape: f32[1,128], index: 23, kind: input, shape index: {}]   ;;  %s8489_s24 = inlined_call_operand.vmem [shape: f32[1,128], index: 24, kind: input, shape index: {}]   ;;  %s8490_s25 = inlined_call_operand.vmem [shape: f32[1,128], index: 25, kind: input, shape index: {}]   ;;  %s8491_s26 = inlined_call_operand.hbm [shape: f32[4,8,128], index: 26, kind: output, shape index: {}]  }
   0x1   :  { %8509 = sst [smem:[#allocation32_spill]] %s8465_s0 }
   0x2   :  { %8510 = sst [smem:[#allocation33_spill]] %s8466_s1 }
   0x3   :  { %8511 = sst [smem:[#allocation34_spill]] %s8467_s2 }
   0x4   :  { %8512 = sst [smem:[#allocation35_spill]] %s8468_s3 }
   0x5   :  { %8513 = sst [smem:[#allocation36_spill]] %s8469_s4 }
   0x6   :  { %8514 = sst [smem:[#allocation37_spill]] %s8470_s5 }
   0x7   :  { %8515 = sst [smem:[#allocation38_spill]] %s8471_s6 }
   0x8   :  { %8516 = sst [smem:[#allocation39_spill]] %s8472_s7 }
   0x9   :  { %8517 = sst [smem:[#allocation40_spill]] %s8473_s8 }
   0xa   :  { %8518 = sst [smem:[#allocation41_spill]] %s8474_s9 }
   0xb   :  { %8519 = sst [smem:[#allocation42_spill]] %s8475_s10 }
   0xc   :  { %8520 = sst [smem:[#allocation43_spill]] %s8489_s24 }
   0xd   :  { %8521 = sst [smem:[#allocation44_spill]] %s8490_s25 }
   0xe   :  { %8522 = sst [smem:[#allocation45_spill]] %s8491_s26 }
   0xf   :  { %31 = vsyncpa [#allocation3], 0 }
  0x10   :  { %32 = vsyncpa [#allocation6], 0 }
  0x11   :  { %33 = vsyncpa [#allocation9], 0 }
  0x12   :  { %34 = vsyncpa [#allocation12], 0 }
  0x13   :  { %35 = vsyncpa [#allocation15], 0 }
  0x14   :  { %36 = vsyncpa [#allocation18], 0 }
  0x15   :  { %37 = vsyncpa [#allocation21], 0 }
  0x16   :  { %38 = vsyncpa [#allocation4], 0  ;;  %s7338_s27 = smov [#allocation5]   ;;  %s8523_s8 = sld [smem:[#allocation33_spill]] }
  0x17   :  { %s56_s3 = sshll.u32 %s7338_s27, 4  ;;  %s57_s3 = int_to_ptr.vmem [resolvable:$true] %s56_s3 }
  0x1c   :  { %s7014_s4 = scalar_lea.hbm %s8523_s8, 512 }
  0x1d   :  { %p7015_p0 = scmp.ne.s32.totalorder %s8523_s8, %s7014_s4  ;;  %p7018_p1 = scmp.lt.u32.totalorder %s7014_s4, %s8523_s8 }
  0x1f   :  { %p7020_p2 = pnand %p7018_p1, %p7015_p0 }
  0x21   :  { %7023 = shalt.err (!%p7020_p2)
}
  0x22   :  { %s7024_s2 = scalar_lea.vmem %s57_s3, 512  ;;  %p7029_p4 = scmp.lt.s32.totalorder %s57_s3, %s57_s3 }
  0x23   :  { %p7025_p3 = scmp.ne.s32.totalorder %s57_s3, %s7024_s2  ;;  %p7030_p5 = scmp.lt.s32.totalorder %s7024_s2, %s7024_s2 }
  0x25   :  { %p7031_p6 = por %p7030_p5, %p7029_p4 }
  0x27   :  { %p7032_p7 = pnand %p7031_p6, %p7025_p3 }
  0x29   :  { %7035 = shalt.err (!%p7032_p7)
}
  0x2a   :  { %s8504_s5 = smov 64   ;;  %s8506_s10 = smov 4  }
  0x2b   :  { %62 = dma.hbm_to_vmem [thread:$0]  %s8523_s8, 512, %s57_s3, [#allocation6], %s8504_s5, %s8504_s5, %s8506_s10  }
  0x2c   :  { %s7341_s27 = smov [#allocation8]   ;;  %s7342_s28 = smov [#allocation11]  }
  0x2d   :  { %s80_s7 = sshll.u32 %s7341_s27, 4  ;;  %s104_s4 = sshll.u32 %s7342_s28, 4  ;;  %s81_s7 = int_to_ptr.vmem [resolvable:$true] %s80_s7  ;;  %s105_s4 = int_to_ptr.vmem [resolvable:$true] %s104_s4 }
  0x2e   :  { %s8524_s9 = sld [smem:[#allocation35_spill]] }
  0x34   :  { %s7036_s30 = scalar_lea.hbm %s8524_s9, 512 }
  0x35   :  { %p7037_p8 = scmp.ne.s32.totalorder %s8524_s9, %s7036_s30  ;;  %p7040_p9 = scmp.lt.u32.totalorder %s7036_s30, %s8524_s9 }
  0x37   :  { %p7042_p10 = pnand %p7040_p9, %p7037_p8 }
  0x39   :  { %7045 = shalt.err (!%p7042_p10)
}
  0x3a   :  { %s7046_s3 = scalar_lea.vmem %s81_s7, 512  ;;  %p7051_p12 = scmp.lt.s32.totalorder %s81_s7, %s81_s7 }
  0x3b   :  { %p7047_p11 = scmp.ne.s32.totalorder %s81_s7, %s7046_s3  ;;  %p7052_p13 = scmp.lt.s32.totalorder %s7046_s3, %s7046_s3 }
  0x3d   :  { %p7053_p0 = por %p7052_p13, %p7051_p12 }
  0x3f   :  { %p7054_p1 = pnand %p7053_p0, %p7047_p11 }
  0x41   :  { %7057 = shalt.err (!%p7054_p1)
}
  0x42   :  { %86 = dma.hbm_to_vmem [thread:$0]  %s8524_s9, 512, %s81_s7, [#allocation9], %s8504_s5, %s8504_s5, %s8506_s10  }
  0x43   :  { %s8525_s25 = sld [smem:[#allocation37_spill]] }
  0x49   :  { %s7058_s1 = scalar_lea.hbm %s8525_s25, 1024 }
  0x4a   :  { %p7059_p2 = scmp.ne.s32.totalorder %s8525_s25, %s7058_s1  ;;  %p7062_p3 = scmp.lt.u32.totalorder %s7058_s1, %s8525_s25 }
  0x4c   :  { %p7064_p4 = pnand %p7062_p3, %p7059_p2 }
  0x4e   :  { %7067 = shalt.err (!%p7064_p4)
}
  0x4f   :  { %s7068_s30 = scalar_lea.vmem %s105_s4, 1024  ;;  %p7073_p6 = scmp.lt.s32.totalorder %s105_s4, %s105_s4 }
  0x50   :  { %p7069_p5 = scmp.ne.s32.totalorder %s105_s4, %s7068_s30  ;;  %p7074_p7 = scmp.lt.s32.totalorder %s7068_s30, %s7068_s30 }
  0x52   :  { %p7075_p8 = por %p7074_p7, %p7073_p6 }
  0x54   :  { %p7076_p9 = pnand %p7075_p8, %p7069_p5 }
  0x56   :  { %7079 = shalt.err (!%p7076_p9)
}
  0x57   :  { %110 = dma.hbm_to_vmem [thread:$0]  %s8525_s25, 1024, %s105_s4, [#allocation12], %s8504_s5, %s8504_s5, %s8506_s10  }
  0x58   :  { %s7343_s2 = smov [#allocation14]   ;;  %s7344_s8 = smov [#allocation17]  }
  0x59   :  { %s128_s3 = sshll.u32 %s7343_s2, 4  ;;  %s152_s6 = sshll.u32 %s7344_s8, 4  ;;  %s129_s3 = int_to_ptr.vmem [resolvable:$true] %s128_s3  ;;  %s153_s6 = int_to_ptr.vmem [resolvable:$true] %s152_s6 }
  0x5a   :  { %s8526_s1 = sld [smem:[#allocation39_spill]] }
  0x60   :  { %s7080_s27 = scalar_lea.hbm %s8526_s1, 1024 }
  0x61   :  { %p7081_p10 = scmp.ne.s32.totalorder %s8526_s1, %s7080_s27  ;;  %p7084_p11 = scmp.lt.u32.totalorder %s7080_s27, %s8526_s1 }
  0x63   :  { %p7086_p12 = pnand %p7084_p11, %p7081_p10 }
  0x65   :  { %7089 = shalt.err (!%p7086_p12)
}
  0x66   :  { %s7090_s4 = scalar_lea.vmem %s129_s3, 1024  ;;  %p7095_p0 = scmp.lt.s32.totalorder %s129_s3, %s129_s3 }
  0x67   :  { %p7091_p13 = scmp.ne.s32.totalorder %s129_s3, %s7090_s4  ;;  %p7096_p1 = scmp.lt.s32.totalorder %s7090_s4, %s7090_s4 }
  0x69   :  { %p7097_p2 = por %p7096_p1, %p7095_p0 }
  0x6b   :  { %p7098_p3 = pnand %p7097_p2, %p7091_p13 }
  0x6d   :  { %7101 = shalt.err (!%p7098_p3)
}
  0x6e   :  { %134 = dma.hbm_to_vmem [thread:$0]  %s8526_s1, 1024, %s129_s3, [#allocation15], %s8504_s5, %s8504_s5, %s8506_s10  }
  0x6f   :  { %s8527_s8 = sld [smem:[#allocation41_spill]] }
  0x75   :  { %s7102_s26 = scalar_lea.hbm %s8527_s8, 1024 }
  0x76   :  { %p7103_p4 = scmp.ne.s32.totalorder %s8527_s8, %s7102_s26  ;;  %p7106_p5 = scmp.lt.u32.totalorder %s7102_s26, %s8527_s8 }
  0x78   :  { %p7108_p6 = pnand %p7106_p5, %p7103_p4 }
  0x7a   :  { %7111 = shalt.err (!%p7108_p6)
}
  0x7b   :  { %s7112_s0 = scalar_lea.vmem %s153_s6, 1024  ;;  %p7117_p8 = scmp.lt.s32.totalorder %s153_s6, %s153_s6 }
  0x7c   :  { %p7113_p7 = scmp.ne.s32.totalorder %s153_s6, %s7112_s0  ;;  %p7118_p9 = scmp.lt.s32.totalorder %s7112_s0, %s7112_s0 }
  0x7e   :  { %p7119_p10 = por %p7118_p9, %p7117_p8 }
  0x80   :  { %p7120_p11 = pnand %p7119_p10, %p7113_p7 }
  0x82   :  { %7123 = shalt.err (!%p7120_p11)
}
  0x83   :  { %158 = dma.hbm_to_vmem [thread:$0]  %s8527_s8, 1024, %s153_s6, [#allocation18], %s8504_s5, %s8504_s5, %s8506_s10  }
  0x84   :  { %s7345_s30 = smov [#allocation20]   ;;  %s7346_s25 = smov [#allocation2]  }
  0x85   :  { %s176_s4 = sshll.u32 %s7345_s30, 4  ;;  %s44_s7 = sshll.u32 %s7346_s25, 4  ;;  %s177_s4 = int_to_ptr.vmem [resolvable:$true] %s176_s4  ;;  %s45_s7 = int_to_ptr.vmem [resolvable:$true] %s44_s7 }
  0x86   :  { %s7124_s26 = scalar_lea.hbm %s8476_s11, 2048 }
  0x87   :  { %p7125_p12 = scmp.ne.s32.totalorder %s8476_s11, %s7124_s26  ;;  %p7128_p13 = scmp.lt.u32.totalorder %s7124_s26, %s8476_s11 }
  0x89   :  { %p7130_p0 = pnand %p7128_p13, %p7125_p12 }
  0x8b   :  { %7133 = shalt.err (!%p7130_p0)
}
  0x8c   :  { %s7134_s6 = scalar_lea.vmem %s177_s4, 2048  ;;  %p7139_p2 = scmp.lt.s32.totalorder %s177_s4, %s177_s4 }
  0x8d   :  { %p7135_p1 = scmp.ne.s32.totalorder %s177_s4, %s7134_s6  ;;  %p7140_p3 = scmp.lt.s32.totalorder %s7134_s6, %s7134_s6 }
  0x8f   :  { %p7141_p4 = por %p7140_p3, %p7139_p2 }
  0x91   :  { %p7142_p5 = pnand %p7141_p4, %p7135_p1 }
  0x93   :  { %7145 = shalt.err (!%p7142_p5)
}
  0x94   :  { %s8508_s8 = smov 128   ;;  %s7348_s0 = smov 8  }
  0x95   :  { %182 = dma.hbm_to_vmem [thread:$0]  %s8476_s11, 2048, %s177_s4, [#allocation21], %s8508_s8, %s8508_s8, %s7348_s0  }
  0x96   :  { %s8528_s9 = sld [smem:[#allocation32_spill]] }
  0x9c   :  { %s7146_s2 = scalar_lea.hbm %s8528_s9, 512 }
  0x9d   :  { %p7147_p6 = scmp.ne.s32.totalorder %s8528_s9, %s7146_s2  ;;  %p7150_p7 = scmp.lt.u32.totalorder %s7146_s2, %s8528_s9 }
  0x9f   :  { %p7152_p8 = pnand %p7150_p7, %p7147_p6 }
  0xa1   :  { %7155 = shalt.err (!%p7152_p8)
}
  0xa2   :  { %s7156_s29 = scalar_lea.vmem %s45_s7, 512  ;;  %p7161_p10 = scmp.lt.s32.totalorder %s45_s7, %s45_s7 }
  0xa3   :  { %p7157_p9 = scmp.ne.s32.totalorder %s45_s7, %s7156_s29  ;;  %p7162_p11 = scmp.lt.s32.totalorder %s7156_s29, %s7156_s29 }
  0xa5   :  { %p7163_p12 = por %p7162_p11, %p7161_p10 }
  0xa7   :  { %p7164_p13 = pnand %p7163_p12, %p7157_p9 }
  0xa9   :  { %7167 = shalt.err (!%p7164_p13)
}
  0xaa   :  { %50 = dma.hbm_to_vmem [thread:$0]  %s8528_s9, 512, %s45_s7, [#allocation3], %s8508_s8, %s8508_s8, %s7348_s0  }
  0xab   :  { %s7349_s6 = smov [#allocation7]   ;;  %s7350_s1 = smov [#allocation10]  }
  0xac   :  { %s68_s3 = sshll.u32 %s7349_s6, 4  ;;  %s92_s30 = sshll.u32 %s7350_s1, 4  ;;  %s69_s3 = int_to_ptr.vmem [resolvable:$true] %s68_s3  ;;  %s93_s30 = int_to_ptr.vmem [resolvable:$true] %s92_s30 }
  0xad   :  { %s8529_s26 = sld [smem:[#allocation34_spill]] }
  0xb3   :  { %s7168_s24 = scalar_lea.hbm %s8529_s26, 256 }
  0xb4   :  { %p7169_p0 = scmp.ne.s32.totalorder %s8529_s26, %s7168_s24  ;;  %p7172_p1 = scmp.lt.u32.totalorder %s7168_s24, %s8529_s26 }
  0xb6   :  { %p7174_p2 = pnand %p7172_p1, %p7169_p0 }
  0xb8   :  { %7177 = shalt.err (!%p7174_p2)
}
  0xb9   :  { %s7178_s7 = scalar_lea.vmem %s69_s3, 256  ;;  %p7183_p4 = scmp.lt.s32.totalorder %s69_s3, %s69_s3 }
  0xba   :  { %p7179_p3 = scmp.ne.s32.totalorder %s69_s3, %s7178_s7  ;;  %p7184_p5 = scmp.lt.s32.totalorder %s7178_s7, %s7178_s7 }
  0xbc   :  { %p7185_p6 = por %p7184_p5, %p7183_p4 }
  0xbe   :  { %p7186_p7 = pnand %p7185_p6, %p7179_p3 }
  0xc0   :  { %7189 = shalt.err (!%p7186_p7)
}
  0xc1   :  { %s8530_s9 = smov 64   ;;  %s8531_s1 = sld [smem:[#allocation36_spill]] }
  0xc2   :  { %74 = dma.hbm_to_vmem [thread:$0]  %s8529_s26, 256, %s69_s3, [#allocation6], %s8530_s9, %s8530_s9, %s8506_s10  }
  0xc7   :  { %s7190_s25 = scalar_lea.hbm %s8531_s1, 2048 }
  0xc8   :  { %p7191_p8 = scmp.ne.s32.totalorder %s8531_s1, %s7190_s25  ;;  %p7194_p9 = scmp.lt.u32.totalorder %s7190_s25, %s8531_s1 }
  0xca   :  { %p7196_p10 = pnand %p7194_p9, %p7191_p8 }
  0xcc   :  { %7199 = shalt.err (!%p7196_p10)
}
  0xcd   :  { %s7200_s29 = scalar_lea.vmem %s93_s30, 2048  ;;  %p7205_p12 = scmp.lt.s32.totalorder %s93_s30, %s93_s30 }
  0xce   :  { %p7201_p11 = scmp.ne.s32.totalorder %s93_s30, %s7200_s29  ;;  %p7206_p13 = scmp.lt.s32.totalorder %s7200_s29, %s7200_s29 }
  0xd0   :  { %p7207_p0 = por %p7206_p13, %p7205_p12 }
  0xd2   :  { %p7208_p1 = pnand %p7207_p0, %p7201_p11 }
  0xd4   :  { %7211 = shalt.err (!%p7208_p1)
}
  0xd5   :  { %98 = dma.hbm_to_vmem [thread:$0]  %s8531_s1, 2048, %s93_s30, [#allocation9], %s8508_s8, %s8508_s8, %s7348_s0  }
  0xd6   :  { %s7351_s7 = smov [#allocation13]   ;;  %s7352_s4 = smov [#allocation16]  }
  0xd7   :  { %s116_s11 = sshll.u32 %s7351_s7, 4  ;;  %s140_s6 = sshll.u32 %s7352_s4, 4  ;;  %s117_s11 = int_to_ptr.vmem [resolvable:$true] %s116_s11  ;;  %s141_s6 = int_to_ptr.vmem [resolvable:$true] %s140_s6 }
  0xd8   :  { %s8532_s2 = sld [smem:[#allocation38_spill]] }
  0xde   :  { %s7212_s24 = scalar_lea.hbm %s8532_s2, 1024 }
  0xdf   :  { %p7213_p2 = scmp.ne.s32.totalorder %s8532_s2, %s7212_s24  ;;  %p7216_p3 = scmp.lt.u32.totalorder %s7212_s24, %s8532_s2 }
  0xe1   :  { %p7218_p4 = pnand %p7216_p3, %p7213_p2 }
  0xe3   :  { %7221 = shalt.err (!%p7218_p4)
}
  0xe4   :  { %s7222_s30 = scalar_lea.vmem %s117_s11, 1024  ;;  %p7227_p6 = scmp.lt.s32.totalorder %s117_s11, %s117_s11 }
  0xe5   :  { %p7223_p5 = scmp.ne.s32.totalorder %s117_s11, %s7222_s30  ;;  %p7228_p7 = scmp.lt.s32.totalorder %s7222_s30, %s7222_s30 }
  0xe7   :  { %p7229_p8 = por %p7228_p7, %p7227_p6 }
  0xe9   :  { %p7230_p9 = pnand %p7229_p8, %p7223_p5 }
  0xeb   :  { %7233 = shalt.err (!%p7230_p9)
}
  0xec   :  { %s8533_s1 = smov 4   ;;  %s8534_s4 = sld [smem:[#allocation40_spill]] }
  0xed   :  { %122 = dma.hbm_to_vmem [thread:$0]  %s8532_s2, 1024, %s117_s11, [#allocation12], %s8530_s9, %s8530_s9, %s8533_s1  }
  0xf2   :  { %s7234_s5 = scalar_lea.hbm %s8534_s4, 1024 }
  0xf3   :  { %p7235_p10 = scmp.ne.s32.totalorder %s8534_s4, %s7234_s5  ;;  %p7238_p11 = scmp.lt.u32.totalorder %s7234_s5, %s8534_s4 }
  0xf5   :  { %p7240_p12 = pnand %p7238_p11, %p7235_p10 }
  0xf7   :  { %7243 = shalt.err (!%p7240_p12)
}
  0xf8   :  { %s7244_s29 = scalar_lea.vmem %s141_s6, 1024  ;;  %p7249_p0 = scmp.lt.s32.totalorder %s141_s6, %s141_s6 }
  0xf9   :  { %p7245_p13 = scmp.ne.s32.totalorder %s141_s6, %s7244_s29  ;;  %p7250_p1 = scmp.lt.s32.totalorder %s7244_s29, %s7244_s29 }
  0xfb   :  { %p7251_p2 = por %p7250_p1, %p7249_p0 }
  0xfd   :  { %p7252_p3 = pnand %p7251_p2, %p7245_p13 }
  0xff   :  { %7255 = shalt.err (!%p7252_p3)
}
 0x100   :  { %146 = dma.hbm_to_vmem [thread:$0]  %s8534_s4, 1024, %s141_s6, [#allocation15], %s8530_s9, %s8530_s9, %s8533_s1  }
 0x101   :  { %s7353_s30 = smov [#allocation19]   ;;  %s7354_s26 = smov [#allocation22]  }
 0x102   :  { %s164_s3 = sshll.u32 %s7353_s30, 4  ;;  %s188_s7 = sshll.u32 %s7354_s26, 4  ;;  %s165_s3 = int_to_ptr.vmem [resolvable:$true] %s164_s3  ;;  %s189_s7 = int_to_ptr.vmem [resolvable:$true] %s188_s7 }
 0x103   :  { %s8535_s25 = sld [smem:[#allocation42_spill]] }
 0x109   :  { %s7256_s24 = scalar_lea.hbm %s8535_s25, 1024 }
 0x10a   :  { %p7257_p4 = scmp.ne.s32.totalorder %s8535_s25, %s7256_s24  ;;  %p7260_p5 = scmp.lt.u32.totalorder %s7256_s24, %s8535_s25 }
 0x10c   :  { %p7262_p6 = pnand %p7260_p5, %p7257_p4 }
 0x10e   :  { %7265 = shalt.err (!%p7262_p6)
}
 0x10f   :  { %s7266_s6 = scalar_lea.vmem %s165_s3, 1024  ;;  %p7271_p8 = scmp.lt.s32.totalorder %s165_s3, %s165_s3 }
 0x110   :  { %p7267_p7 = scmp.ne.s32.totalorder %s165_s3, %s7266_s6  ;;  %p7272_p9 = scmp.lt.s32.totalorder %s7266_s6, %s7266_s6 }
 0x112   :  { %p7273_p10 = por %p7272_p9, %p7271_p8 }
 0x114   :  { %p7274_p11 = pnand %p7273_p10, %p7267_p7 }
 0x116   :  { %7277 = shalt.err (!%p7274_p11)
}
 0x117   :  { %170 = dma.hbm_to_vmem [thread:$0]  %s8535_s25, 1024, %s165_s3, [#allocation18], %s8530_s9, %s8530_s9, %s8533_s1  }
 0x118   :  { %s7278_s30 = scalar_lea.hbm %s8477_s12, 2048 }
 0x119   :  { %p7279_p12 = scmp.ne.s32.totalorder %s8477_s12, %s7278_s30  ;;  %p7282_p13 = scmp.lt.u32.totalorder %s7278_s30, %s8477_s12 }
 0x11b   :  { %p7284_p0 = pnand %p7282_p13, %p7279_p12 }
 0x11d   :  { %7287 = shalt.err (!%p7284_p0)
}
 0x11e   :  { %s7288_s27 = scalar_lea.vmem %s189_s7, 2048  ;;  %p7293_p2 = scmp.lt.s32.totalorder %s189_s7, %s189_s7 }
 0x11f   :  { %p7289_p1 = scmp.ne.s32.totalorder %s189_s7, %s7288_s27  ;;  %p7294_p3 = scmp.lt.s32.totalorder %s7288_s27, %s7288_s27 }
 0x121   :  { %p7295_p4 = por %p7294_p3, %p7293_p2 }
 0x123   :  { %p7296_p5 = pnand %p7295_p4, %p7289_p1 }
 0x125   :  { %7299 = shalt.err (!%p7296_p5)
}
 0x126   :  { %194 = dma.hbm_to_vmem [thread:$0]  %s8477_s12, 2048, %s189_s7, [#allocation21], %s8530_s9, %s8530_s9, %s8533_s1  }
 0x127   :  { %7322 = dma.done.wait [#allocation3], 512  }
 0x128   :  { %7323 = vsyncadd [#allocation3], 4294966784 }
 0x129   :  { %7324 = dma.done.wait [#allocation6], 768  }
 0x12a   :  { %7325 = vsyncadd [#allocation6], 4294966528 }
 0x12b   :  { %7326 = dma.done.wait [#allocation9], 2560  }
 0x12c   :  { %7327 = vsyncadd [#allocation9], 4294964736 }
 0x12d   :  { %7328 = dma.done.wait [#allocation12], 2048  }
 0x12e   :  { %7329 = vsyncadd [#allocation12], 4294965248 }
 0x12f   :  { %7330 = dma.done.wait [#allocation15], 2048  }
 0x130   :  { %7331 = vsyncadd [#allocation15], 4294965248 }
 0x131   :  { %7332 = dma.done.wait [#allocation18], 2048  }
 0x132   :  { %7333 = vsyncadd [#allocation18], 4294965248 }
 0x133   :  { %7334 = dma.done.wait [#allocation21], 4096  }
 0x134   :  { %7335 = vsyncadd [#allocation21], 4294963200  ;;  %v7355_v0 = vmov 0   ;;  %v6746_v1 = vld [vmem:[#allocation10 + $0x4] ss:$8 sps:$4 sm:$0xff]   ;;  %v6772_v14 = vld [vmem:[#allocation11 + $0x10] sm:$0xff]   ;;  %v297_v44 = vlaneseq }
 0x135   :  { %419 = vmatprep.mubr.bf16.mxu0 %v7355_v0  ;;  %v6748_v2 = vld [vmem:[#allocation10] ss:$8 sps:$4 sm:$0xff]   ;;  %387 = vmatprep.subr.bf16.mxu0 %v6746_v1  ;;  %v6749_v3 = vld [vmem:[#allocation10 + $0x14] ss:$8 sps:$4 sm:$0xff]   ;;  %v6751_v4 = vld [vmem:[#allocation10 + $0x10] ss:$8 sps:$4 sm:$0xff]  }
 0x136   :  { %388 = vmatpush1.bf16.msra.mxu0 %v6748_v2  ;;  %v6752_v5 = vld [vmem:[#allocation10 + $0x24] ss:$8 sps:$4 sm:$0xff]   ;;  %v6754_v6 = vld [vmem:[#allocation10 + $0x20] ss:$8 sps:$4 sm:$0xff]   ;;  %v6755_v7 = vld [vmem:[#allocation10 + $0x34] ss:$8 sps:$4 sm:$0xff]  }
 0x137   :  { %389 = vmatprep.subr.bf16.mxu0 %v6749_v3  ;;  %v6757_v8 = vld [vmem:[#allocation10 + $0x30] ss:$8 sps:$4 sm:$0xff]   ;;  %v6758_v9 = vld [vmem:[#allocation10 + $0x44] ss:$8 sps:$4 sm:$0xff]   ;;  %v6760_v12 = vld [vmem:[#allocation10 + $0x40] ss:$8 sps:$4 sm:$0xff]  }
 0x138   :  { %v6770_v10 = vld [vmem:[#allocation11] sm:$0xff]   ;;  %v6771_v11 = vld [vmem:[#allocation11 + $0x8] sm:$0xff]   ;;  %v6761_v13 = vld [vmem:[#allocation10 + $0x54] ss:$8 sps:$4 sm:$0xff]   ;;  %v7356_v43 = vmov 0.0   ;;  %vm7357_vm0 = vmmov 0  }
 0x139   :  { %6163 = vmatprep.subr.bf16.mxu1 %v6770_v10  ;;  %v6763_v15 = vld [vmem:[#allocation10 + $0x50] ss:$8 sps:$4 sm:$0xff]   ;;  %v6764_v17 = vld [vmem:[#allocation10 + $0x64] ss:$8 sps:$4 sm:$0xff]   ;;  %v6766_v19 = vld [vmem:[#allocation10 + $0x60] ss:$8 sps:$4 sm:$0xff]  }
 0x13a   :  { %390 = vmatpush1.bf16.msra.mxu0 %v6751_v4  ;;  %6164 = vmatpush3.bf16.msra.mxu1 %v6770_v10  ;;  %v7692_v16 = vld [vmem:[#allocation7] sm:$0xff]   ;;  %v6773_v18 = vld [vmem:[#allocation11 + $0x18] sm:$0xff]   ;;  %v6774_v25 = vld [vmem:[#allocation11 + $0x20] sm:$0xff]   ;;  %v7715_v45 = vshrl.u32 %v297_v44, 7  ;;  %vm628_vm1 = vcmask 261120   ;;  %vm865_vm2 = vcmask 1043456  }
 0x13b   :  { %391 = vmatprep.subr.bf16.mxu0 %v6752_v5  ;;  %6165 = vmatprep.subr.bf16.mxu1 %v6771_v11  ;;  %v261_v20 = vld [vmem:[#allocation2] sm:$0xff]  ;;  %v262_v21 = vld [vmem:[#allocation2 + $0x8] sm:$0xff]  ;;  %v5924_v23 = vunpack.c.l.bf16 %v7692_v16  ;;  %v5925_v24 = vunpack.c.h.bf16 %v7692_v16  ;;  %v6775_v30 = vld [vmem:[#allocation11 + $0x28] sm:$0xff]   ;;  %vm813_vm3 = vcmask 64512   ;;  %s7359_s28 = smov 32   ;;  %vm3415_vm4 = vcmask 130048  }
 0x13c   :  { %v6767_v22 = vld [vmem:[#allocation10 + $0x74] ss:$8 sps:$4 sm:$0xff]   ;;  %v6769_v26 = vld [vmem:[#allocation10 + $0x70] ss:$8 sps:$4 sm:$0xff]   ;;  %v263_v31 = vld [vmem:[#allocation2 + $0x10] sm:$0xff]  ;;  %v5912_v41 = vpack.c.bf16 %v262_v21, %v261_v20  ;;  %v303_v46 = vsub.s32 1, %v7715_v45 }
 0x13d   :  { %v7696_v27 = vld [vmem:[#allocation7 + $0x8] sm:$0xff]   ;;  %v273_v28 = vadd.f32 %v5924_v23, %v261_v20  ;;  %v274_v29 = vadd.f32 %v5925_v24, %v262_v21  ;;  %v264_v32 = vld [vmem:[#allocation2 + $0x18] sm:$0xff]  ;;  %v6776_v36 = vld [vmem:[#allocation11 + $0x30] sm:$0xff]   ;;  %v299_v49 = vsub.s32 0, %v7715_v45  ;;  %s8536_s24 = sld [smem:[#allocation43_spill]]  ;;  %s8537_s25 = sld [smem:[#allocation44_spill]] }
 0x13e   :  { %392 = vmatpush1.bf16.msra.mxu0 %v6754_v6  ;;  %6166 = vmatpush3.bf16.msra.mxu1 %v6771_v11  ;;  %v5928_v34 = vunpack.c.l.bf16 %v7696_v27  ;;  %v5929_v35 = vunpack.c.h.bf16 %v7696_v27  ;;  %v6777_v39 = vld [vmem:[#allocation11 + $0x38] sm:$0xff]   ;;  %v5913_v42 = vpack.c.bf16 %v264_v32, %v263_v31  ;;  %v295_v47 = vld [vmem:[%s8478_s13] sm:$0x3]  ;;  %s7360_s12 = smov [#allocation23]  }
 0x13f   :  { %393 = vmatprep.subr.bf16.mxu0 %v6755_v7  ;;  %6167 = vmatprep.subr.bf16.mxu1 %v6772_v14  ;;  %v277_v33 = vpack.c.bf16 %v274_v29, %v273_v28  ;;  %v304_v48 = vrot.slane %v295_v47, %v303_v46  ;;  %v300_v55 = vrot.slane %v295_v47, %v299_v49  ;;  %v6808_v16 = vld [vmem:[#allocation17 + $0x10] sm:$0xff]   ;;  %s5673_s1 = sshll.u32 %s7360_s12, 4  ;;  %s5674_s1 = int_to_ptr.vmem [resolvable:$true] %s5673_s1 }
 0x140   :  { %v275_v37 = vadd.f32 %v5928_v34, %v263_v31  ;;  %v276_v38 = vadd.f32 %v5929_v35, %v264_v32  ;;  %6179 = vmatprep.mubr.bf16.mxu1 %v5912_v41  ;;  %v6812_v27 = vld [vmem:[#allocation17 + $0x30] sm:$0xff]   ;;  %s7300_s13 = scalar_lea.vmem %s5674_s1, 512  ;;  %p7305_p7 = scmp.lt.s32.totalorder %s5674_s1, %s5674_s1 }
 0x141   :  { %p7301_p6 = scmp.ne.s32.totalorder %s5674_s1, %s7300_s13  ;;  %p7306_p8 = scmp.lt.s32.totalorder %s7300_s13, %s7300_s13 }
 0x142   :  { %394 = vmatpush1.bf16.msra.mxu0 %v6757_v8  ;;  %6168 = vmatpush3.bf16.msra.mxu1 %v6772_v14  ;;  %v278_v40 = vpack.c.bf16 %v276_v38, %v275_v37 }
 0x143   :  { %395 = vmatprep.subr.bf16.mxu0 %v6758_v9  ;;  %6169 = vmatprep.subr.bf16.mxu1 %v6773_v18  ;;  %p7307_p9 = por %p7306_p8, %p7305_p7 }
 0x145   :  { %p7308_p10 = pnand %p7307_p9, %p7301_p6 }
 0x146   :  { %396 = vmatpush1.bf16.msra.mxu0 %v6760_v12  ;;  %6170 = vmatpush3.bf16.msra.mxu1 %v6773_v18 }
 0x147   :  { %397 = vmatprep.subr.bf16.mxu0 %v6761_v13  ;;  %6171 = vmatprep.subr.bf16.mxu1 %v6774_v25 }
 0x14a   :  { %398 = vmatpush1.bf16.msra.mxu0 %v6763_v15  ;;  %6172 = vmatpush3.bf16.msra.mxu1 %v6774_v25 }
 0x14b   :  { %399 = vmatprep.subr.bf16.mxu0 %v6764_v17  ;;  %6173 = vmatprep.subr.bf16.mxu1 %v6775_v30  ;;  %v5715_v17 = vld [vmem:[%s8479_s14] ss:$0 sm:$0xff]  ;;  %s7358_s14 = smov 96  }
 0x14e   :  { %400 = vmatpush1.bf16.msra.mxu0 %v6766_v19  ;;  %6174 = vmatpush3.bf16.msra.mxu1 %v6775_v30 }
 0x14f   :  { %401 = vmatprep.subr.bf16.mxu0 %v6767_v22  ;;  %6175 = vmatprep.subr.bf16.mxu1 %v6776_v36 }
 0x152   :  { %402 = vmatpush1.bf16.msra.mxu0 %v6769_v26  ;;  %6176 = vmatpush3.bf16.msra.mxu1 %v6776_v36 }
 0x153   :  { %6177 = vmatprep.subr.bf16.mxu1 %v6777_v39  ;;  %6189 = vmatprep.subr.bf16.mxu0 %v7356_v43 }
 0x155   :  { %420 = vmatmul.mubr.bf16.vlgmr.msra.gmra.mrb[0].mxu0 %v277_v33 }
 0x156   :  { %429 = vmatprep.mubr.bf16.mxu0 %v7355_v0  ;;  %6178 = vmatpush3.bf16.msra.mxu1 %v6777_v39 }
 0x157   :  { %6183 = vmatprep.subr.bf16.mxu1 %v7356_v43 }
 0x159   :  { %6180 = vmatmul.mubr.bf16.vlgmr.msra.gmra.mrb[0].mxu1 %v5913_v42 }
 0x15a   :  { %6185 = vmatprep.mubr.msk.bf16.mxu1 %vm7357_vm0, %v7356_v43 }
 0x15d   :  { %430 = vmatmul.mubr.bf16.gmra.mrb[4].mxu0 %v278_v40 }
 0x15e   :  { %6191 = vmatprep.mubr.msk.bf16.mxu0 %vm7357_vm0, %v7356_v43 }
 0x228   :  { %v421_v50 = vpop.f32.mrb[0].mxu0 }
 0x229   :  { %v423_v51 = vpop.f32.mrb[1].mxu0  ;;  %v422_v60 = vadd.f32 %v421_v50, %v300_v55 }
 0x22a   :  { %v424_v52 = vadd.f32 %v423_v51, %v304_v48  ;;  %v425_v53 = vpop.f32.mrb[2].mxu0 }
 0x22b   :  { %v427_v54 = vpop.f32.mrb[3].mxu0  ;;  %v426_v1 = vadd.f32 %v425_v53, %v300_v55  ;;  %v7736_v5 = vpack.c.bf16 %v422_v60, %v422_v60 }
 0x22c   :  { %v7726_v56 = vpack.c.bf16 %v424_v52, %v424_v52  ;;  %v428_v57 = vadd.f32 %v427_v54, %v304_v48  ;;  %v6181_v18 = vpop.f32.mrb[0].mxu1 }
 0x22d   :  { %v7740_v8 = vpack.c.bf16 %v426_v1, %v426_v1  ;;  %v7773_v19 = vadd.f32 %v6181_v18, %v5715_v17  ;;  %v585_v20 = vpop.f32.mrb[1].mxu1 }
 0x22e   :  { %v7728_v58 = vpack.c.bf16 %v428_v57, %v428_v57  ;;  %v633_v59 = vsel %vm628_vm1, %v7726_v56, 0  ;;  %v586_v21 = vadd.f32 %v5715_v17, %v585_v20  ;;  %v6182_v22 = vpop.f32.mrb[2].mxu1 }
 0x22f   :  { %6184 = vmatpush3.bf16.xpose.msra.mxu1 %v633_v59  ;;  %v7775_v25 = vadd.f32 %v6182_v22, %v5715_v17  ;;  %v588_v26 = vpop.f32.mrb[3].mxu1 }
 0x230   :  { %v431_v61 = vpop.f32.mrb[4].mxu0  ;;  %v679_v62 = vsel %vm628_vm1, %v7728_v58, 0  ;;  %6195 = vmatprep.subr.bf16.mxu1 %v7356_v43  ;;  %v7777_v28 = vpack.c.bf16 %v586_v21, %v586_v21  ;;  %v589_v29 = vadd.f32 %v5715_v17, %v588_v26 }
 0x231   :  { %v433_v63 = vpop.f32.mrb[5].mxu0  ;;  %6190 = vmatpush3.bf16.xpose.msra.mxu0 %v679_v62  ;;  %v432_v9 = vadd.f32 %v431_v61, %v300_v55 }
 0x232   :  { %v434_v2 = vadd.f32 %v433_v63, %v304_v48  ;;  %v435_v3 = vpop.f32.mrb[6].mxu0  ;;  %6201 = vmatprep.subr.bf16.mxu0 %v7356_v43  ;;  %v7779_v30 = vpack.c.bf16 %v589_v29, %v589_v29  ;;  %v867_v31 = vsel %vm865_vm2, %v7777_v28, 0 }
 0x233   :  { %v437_v4 = vpop.f32.mrb[7].mxu0  ;;  %v436_v12 = vadd.f32 %v435_v3, %v300_v55  ;;  %v7757_v14 = vpack.c.bf16 %v432_v9, %v432_v9 }
 0x234   :  { %v7738_v6 = vpack.c.bf16 %v434_v2, %v434_v2  ;;  %v438_v7 = vadd.f32 %v437_v4, %v304_v48  ;;  %v913_v32 = vsel %vm865_vm2, %v7779_v30, 0 }
 0x235   :  { %v7760_v15 = vpack.c.bf16 %v436_v12, %v436_v12 }
 0x236   :  { %v7742_v10 = vpack.c.bf16 %v438_v7, %v438_v7  ;;  %6186 = vmatmul.mubr.msk.bf16.vlgmr.msra.gmra.mrb[4].mxu1 %vm628_vm1, %v7736_v5  ;;  %v725_v11 = vsel %vm628_vm1, %v7738_v6, 0 }
 0x237   :  { %6196 = vmatpush3.bf16.xpose.msra.mxu1 %v725_v11  ;;  %6197 = vmatprep.mubr.msk.bf16.mxu1 %vm7357_vm0, %v7356_v43 }
 0x238   :  { %6192 = vmatmul.mubr.msk.bf16.vlgmr.msra.gmra.mrb[8].mxu0 %vm628_vm1, %v7740_v8  ;;  %v771_v13 = vsel %vm628_vm1, %v7742_v10, 0  ;;  %6207 = vmatprep.subr.bf16.mxu1 %v7356_v43 }
 0x239   :  { %6202 = vmatpush3.bf16.xpose.msra.mxu0 %v771_v13  ;;  %6203 = vmatprep.mubr.msk.bf16.mxu0 %vm7357_vm0, %v7356_v43 }
 0x23a   :  { %6213 = vmatprep.subr.bf16.mxu0 %v7356_v43 }
 0x23e   :  { %6198 = vmatmul.mubr.msk.bf16.vlgmr.msra.gmra.mrb[8].mxu1 %vm628_vm1, %v7757_v14 }
 0x23f   :  { %6209 = vmatprep.mubr.msk.bf16.mxu1 %vm7357_vm0, %v7356_v43  ;;  %6208 = vmatpush3.bf16.msra.mxu1 %v867_v31 }
 0x240   :  { %6204 = vmatmul.mubr.msk.bf16.vlgmr.msra.gmra.mrb[12].mxu0 %vm628_vm1, %v7760_v15  ;;  %6219 = vmatprep.subr.bf16.mxu1 %v7356_v43 }
 0x241   :  { %6215 = vmatprep.mubr.msk.bf16.mxu0 %vm7357_vm0, %v7356_v43  ;;  %6214 = vmatpush3.bf16.msra.mxu0 %v913_v32 }
 0x242   :  { %6225 = vmatprep.subr.bf16.mxu0 %v7356_v43 }
 0x309   :  { %v669_v33 = vpop.f32.mrb[4].mxu1 }
 0x30a   :  { %v6187_v36 = vpop.f32.mrb[5].mxu1  ;;  %v814_v37 = vsel %vm813_vm3, %v669_v33, -inf }
 0x30b   :  { %v715_v38 = vpop.f32.mrb[8].mxu0  ;;  %815 = vmax.xlane.f32.xlu0 %v814_v37  ;;  %v672_v39 = vpop.f32.mrb[6].mxu1 }
 0x30c   :  { %v6188_v40 = vpop.f32.mrb[7].mxu1  ;;  %v6193_v41 = vpop.f32.mrb[9].mxu0  ;;  %v817_v47 = vsel %vm813_vm3, %v715_v38, -inf }
 0x30d   :  { %v718_v42 = vpop.f32.mrb[10].mxu0 }
 0x30e   :  { %v6194_v44 = vpop.f32.mrb[11].mxu0  ;;  %v7817_v42 = vpack.c.bf16 %v7775_v25, %v7775_v25 }
 0x30f   :  { %818 = vmax.xlane.f32.xlu0 %v817_v47 }
 0x310   :  { %v1005_v25 = vsel %vm865_vm2, %v7817_v42, 0 }
 0x311   :  { %v761_v48 = vpop.f32.mrb[8].mxu1 }
 0x312   :  { %v820_v50 = vsel %vm813_vm3, %v761_v48, -inf  ;;  %v6199_v51 = vpop.f32.mrb[9].mxu1 }
 0x313   :  { %821 = vmax.xlane.f32.xlu1 %v820_v50  ;;  %v807_v52 = vpop.f32.mrb[12].mxu0  ;;  %v764_v53 = vpop.f32.mrb[10].mxu1 }
 0x314   :  { %v823_v54 = vsel %vm813_vm3, %v807_v52, -inf  ;;  %v6205_v55 = vpop.f32.mrb[13].mxu0  ;;  %v6200_v57 = vpop.f32.mrb[11].mxu1 }
 0x315   :  { %v810_v59 = vpop.f32.mrb[14].mxu0 }
 0x316   :  { %v6206_v60 = vpop.f32.mrb[15].mxu0 }
 0x317   :  { %824 = vmax.xlane.f32.xlu1 %v823_v54 }
 0x398   :  { %v816_v61 = vpop.xlane.xlu0 %815 }
 0x399   :  { %v826_v62 = vsub.f32 %v669_v33, %v816_v61 }
 0x39b   :  { %v830_v63 = vmul.f32 1.442695, %v826_v62 }
 0x39c   :  { %v819_v1 = vpop.xlane.xlu0 %818 }
 0x39d   :  { %6866 = vpow2.f32 %v830_v63  ;;  %v827_v2 = vsub.f32 %v715_v38, %v819_v1  ;;  %v7813_v38 = vpack.c.bf16 %v7773_v19, %v7773_v19 }
 0x39f   :  { %v832_v3 = vmul.f32 1.442695, %v827_v2  ;;  %v959_v44 = vsel %vm865_vm2, %v7813_v38, 0 }
 0x3a0   :  { %v822_v4 = vpop.xlane.xlu1 %821 }
 0x3a1   :  { %6868 = vpow2.f32 %v832_v3  ;;  %v828_v7 = vsub.f32 %v761_v48, %v822_v4 }
 0x3a3   :  { %v834_v9 = vmul.f32 1.442695, %v828_v7 }
 0x3a4   :  { %v825_v21 = vpop.xlane.xlu1 %824 }
 0x3a5   :  { %6870 = vpow2.f32 %v834_v9  ;;  %v829_v22 = vsub.f32 %v807_v52, %v825_v21 }
 0x3a7   :  { %v6867_v11 = vpop.eup %6866  ;;  %v836_v26 = vmul.f32 1.442695, %v829_v22 }
 0x3a8   :  { %v838_v12 = vsel %vm813_vm3, %v6867_v11, 0.0 }
 0x3a9   :  { %839 = vadd.xlane.f32.xlu0 %v838_v12  ;;  %6872 = vpow2.f32 %v836_v26 }
 0x3ab   :  { %v6869_v13 = vpop.eup %6868 }
 0x3ac   :  { %v841_v17 = vsel %vm813_vm3, %v6869_v13, 0.0 }
 0x3ad   :  { %842 = vadd.xlane.f32.xlu1 %v841_v17 }
 0x3af   :  { %v6871_v18 = vpop.eup %6870 }
 0x3b0   :  { %v844_v20 = vsel %vm813_vm3, %v6871_v18, 0.0 }
 0x3b1   :  { %845 = vadd.xlane.f32.xlu0 %v844_v20 }
 0x3b3   :  { %v6873_v29 = vpop.eup %6872 }
 0x3b4   :  { %v847_v31 = vsel %vm813_vm3, %v6873_v29, 0.0 }
 0x3be   :  { %1101 = vrot.lane.b32.xlu1 %v7728_v58, %s7358_s14 }
 0x3c2   :  { %1049 = vrot.lane.b32.xlu1 %v7736_v5, %s7358_s14 }
 0x3c7   :  { %1051 = vrot.lane.b32.xlu0 %v7726_v56, %s7358_s14 }
 0x3cb   :  { %1151 = vrot.lane.b32.xlu0 %v7738_v6, %s7358_s14 }
 0x3cf   :  { %1149 = vrot.lane.b32.xlu0 %v7757_v14, %s7358_s14 }
 0x3e6   :  { %848 = vadd.xlane.f32.xlu1 %v847_v31 }
 0x3f7   :  { %1099 = vrot.lane.b32.xlu1 %v7740_v8, %s7358_s14 }
 0x3fb   :  { %1201 = vrot.lane.b32.xlu1 %v7742_v10, %s7358_s14 }
 0x3ff   :  { %1199 = vrot.lane.b32.xlu1 %v7760_v15, %s7358_s14 }
 0x436   :  { %v840_v32 = vpop.xlane.xlu0 %839 }
 0x437   :  { %6874 = vrcp.f32 %v840_v32 }
 0x43a   :  { %v843_v33 = vpop.xlane.xlu1 %842 }
 0x43b   :  { %6876 = vrcp.f32 %v843_v33 }
 0x43e   :  { %v846_v36 = vpop.xlane.xlu0 %845  ;;  %v1102_v54 = vpop.permute.xlu1 %1101 }
 0x43f   :  { %6878 = vrcp.f32 %v846_v36  ;;  %v1107_v3 = vsel %vm628_vm1, %v1102_v54, 0 }
 0x441   :  { %v6875_v37 = vpop.eup %6874 }
 0x442   :  { %v854_v39 = vmul.f32 %v6875_v37, %v6867_v11  ;;  %v1052_v51 = vpop.permute.xlu0 %1051  ;;  %v1050_v57 = vpop.permute.xlu1 %1049 }
 0x443   :  { %v1057_v53 = vsel %vm628_vm1, %v1052_v51, 0 }
 0x444   :  { %v858_v40 = vpack.c.bf16 %v854_v39, %v854_v39 }
 0x445   :  { %v6877_v41 = vpop.eup %6876 }
 0x446   :  { %6210 = vmatmul.mubr.msk.bf16.vlgmr.msra.gmra.mrb[12].mxu1 %vm813_vm3, %v858_v40  ;;  %v855_v47 = vmul.f32 %v6877_v41, %v6869_v13  ;;  %v1152_v55 = vpop.permute.xlu0 %1151 }
 0x447   :  { %6220 = vmatpush3.bf16.msra.mxu1 %v959_v44  ;;  %6221 = vmatprep.mubr.msk.bf16.mxu1 %vm7357_vm0, %v7356_v43  ;;  %v1157_v59 = vsel %vm628_vm1, %v1152_v55, 0 }
 0x448   :  { %v859_v48 = vpack.c.bf16 %v855_v47, %v855_v47  ;;  %6231 = vmatprep.subr.bf16.mxu1 %v7356_v43 }
 0x449   :  { %v6879_v19 = vpop.eup %6878 }
 0x44a   :  { %6216 = vmatmul.mubr.msk.bf16.vlgmr.msra.gmra.mrb[16].mxu0 %vm813_vm3, %v859_v48  ;;  %v856_v50 = vmul.f32 %v6879_v19, %v6871_v18  ;;  %v1150_v60 = vpop.permute.xlu0 %1149 }
 0x44b   :  { %6226 = vmatpush3.bf16.msra.mxu0 %v1005_v25  ;;  %6227 = vmatprep.mubr.msk.bf16.mxu0 %vm7357_vm0, %v7356_v43 }
 0x44c   :  { %v860_v52 = vpack.c.bf16 %v856_v50, %v856_v50  ;;  %6237 = vmatprep.subr.bf16.mxu0 %v7356_v43 }
 0x44e   :  { %6222 = vmatmul.mubr.msk.bf16.vlgmr.msra.gmra.mrb[16].mxu1 %vm813_vm3, %v860_v52 }
 0x44f   :  { %6233 = vmatprep.mubr.msk.bf16.mxu1 %vm7357_vm0, %v7356_v43 }
 0x450   :  { %6232 = vmatpush3.bf16.xpose.msra.mxu1 %v1057_v53 }
 0x451   :  { %6243 = vmatprep.subr.bf16.mxu1 %v7356_v43 }
 0x457   :  { %6234 = vmatmul.mubr.msk.bf16.vlgmr.msra.gmra.mrb[20].mxu1 %vm628_vm1, %v1050_v57 }
 0x458   :  { %6244 = vmatpush3.bf16.xpose.msra.mxu1 %v1157_v59  ;;  %6245 = vmatprep.mubr.msk.bf16.mxu1 %vm7357_vm0, %v7356_v43 }
 0x459   :  { %6255 = vmatprep.subr.bf16.mxu1 %v7356_v43 }
 0x45f   :  { %6246 = vmatmul.mubr.msk.bf16.vlgmr.msra.gmra.mrb[24].mxu1 %vm628_vm1, %v1150_v60 }
 0x460   :  { %6257 = vmatprep.mubr.msk.bf16.mxu1 %vm7357_vm0, %v7356_v43 }
 0x473   :  { %v849_v61 = vpop.xlane.xlu1 %848 }
 0x474   :  { %6880 = vrcp.f32 %v849_v61 }
 0x477   :  { %v1100_v2 = vpop.permute.xlu1 %1099 }
 0x47b   :  { %v1202_v4 = vpop.permute.xlu1 %1201 }
 0x47c   :  { %v1207_v7 = vsel %vm628_vm1, %v1202_v4, 0 }
 0x47e   :  { %v6881_v62 = vpop.eup %6880 }
 0x47f   :  { %v857_v63 = vmul.f32 %v6881_v62, %v6873_v29  ;;  %v1200_v9 = vpop.permute.xlu1 %1199 }
 0x481   :  { %v861_v1 = vpack.c.bf16 %v857_v63, %v857_v63 }
 0x483   :  { %6228 = vmatmul.mubr.msk.bf16.vlgmr.msra.gmra.mrb[20].mxu0 %vm813_vm3, %v861_v1 }
 0x484   :  { %6238 = vmatpush3.bf16.xpose.msra.mxu0 %v1107_v3  ;;  %6239 = vmatprep.mubr.msk.bf16.mxu0 %vm7357_vm0, %v7356_v43 }
 0x485   :  { %6249 = vmatprep.subr.bf16.mxu0 %v7356_v43 }
 0x48b   :  { %6240 = vmatmul.mubr.msk.bf16.vlgmr.msra.gmra.mrb[24].mxu0 %vm628_vm1, %v1100_v2 }
 0x48c   :  { %6250 = vmatpush3.bf16.xpose.msra.mxu0 %v1207_v7  ;;  %6251 = vmatprep.mubr.msk.bf16.mxu0 %vm7357_vm0, %v7356_v43 }
 0x48d   :  { %6261 = vmatprep.subr.bf16.mxu0 %v7356_v43 }
 0x493   :  { %6252 = vmatmul.mubr.msk.bf16.vlgmr.msra.gmra.mrb[28].mxu0 %vm628_vm1, %v1200_v9 }
 0x494   :  { %6263 = vmatprep.mubr.msk.bf16.mxu0 %vm7357_vm0, %v7356_v43 }
 0x519   :  { %v7857_v11 = vpop.f32.mrb[12].mxu1 }
 0x51a   :  { %v6211_v12 = vpop.f32.mrb[13].mxu1 }
 0x51b   :  { %v906_v13 = vpop.f32.mrb[14].mxu1 }
 0x51c   :  { %v6212_v17 = vpop.f32.mrb[15].mxu1 }
 0x51d   :  { %v7859_v18 = vpop.f32.mrb[16].mxu0 }
 0x51e   :  { %v1047_v20 = vpack.c.bf16 %v7859_v18, %v7857_v11  ;;  %v6217_v21 = vpop.f32.mrb[17].mxu0 }
 0x51f   :  { %v952_v22 = vpop.f32.mrb[18].mxu0 }
 0x520   :  { %v6218_v26 = vpop.f32.mrb[19].mxu0 }
 0x521   :  { %v7863_v29 = vpop.f32.mrb[16].mxu1 }
 0x522   :  { %v6223_v31 = vpop.f32.mrb[17].mxu1 }
 0x523   :  { %v998_v32 = vpop.f32.mrb[18].mxu1 }
 0x524   :  { %v6224_v33 = vpop.f32.mrb[19].mxu1 }
 0x52a   :  { %v1093_v36 = vpop.f32.mrb[20].mxu1 }
 0x52b   :  { %v6235_v37 = vpop.f32.mrb[21].mxu1  ;;  %v1249_v39 = vsel %vm813_vm3, %v1093_v36, -inf }
 0x52c   :  { %1250 = vmax.xlane.f32.xlu0 %v1249_v39  ;;  %v1096_v40 = vpop.f32.mrb[22].mxu1 }
 0x52d   :  { %v6236_v41 = vpop.f32.mrb[23].mxu1 }
 0x532   :  { %v1193_v44 = vpop.f32.mrb[24].mxu1 }
 0x533   :  { %v6247_v47 = vpop.f32.mrb[25].mxu1  ;;  %v1255_v48 = vsel %vm813_vm3, %v1193_v44, -inf }
 0x534   :  { %1256 = vmax.xlane.f32.xlu0 %v1255_v48  ;;  %v1196_v19 = vpop.f32.mrb[26].mxu1 }
 0x535   :  { %v6248_v25 = vpop.f32.mrb[27].mxu1 }
 0x556   :  { %v7867_v50 = vpop.f32.mrb[20].mxu0 }
 0x557   :  { %v1048_v51 = vpack.c.bf16 %v7867_v50, %v7863_v29  ;;  %v6229_v52 = vpop.f32.mrb[21].mxu0 }
 0x558   :  { %v1044_v53 = vpop.f32.mrb[22].mxu0 }
 0x559   :  { %v6230_v54 = vpop.f32.mrb[23].mxu0 }
 0x55e   :  { %v1143_v55 = vpop.f32.mrb[24].mxu0 }
 0x55f   :  { %v6241_v57 = vpop.f32.mrb[25].mxu0  ;;  %v1252_v59 = vsel %vm813_vm3, %v1143_v55, -inf }
 0x560   :  { %1253 = vmax.xlane.f32.xlu1 %v1252_v59  ;;  %v1146_v60 = vpop.f32.mrb[26].mxu0 }
 0x561   :  { %v6242_v61 = vpop.f32.mrb[27].mxu0 }
 0x566   :  { %v1243_v62 = vpop.f32.mrb[28].mxu0 }
 0x567   :  { %v6253_v63 = vpop.f32.mrb[29].mxu0  ;;  %v1258_v1 = vsel %vm813_vm3, %v1243_v62, -inf }
 0x568   :  { %v1246_v2 = vpop.f32.mrb[30].mxu0  ;;  %1259 = vmax.xlane.f32.xlu0 %v1258_v1 }
 0x569   :  { %v6254_v3 = vpop.f32.mrb[31].mxu0 }
 0x5b9   :  { %v1251_v4 = vpop.xlane.xlu0 %1250 }
 0x5ba   :  { %v1261_v7 = vsub.f32 %v1093_v36, %v1251_v4 }
 0x5bc   :  { %v1265_v9 = vmul.f32 1.442695, %v1261_v7 }
 0x5be   :  { %6882 = vpow2.f32 %v1265_v9 }
 0x5c1   :  { %v1257_v12 = vpop.xlane.xlu0 %1256 }
 0x5c2   :  { %v1263_v13 = vsub.f32 %v1193_v44, %v1257_v12 }
 0x5c4   :  { %v1269_v17 = vmul.f32 1.442695, %v1263_v13 }
 0x5c6   :  { %6884 = vpow2.f32 %v1269_v17 }
 0x5c8   :  { %v6883_v21 = vpop.eup %6882 }
 0x5c9   :  { %v1273_v22 = vsel %vm813_vm3, %v6883_v21, 0.0 }
 0x5ca   :  { %1274 = vadd.xlane.f32.xlu0 %v1273_v22 }
 0x5d0   :  { %v6885_v26 = vpop.eup %6884 }
 0x5d1   :  { %v1279_v31 = vsel %vm813_vm3, %v6885_v26, 0.0 }
 0x5d2   :  { %1280 = vadd.xlane.f32.xlu0 %v1279_v31 }
 0x5e8   :  { %1297 = vrot.lane.b32.xlu0 %v7777_v28, %s7358_s14 }
 0x5ec   :  { %1627 = vrot.lane.b32.xlu0 %v7726_v56, %s8530_s9 }
 0x5ed   :  { %v1254_v32 = vpop.xlane.xlu1 %1253 }
 0x5ee   :  { %v1262_v33 = vsub.f32 %v1143_v55, %v1254_v32 }
 0x5f0   :  { %v1267_v36 = vmul.f32 1.442695, %v1262_v33  ;;  %1677 = vrot.lane.b32.xlu0 %v7728_v58, %s8530_s9 }
 0x5f2   :  { %6886 = vpow2.f32 %v1267_v36 }
 0x5f4   :  { %1727 = vrot.lane.b32.xlu0 %v7738_v6, %s8530_s9 }
 0x5f5   :  { %v1260_v40 = vpop.xlane.xlu0 %1259 }
 0x5f6   :  { %v1264_v41 = vsub.f32 %v1243_v62, %v1260_v40 }
 0x5f8   :  { %1725 = vrot.lane.b32.xlu0 %v7757_v14, %s8530_s9  ;;  %v1271_v44 = vmul.f32 1.442695, %v1264_v41 }
 0x5fa   :  { %6888 = vpow2.f32 %v1271_v44 }
 0x5fc   :  { %v6887_v37 = vpop.eup %6886 }
 0x5fd   :  { %v1276_v39 = vsel %vm813_vm3, %v6887_v37, 0.0 }
 0x5fe   :  { %1277 = vadd.xlane.f32.xlu1 %v1276_v39 }
 0x604   :  { %v6889_v47 = vpop.eup %6888 }
 0x605   :  { %v1282_v48 = vsel %vm813_vm3, %v6889_v47, 0.0 }
 0x60f   :  { %1345 = vrot.lane.b32.xlu1 %v7779_v30, %s7358_s14 }
 0x613   :  { %1393 = vrot.lane.b32.xlu1 %v7813_v38, %s7358_s14 }
 0x637   :  { %1283 = vadd.xlane.f32.xlu1 %v1282_v48  ;;  %v6779_v48 = vld [vmem:[#allocation13 + $0x18] sm:$0xff]  }
 0x648   :  { %1441 = vrot.lane.b32.xlu1 %v7817_v42, %s7358_s14 }
 0x64c   :  { %1625 = vrot.lane.b32.xlu1 %v7736_v5, %s8530_s9 }
 0x650   :  { %1675 = vrot.lane.b32.xlu1 %v7740_v8, %s8530_s9 }
 0x654   :  { %1777 = vrot.lane.b32.xlu1 %v7742_v10, %s8530_s9 }
 0x657   :  { %v1275_v19 = vpop.xlane.xlu0 %1274 }
 0x658   :  { %6890 = vrcp.f32 %v1275_v19  ;;  %1775 = vrot.lane.b32.xlu1 %v7760_v15, %s8530_s9  ;;  %v6780_v19 = vld [vmem:[#allocation13] sm:$0xff]  }
 0x65f   :  { %v1281_v25 = vpop.xlane.xlu0 %1280 }
 0x660   :  { %6892 = vrcp.f32 %v1281_v25 }
 0x662   :  { %v6891_v52 = vpop.eup %6890 }
 0x663   :  { %v1298_v53 = vpop.permute.xlu0 %1297  ;;  %v1289_v54 = vmul.f32 %v6891_v52, %v6883_v21 }
 0x664   :  { %v1303_v55 = vsel %vm865_vm2, %v1298_v53, 0 }
 0x665   :  { %6256 = vmatpush3.bf16.msra.mxu1 %v1303_v55  ;;  %v1293_v57 = vpack.c.bf16 %v1289_v54, %v1289_v54 }
 0x666   :  { %6267 = vmatprep.subr.bf16.mxu1 %v7356_v43 }
 0x668   :  { %6258 = vmatmul.mubr.msk.bf16.vlgmr.msra.gmra.mrb[28].mxu1 %vm813_vm3, %v1293_v57 }
 0x669   :  { %6269 = vmatprep.mubr.msk.bf16.mxu1 %vm7357_vm0, %v7356_v43 }
 0x66a   :  { %v6893_v60 = vpop.eup %6892 }
 0x66b   :  { %v1291_v63 = vmul.f32 %v6893_v60, %v6885_v26  ;;  %v1628_v26 = vpop.permute.xlu0 %1627 }
 0x66c   :  { %v1633_v32 = vsel %vm628_vm1, %v1628_v26, 0 }
 0x66d   :  { %v1295_v4 = vpack.c.bf16 %v1291_v63, %v1291_v63 }
 0x66f   :  { %v1678_v36 = vpop.permute.xlu0 %1677 }
 0x670   :  { %v1683_v39 = vsel %vm628_vm1, %v1678_v36, 0 }
 0x68b   :  { %v1278_v59 = vpop.xlane.xlu1 %1277 }
 0x68c   :  { %6894 = vrcp.f32 %v1278_v59 }
 0x68f   :  { %v1346_v61 = vpop.permute.xlu1 %1345 }
 0x690   :  { %v1351_v62 = vsel %vm865_vm2, %v1346_v61, 0 }
 0x691   :  { %6262 = vmatpush3.bf16.msra.mxu0 %v1351_v62 }
 0x692   :  { %6273 = vmatprep.subr.bf16.mxu0 %v7356_v43 }
 0x693   :  { %v1394_v1 = vpop.permute.xlu1 %1393 }
 0x694   :  { %v1399_v2 = vsel %vm865_vm2, %v1394_v1, 0 }
 0x695   :  { %6268 = vmatpush3.bf16.msra.mxu1 %v1399_v2 }
 0x696   :  { %v6895_v3 = vpop.eup %6894 }
 0x697   :  { %v1290_v7 = vmul.f32 %v6895_v3, %v6887_v37 }
 0x698   :  { %6270 = vmatmul.mubr.msk.bf16.vlgmr.msra.gmra.mrb[32].mxu1 %vm813_vm3, %v1295_v4 }
 0x699   :  { %v1294_v9 = vpack.c.bf16 %v1290_v7, %v1290_v7 }
 0x69b   :  { %6264 = vmatmul.mubr.msk.bf16.vlgmr.msra.gmra.mrb[32].mxu0 %vm813_vm3, %v1294_v9  ;;  %v6781_v9 = vld [vmem:[#allocation13 + $0x8] sm:$0xff]  }
 0x69c   :  { %6275 = vmatprep.mubr.msk.bf16.mxu0 %vm7357_vm0, %v7356_v43 }
 0x6c4   :  { %v1284_v12 = vpop.xlane.xlu1 %1283 }
 0x6c5   :  { %6896 = vrcp.f32 %v1284_v12 }
 0x6c8   :  { %v1442_v13 = vpop.permute.xlu1 %1441 }
 0x6c9   :  { %v1447_v17 = vsel %vm865_vm2, %v1442_v13, 0 }
 0x6ca   :  { %6274 = vmatpush3.bf16.msra.mxu0 %v1447_v17 }
 0x6cb   :  { %6295 = vmatprep.subr.bf16.mxu0 %v7356_v43 }
 0x6cc   :  { %v1626_v33 = vpop.permute.xlu1 %1625 }
 0x6cf   :  { %v6897_v21 = vpop.eup %6896 }
 0x6d0   :  { %v1292_v22 = vmul.f32 %v6897_v21, %v6889_v47  ;;  %v1676_v37 = vpop.permute.xlu1 %1675  ;;  %v6778_v47 = vld [vmem:[#allocation13 + $0x10] sm:$0xff]  }
 0x6d1   :  { %6279 = vmatprep.subr.bf16.mxu1 %v6778_v47 }
 0x6d2   :  { %v1296_v31 = vpack.c.bf16 %v1292_v22, %v1292_v22  ;;  %6280 = vmatpush3.bf16.msra.mxu1 %v6778_v47 }
 0x6d3   :  { %6281 = vmatprep.subr.bf16.mxu1 %v6779_v48 }
 0x6d4   :  { %6276 = vmatmul.mubr.msk.bf16.vlgmr.msra.gmra.mrb[36].mxu0 %vm813_vm3, %v1296_v31  ;;  %v1778_v40 = vpop.permute.xlu1 %1777 }
 0x6d5   :  { %6296 = vmatpush3.bf16.xpose.msra.mxu0 %v1633_v32  ;;  %6297 = vmatprep.mubr.msk.bf16.mxu0 %vm7357_vm0, %v7356_v43  ;;  %v1783_v41 = vsel %vm628_vm1, %v1778_v40, 0  ;;  %v1728_v32 = vpop.permute.xlu0 %1727 }
 0x6d6   :  { %6301 = vmatprep.subr.bf16.mxu0 %v7356_v43  ;;  %6282 = vmatpush3.bf16.msra.mxu1 %v6779_v48  ;;  %v1733_v11 = vsel %vm628_vm1, %v1728_v32, 0 }
 0x6d7   :  { %6287 = vmatprep.subr.bf16.mxu1 %v6780_v19 }
 0x6d8   :  { %v1776_v44 = vpop.permute.xlu1 %1775 }
 0x6dc   :  { %6298 = vmatmul.mubr.msk.bf16.vlgmr.msra.gmra.mrb[40].mxu0 %vm628_vm1, %v1626_v33 }
 0x6dd   :  { %6302 = vmatpush3.bf16.xpose.msra.mxu0 %v1683_v39  ;;  %6303 = vmatprep.mubr.msk.bf16.mxu0 %vm7357_vm0, %v7356_v43  ;;  %v1726_v39 = vpop.permute.xlu0 %1725 }
 0x6de   :  { %6313 = vmatprep.subr.bf16.mxu0 %v7356_v43 }
 0x6e4   :  { %6304 = vmatmul.mubr.msk.bf16.vlgmr.msra.gmra.mrb[44].mxu0 %vm628_vm1, %v1676_v37 }
 0x6e5   :  { %6314 = vmatpush3.bf16.xpose.msra.mxu0 %v1783_v41  ;;  %6315 = vmatprep.mubr.msk.bf16.mxu0 %vm7357_vm0, %v7356_v43 }
 0x6e6   :  { %6325 = vmatprep.subr.bf16.mxu0 %v7356_v43 }
 0x6ec   :  { %6316 = vmatmul.mubr.msk.bf16.vlgmr.msra.gmra.mrb[48].mxu0 %vm628_vm1, %v1776_v44 }
 0x6ed   :  { %6327 = vmatprep.mubr.msk.bf16.mxu0 %vm7357_vm0, %v7356_v43 }
 0x73b   :  { %v1339_v25 = vpop.f32.mrb[28].mxu1 }
 0x73c   :  { %v6259_v52 = vpop.f32.mrb[29].mxu1 }
 0x73d   :  { %v1342_v53 = vpop.f32.mrb[30].mxu1 }
 0x73e   :  { %v6260_v54 = vpop.f32.mrb[31].mxu1 }
 0x76b   :  { %v1435_v55 = vpop.f32.mrb[32].mxu1 }
 0x76c   :  { %v6271_v57 = vpop.f32.mrb[33].mxu1 }
 0x76d   :  { %v1438_v59 = vpop.f32.mrb[34].mxu1 }
 0x76e   :  { %v1387_v60 = vpop.f32.mrb[32].mxu0  ;;  %v6272_v61 = vpop.f32.mrb[35].mxu1 }
 0x76f   :  { %v1489_v62 = vpack.c.bf16 %v1387_v60, %v1339_v25  ;;  %v6265_v63 = vpop.f32.mrb[33].mxu0 }
 0x770   :  { %v1390_v1 = vpop.f32.mrb[34].mxu0 }
 0x771   :  { %v6266_v2 = vpop.f32.mrb[35].mxu0  ;;  %6283 = vmatprep.mubr.msk.bf16.mxu1 %vm628_vm1, %v1489_v62 }
 0x7a7   :  { %v1483_v3 = vpop.f32.mrb[36].mxu0 }
 0x7a8   :  { %v1490_v4 = vpack.c.bf16 %v1483_v3, %v1435_v55  ;;  %v6277_v7 = vpop.f32.mrb[37].mxu0 }
 0x7a9   :  { %v1486_v12 = vpop.f32.mrb[38].mxu0 }
 0x7aa   :  { %v6278_v13 = vpop.f32.mrb[39].mxu0  ;;  %6284 = vmatmul.mubr.msk.bf16.vlgmr.msra.gmra.mrb[36].mxu1 %vm628_vm1, %v1490_v4 }
 0x7ab   :  { %6288 = vmatpush3.bf16.msra.mxu1 %v6780_v19  ;;  %6291 = vmatprep.mubr.msk.bf16.mxu1 %vm628_vm1, %v1047_v20 }
 0x7ac   :  { %6289 = vmatprep.subr.bf16.mxu1 %v6781_v9 }
 0x7af   :  { %6290 = vmatpush3.bf16.msra.mxu1 %v6781_v9  ;;  %v1669_v17 = vpop.f32.mrb[40].mxu0 }
 0x7b0   :  { %v6299_v21 = vpop.f32.mrb[41].mxu0  ;;  %v1825_v22 = vsel %vm813_vm3, %v1669_v17, -inf  ;;  %6307 = vmatprep.subr.bf16.mxu1 %v7356_v43 }
 0x7b1   :  { %1826 = vmax.xlane.f32.xlu0 %v1825_v22  ;;  %v1672_v26 = vpop.f32.mrb[42].mxu0 }
 0x7b2   :  { %v6300_v31 = vpop.f32.mrb[43].mxu0 }
 0x7b6   :  { %6292 = vmatmul.mubr.msk.bf16.vlgmr.msra.gmra.mrb[36].mxu1 %vm628_vm1, %v1048_v51 }
 0x7b7   :  { %v1719_v18 = vpop.f32.mrb[44].mxu0  ;;  %6309 = vmatprep.mubr.msk.bf16.mxu1 %vm7357_vm0, %v7356_v43 }
 0x7b8   :  { %6308 = vmatpush3.bf16.xpose.msra.mxu1 %v1733_v11  ;;  %v6305_v20 = vpop.f32.mrb[45].mxu0  ;;  %v1828_v33 = vsel %vm813_vm3, %v1719_v18, -inf }
 0x7b9   :  { %1829 = vmax.xlane.f32.xlu1 %v1828_v33  ;;  %v1722_v36 = vpop.f32.mrb[46].mxu0  ;;  %6319 = vmatprep.subr.bf16.mxu1 %v7356_v43 }
 0x7ba   :  { %v6306_v37 = vpop.f32.mrb[47].mxu0 }
 0x7bf   :  { %6310 = vmatmul.mubr.msk.bf16.vlgmr.msra.gmra.mrb[40].mxu1 %vm628_vm1, %v1726_v39  ;;  %v1819_v29 = vpop.f32.mrb[48].mxu0 }
 0x7c0   :  { %v6317_v50 = vpop.f32.mrb[49].mxu0  ;;  %6321 = vmatprep.mubr.msk.bf16.mxu1 %vm7357_vm0, %v7356_v43  ;;  %v1834_v61 = vsel %vm813_vm3, %v1819_v29, -inf }
 0x7c1   :  { %v1822_v51 = vpop.f32.mrb[50].mxu0 }
 0x7c2   :  { %v6318_v40 = vpop.f32.mrb[51].mxu0 }
 0x83e   :  { %v1827_v25 = vpop.xlane.xlu0 %1826 }
 0x83f   :  { %v1837_v52 = vsub.f32 %v1669_v17, %v1827_v25 }
 0x841   :  { %v1841_v53 = vmul.f32 1.442695, %v1837_v52 }
 0x846   :  { %v1830_v41 = vpop.xlane.xlu1 %1829 }
 0x847   :  { %v1838_v44 = vsub.f32 %v1719_v18, %v1830_v41 }
 0x849   :  { %v1843_v47 = vmul.f32 1.442695, %v1838_v44 }
 0x84b   :  { %6898 = vpow2.f32 %v1843_v47 }
 0x84c   :  { %6900 = vpow2.f32 %v1841_v53  ;;  %v6782_v53 = vld [vmem:[#allocation13 + $0x20] sm:$0xff]  }
 0x855   :  { %v6899_v48 = vpop.eup %6898 }
 0x856   :  { %v1852_v19 = vsel %vm813_vm3, %v6899_v48, 0.0  ;;  %v6901_v62 = vpop.eup %6900 }
 0x857   :  { %1853 = vadd.xlane.f32.xlu1 %v1852_v19  ;;  %v1849_v63 = vsel %vm813_vm3, %v6901_v62, 0.0 }
 0x892   :  { %v1769_v54 = vpop.f32.mrb[40].mxu1 }
 0x893   :  { %v6311_v55 = vpop.f32.mrb[41].mxu1  ;;  %v1831_v57 = vsel %vm813_vm3, %v1769_v54, -inf }
 0x894   :  { %1832 = vmax.xlane.f32.xlu0 %v1831_v57  ;;  %v1772_v59 = vpop.f32.mrb[42].mxu1 }
 0x895   :  { %v6312_v60 = vpop.f32.mrb[43].mxu1 }
 0x898   :  { %1835 = vmax.xlane.f32.xlu0 %v1834_v61 }
 0x89c   :  { %1850 = vadd.xlane.f32.xlu0 %v1849_v63 }
 0x921   :  { %v1833_v1 = vpop.xlane.xlu0 %1832 }
 0x922   :  { %v1839_v2 = vsub.f32 %v1769_v54, %v1833_v1  ;;  %v6783_v54 = vld [vmem:[#allocation13 + $0x28] sm:$0xff]  }
 0x924   :  { %v1845_v3 = vmul.f32 1.442695, %v1839_v2 }
 0x925   :  { %v1836_v4 = vpop.xlane.xlu0 %1835 }
 0x926   :  { %6902 = vpow2.f32 %v1845_v3  ;;  %v1840_v7 = vsub.f32 %v1819_v29, %v1836_v4 }
 0x928   :  { %v1847_v9 = vmul.f32 1.442695, %v1840_v7 }
 0x92a   :  { %6904 = vpow2.f32 %v1847_v9 }
 0x930   :  { %v6903_v12 = vpop.eup %6902 }
 0x931   :  { %v1855_v13 = vsel %vm813_vm3, %v6903_v12, 0.0 }
 0x932   :  { %1856 = vadd.xlane.f32.xlu0 %v1855_v13 }
 0x934   :  { %v6905_v17 = vpop.eup %6904 }
 0x935   :  { %v1858_v21 = vsel %vm813_vm3, %v6905_v17, 0.0 }
 0x936   :  { %1859 = vadd.xlane.f32.xlu1 %v1858_v21 }
 0x947   :  { %1921 = vrot.lane.b32.xlu1 %v7779_v30, %s8530_s9 }
 0x948   :  { %1873 = vrot.lane.b32.xlu0 %v7777_v28, %s8530_s9 }
 0x94b   :  { %1969 = vrot.lane.b32.xlu1 %v7813_v38, %s8530_s9 }
 0x94c   :  { %2140 = vrot.lane.b32.xlu0 %v7726_v56, %s7359_s28  ;;  %v1851_v56 = vpop.xlane.xlu0 %1850 }
 0x94d   :  { %6906 = vrcp.f32 %v1851_v56 }
 0x94f   :  { %2017 = vrot.lane.b32.xlu1 %v7817_v42, %s8530_s9 }
 0x950   :  { %2138 = vrot.lane.b32.xlu0 %v7736_v5, %s7359_s28  ;;  %v1854_v5 = vpop.xlane.xlu1 %1853 }
 0x951   :  { %6908 = vrcp.f32 %v1854_v5 }
 0x953   :  { %2190 = vrot.lane.b32.xlu1 %v7728_v58, %s7359_s28 }
 0x954   :  { %2240 = vrot.lane.b32.xlu0 %v7738_v6, %s7359_s28 }
 0x957   :  { %2188 = vrot.lane.b32.xlu1 %v7740_v8, %s7359_s28  ;;  %v6907_v58 = vpop.eup %6906 }
 0x958   :  { %2238 = vrot.lane.b32.xlu0 %v7757_v14, %s7359_s28  ;;  %v1865_v6 = vmul.f32 %v6907_v58, %v6901_v62 }
 0x95a   :  { %v1869_v32 = vpack.c.bf16 %v1865_v6, %v1865_v6 }
 0x95b   :  { %2290 = vrot.lane.b32.xlu1 %v7742_v10, %s7359_s28  ;;  %v6909_v26 = vpop.eup %6908 }
 0x95c   :  { %v1866_v10 = vmul.f32 %v6909_v26, %v6899_v48 }
 0x95e   :  { %v1870_v20 = vpack.c.bf16 %v1866_v10, %v1866_v10 }
 0x95f   :  { %2288 = vrot.lane.b32.xlu1 %v7760_v15, %s7359_s28 }
 0x9bf   :  { %v1857_v22 = vpop.xlane.xlu0 %1856 }
 0x9c0   :  { %6910 = vrcp.f32 %v1857_v22 }
 0x9c3   :  { %v1860_v31 = vpop.xlane.xlu1 %1859  ;;  %v1874_v8 = vpop.permute.xlu0 %1873 }
 0x9c4   :  { %6912 = vrcp.f32 %v1860_v31  ;;  %v1879_v14 = vsel %vm865_vm2, %v1874_v8, 0 }
 0x9c5   :  { %6320 = vmatpush3.bf16.msra.mxu1 %v1879_v14 }
 0x9c6   :  { %6331 = vmatprep.subr.bf16.mxu1 %v7356_v43 }
 0x9c7   :  { %v1922_v15 = vpop.permute.xlu1 %1921  ;;  %v2141_v44 = vpop.permute.xlu0 %2140 }
 0x9c8   :  { %v1927_v11 = vsel %vm865_vm2, %v1922_v15, 0  ;;  %6322 = vmatmul.mubr.msk.bf16.vlgmr.msra.gmra.mrb[44].mxu1 %vm813_vm3, %v1869_v32  ;;  %v2146_v48 = vsel %vm628_vm1, %v2141_v44, 0 }
 0x9c9   :  { %6326 = vmatpush3.bf16.msra.mxu0 %v1927_v11  ;;  %6333 = vmatprep.mubr.msk.bf16.mxu1 %vm7357_vm0, %v7356_v43 }
 0x9ca   :  { %v6911_v18 = vpop.eup %6910  ;;  %6337 = vmatprep.subr.bf16.mxu0 %v7356_v43 }
 0x9cb   :  { %v1970_v33 = vpop.permute.xlu1 %1969  ;;  %v1867_v36 = vmul.f32 %v6911_v18, %v6903_v12  ;;  %v2139_v47 = vpop.permute.xlu0 %2138 }
 0x9cc   :  { %v1975_v37 = vsel %vm865_vm2, %v1970_v33, 0  ;;  %6328 = vmatmul.mubr.msk.bf16.vlgmr.msra.gmra.mrb[52].mxu0 %vm813_vm3, %v1870_v20 }
 0x9cd   :  { %6332 = vmatpush3.bf16.msra.mxu1 %v1975_v37  ;;  %v1871_v39 = vpack.c.bf16 %v1867_v36, %v1867_v36  ;;  %6339 = vmatprep.mubr.msk.bf16.mxu0 %vm7357_vm0, %v7356_v43 }
 0x9ce   :  { %v6913_v29 = vpop.eup %6912  ;;  %6343 = vmatprep.subr.bf16.mxu1 %v6782_v53 }
 0x9cf   :  { %v2018_v50 = vpop.permute.xlu1 %2017  ;;  %v1868_v51 = vmul.f32 %v6913_v29, %v6905_v17  ;;  %v2241_v19 = vpop.permute.xlu0 %2240 }
 0x9d0   :  { %v2023_v40 = vsel %vm865_vm2, %v2018_v50, 0  ;;  %6334 = vmatmul.mubr.msk.bf16.vlgmr.msra.gmra.mrb[48].mxu1 %vm813_vm3, %v1871_v39  ;;  %v2246_v25 = vsel %vm628_vm1, %v2241_v19, 0 }
 0x9d1   :  { %6338 = vmatpush3.bf16.msra.mxu0 %v2023_v40  ;;  %v1872_v41 = vpack.c.bf16 %v1868_v51, %v1868_v51  ;;  %6344 = vmatpush3.bf16.msra.mxu1 %v6782_v53 }
 0x9d2   :  { %6351 = vmatprep.subr.bf16.mxu0 %v7356_v43  ;;  %6345 = vmatprep.subr.bf16.mxu1 %v6783_v54 }
 0x9d3   :  { %v2239_v52 = vpop.permute.xlu0 %2238  ;;  %v2191_v3 = vpop.permute.xlu1 %2190 }
 0x9d4   :  { %6340 = vmatmul.mubr.msk.bf16.vlgmr.msra.gmra.mrb[56].mxu0 %vm813_vm3, %v1872_v41  ;;  %v2196_v58 = vsel %vm628_vm1, %v2191_v3, 0 }
 0x9d5   :  { %6353 = vmatprep.mubr.msk.bf16.mxu0 %vm7357_vm0, %v7356_v43  ;;  %6346 = vmatpush3.bf16.msra.mxu1 %v6783_v54 }
 0x9d6   :  { %6357 = vmatprep.subr.bf16.mxu1 %v7356_v43 }
 0x9d7   :  { %v2189_v56 = vpop.permute.xlu1 %2188 }
 0x9da   :  { %6352 = vmatpush3.bf16.xpose.msra.mxu0 %v2146_v48 }
 0x9db   :  { %6363 = vmatprep.subr.bf16.mxu0 %v7356_v43  ;;  %v2291_v6 = vpop.permute.xlu1 %2290 }
 0x9dc   :  { %v2296_v26 = vsel %vm628_vm1, %v2291_v6, 0 }
 0x9df   :  { %v2289_v15 = vpop.permute.xlu1 %2288 }
 0x9e1   :  { %6354 = vmatmul.mubr.msk.bf16.vlgmr.msra.gmra.mrb[60].mxu0 %vm628_vm1, %v2139_v47 }
 0x9e2   :  { %6364 = vmatpush3.bf16.xpose.msra.mxu0 %v2246_v25  ;;  %6365 = vmatprep.mubr.msk.bf16.mxu0 %vm7357_vm0, %v7356_v43 }
 0x9e3   :  { %6375 = vmatprep.subr.bf16.mxu0 %v7356_v43 }
 0x9e9   :  { %6366 = vmatmul.mubr.msk.bf16.vlgmr.msra.gmra.mrb[64].mxu0 %vm628_vm1, %v2239_v52 }
 0x9ea   :  { %6377 = vmatprep.mubr.msk.bf16.mxu0 %vm7357_vm0, %v7356_v43 }
 0xa9b   :  { %v1915_v55 = vpop.f32.mrb[44].mxu1 }
 0xa9c   :  { %v6323_v57 = vpop.f32.mrb[45].mxu1 }
 0xa9d   :  { %v1918_v59 = vpop.f32.mrb[46].mxu1 }
 0xa9e   :  { %v6324_v60 = vpop.f32.mrb[47].mxu1 }
 0xa9f   :  { %v1963_v61 = vpop.f32.mrb[52].mxu0 }
 0xaa0   :  { %v2065_v62 = vpack.c.bf16 %v1963_v61, %v1915_v55  ;;  %v6329_v63 = vpop.f32.mrb[53].mxu0 }
 0xaa1   :  { %v1966_v1 = vpop.f32.mrb[54].mxu0 }
 0xaa2   :  { %v6330_v2 = vpop.f32.mrb[55].mxu0  ;;  %6347 = vmatprep.mubr.msk.bf16.mxu1 %vm628_vm1, %v2065_v62 }
 0xaa3   :  { %v2011_v4 = vpop.f32.mrb[48].mxu1 }
 0xaa4   :  { %v6335_v7 = vpop.f32.mrb[49].mxu1 }
 0xaa5   :  { %v2014_v9 = vpop.f32.mrb[50].mxu1 }
 0xaa6   :  { %v6336_v12 = vpop.f32.mrb[51].mxu1 }
 0xaa7   :  { %v2059_v13 = vpop.f32.mrb[56].mxu0 }
 0xaa8   :  { %v2066_v17 = vpack.c.bf16 %v2059_v13, %v2011_v4  ;;  %v6341_v21 = vpop.f32.mrb[57].mxu0 }
 0xaa9   :  { %v2062_v5 = vpop.f32.mrb[58].mxu0 }
 0xaaa   :  { %v6342_v22 = vpop.f32.mrb[59].mxu0  ;;  %6348 = vmatmul.mubr.msk.bf16.vlgmr.msra.gmra.mrb[36].mxu1 %vm628_vm1, %v2066_v17 }
 0xaab   :  { %6358 = vmatpush3.bf16.xpose.msra.mxu1 %v2196_v58  ;;  %6359 = vmatprep.mubr.msk.bf16.mxu1 %vm7357_vm0, %v7356_v43 }
 0xaac   :  { %6369 = vmatprep.subr.bf16.mxu1 %v7356_v43 }
 0xab2   :  { %6360 = vmatmul.mubr.msk.bf16.vlgmr.msra.gmra.mrb[52].mxu1 %vm628_vm1, %v2189_v56 }
 0xab3   :  { %6370 = vmatpush3.bf16.xpose.msra.mxu1 %v2296_v26  ;;  %6371 = vmatprep.mubr.msk.bf16.mxu1 %vm7357_vm0, %v7356_v43 }
 0xab4   :  { %v2182_v31 = vpop.f32.mrb[60].mxu0  ;;  %6381 = vmatprep.subr.bf16.mxu1 %v7356_v43 }
 0xab5   :  { %v6355_v8 = vpop.f32.mrb[61].mxu0  ;;  %v2338_v14 = vsel %vm813_vm3, %v2182_v31, -inf }
 0xab6   :  { %2339 = vmax.xlane.f32.xlu0 %v2338_v14  ;;  %v2185_v32 = vpop.f32.mrb[62].mxu0 }
 0xab7   :  { %v6356_v10 = vpop.f32.mrb[63].mxu0 }
 0xaba   :  { %6372 = vmatmul.mubr.msk.bf16.vlgmr.msra.gmra.mrb[56].mxu1 %vm628_vm1, %v2289_v15 }
 0xabb   :  { %6383 = vmatprep.mubr.msk.bf16.mxu1 %vm7357_vm0, %v7356_v43 }
 0xabc   :  { %v2282_v11 = vpop.f32.mrb[64].mxu0 }
 0xabd   :  { %v6367_v18 = vpop.f32.mrb[65].mxu0  ;;  %v2344_v20 = vsel %vm813_vm3, %v2282_v11, -inf }
 0xabe   :  { %2345 = vmax.xlane.f32.xlu0 %v2344_v20  ;;  %v2285_v33 = vpop.f32.mrb[66].mxu0 }
 0xabf   :  { %v6368_v36 = vpop.f32.mrb[67].mxu0 }
 0xb43   :  { %v2340_v37 = vpop.xlane.xlu0 %2339 }
 0xb44   :  { %v2350_v39 = vsub.f32 %v2182_v31, %v2340_v37 }
 0xb46   :  { %v2354_v50 = vmul.f32 1.442695, %v2350_v39 }
 0xb48   :  { %6914 = vpow2.f32 %v2354_v50 }
 0xb4b   :  { %v2346_v29 = vpop.xlane.xlu0 %2345 }
 0xb4c   :  { %v2352_v51 = vsub.f32 %v2282_v11, %v2346_v29 }
 0xb4e   :  { %v2358_v40 = vmul.f32 1.442695, %v2352_v51 }
 0xb50   :  { %6916 = vpow2.f32 %v2358_v40 }
 0xb52   :  { %v6915_v54 = vpop.eup %6914 }
 0xb53   :  { %v2362_v59 = vsel %vm813_vm3, %v6915_v54, 0.0 }
 0xb5a   :  { %v6917_v60 = vpop.eup %6916 }
 0xb5b   :  { %v2368_v61 = vsel %vm813_vm3, %v6917_v60, 0.0 }
 0xb85   :  { %v2232_v41 = vpop.f32.mrb[52].mxu1 }
 0xb86   :  { %v6361_v44 = vpop.f32.mrb[53].mxu1  ;;  %v2341_v47 = vsel %vm813_vm3, %v2232_v41, -inf }
 0xb87   :  { %2342 = vmax.xlane.f32.xlu1 %v2341_v47  ;;  %v2235_v48 = vpop.f32.mrb[54].mxu1 }
 0xb88   :  { %v6362_v19 = vpop.f32.mrb[55].mxu1  ;;  %v6784_v48 = vld [vmem:[#allocation13 + $0x30] sm:$0xff]  }
 0xb89   :  { %v6785_v19 = vld [vmem:[#allocation13 + $0x38] sm:$0xff]  }
 0xb8d   :  { %v2332_v25 = vpop.f32.mrb[56].mxu1 }
 0xb8e   :  { %v6373_v52 = vpop.f32.mrb[57].mxu1  ;;  %v2347_v53 = vsel %vm813_vm3, %v2332_v25, -inf }
 0xb8f   :  { %2348 = vmax.xlane.f32.xlu0 %v2347_v53  ;;  %v2335_v55 = vpop.f32.mrb[58].mxu1 }
 0xb90   :  { %v6374_v57 = vpop.f32.mrb[59].mxu1 }
 0xb93   :  { %2363 = vadd.xlane.f32.xlu0 %v2362_v59 }
 0xb97   :  { %2369 = vadd.xlane.f32.xlu0 %v2368_v61 }
 0xb98   :  { %2434 = vrot.lane.b32.xlu1 %v7779_v30, %s7359_s28 }
 0xb9c   :  { %2482 = vrot.lane.b32.xlu1 %v7813_v38, %s7359_s28 }
 0xbad   :  { %2386 = vrot.lane.b32.xlu0 %v7777_v28, %s7359_s28 }
 0xc14   :  { %v2343_v62 = vpop.xlane.xlu1 %2342 }
 0xc15   :  { %v2351_v63 = vsub.f32 %v2232_v41, %v2343_v62 }
 0xc17   :  { %v2356_v1 = vmul.f32 1.442695, %v2351_v63  ;;  %v5778_v63 = vld [vmem:[%s8480_s15] ss:$0 sm:$0xff] }
 0xc18   :  { %v2435_v2 = vpop.permute.xlu1 %2434 }
 0xc19   :  { %6918 = vpow2.f32 %v2356_v1  ;;  %v2440_v3 = vsel %vm865_vm2, %v2435_v2, 0 }
 0xc1a   :  { %6382 = vmatpush3.bf16.msra.mxu1 %v2440_v3 }
 0xc1b   :  { %6393 = vmatprep.subr.bf16.mxu1 %v7356_v43 }
 0xc1c   :  { %v2349_v4 = vpop.xlane.xlu0 %2348  ;;  %v2483_v22 = vpop.permute.xlu1 %2482 }
 0xc1d   :  { %v2353_v7 = vsub.f32 %v2332_v25, %v2349_v4  ;;  %v2488_v31 = vsel %vm865_vm2, %v2483_v22, 0  ;;  %v6786_v22 = vld [vmem:[#allocation16] sm:$0xff]  }
 0xc1f   :  { %v2360_v9 = vmul.f32 1.442695, %v2353_v7 }
 0xc20   :  { %v2364_v30 = vpop.xlane.xlu0 %2363 }
 0xc21   :  { %6920 = vpow2.f32 %v2360_v9 }
 0xc22   :  { %6922 = vrcp.f32 %v2364_v30 }
 0xc23   :  { %v6919_v38 = vpop.eup %6918 }
 0xc24   :  { %v2370_v12 = vpop.xlane.xlu0 %2369  ;;  %v2365_v28 = vsel %vm813_vm3, %v6919_v38, 0.0 }
 0xc25   :  { %2366 = vadd.xlane.f32.xlu1 %v2365_v28  ;;  %6924 = vrcp.f32 %v2370_v12  ;;  %v7011_v28 = vld [vmem:[#allocation2 + $0x8] sm:$0xff] }
 0xc28   :  { %v2387_v13 = vpop.permute.xlu0 %2386 }
 0xc29   :  { %v2392_v17 = vsel %vm865_vm2, %v2387_v13, 0 }
 0xc2a   :  { %6376 = vmatpush3.bf16.msra.mxu0 %v2392_v17 }
 0xc2b   :  { %v6921_v21 = vpop.eup %6920  ;;  %6387 = vmatprep.subr.bf16.mxu0 %v7356_v43 }
 0xc2c   :  { %v6923_v56 = vpop.eup %6922  ;;  %v2371_v5 = vsel %vm813_vm3, %v6921_v21, 0.0 }
 0xc2d   :  { %v2378_v58 = vmul.f32 %v6923_v56, %v6915_v54  ;;  %2372 = vadd.xlane.f32.xlu1 %v2371_v5  ;;  %v7013_v5 = vld [vmem:[#allocation2 + $0x18] sm:$0xff] }
 0xc2f   :  { %v2382_v6 = vpack.c.bf16 %v2378_v58, %v2378_v58  ;;  %v6925_v26 = vpop.eup %6924 }
 0xc30   :  { %v2380_v8 = vmul.f32 %v6925_v26, %v6917_v60  ;;  %v6788_v26 = vld [vmem:[#allocation16 + $0x10] sm:$0xff]  }
 0xc31   :  { %6378 = vmatmul.mubr.msk.bf16.vlgmr.msra.gmra.mrb[68].mxu0 %vm813_vm3, %v2382_v6  ;;  %v6787_v6 = vld [vmem:[#allocation16 + $0x8] sm:$0xff]  }
 0xc32   :  { %6388 = vmatpush3.bf16.msra.mxu0 %v2488_v31  ;;  %6389 = vmatprep.mubr.msk.bf16.mxu0 %vm7357_vm0, %v7356_v43  ;;  %v2384_v14 = vpack.c.bf16 %v2380_v8, %v2380_v8  ;;  %v6789_v31 = vld [vmem:[#allocation16 + $0x18] sm:$0xff]  }
 0xc39   :  { %6390 = vmatmul.mubr.msk.bf16.vlgmr.msra.gmra.mrb[72].mxu0 %vm813_vm3, %v2384_v14 }
 0xc3e   :  { %2530 = vrot.lane.b32.xlu1 %v7817_v42, %s7359_s28 }
 0xcb2   :  { %v2367_v32 = vpop.xlane.xlu1 %2366 }
 0xcb3   :  { %6926 = vrcp.f32 %v2367_v32 }
 0xcba   :  { %v2373_v10 = vpop.xlane.xlu1 %2372 }
 0xcbb   :  { %6928 = vrcp.f32 %v2373_v10 }
 0xcbd   :  { %v6927_v15 = vpop.eup %6926 }
 0xcbe   :  { %v2379_v11 = vmul.f32 %v6927_v15, %v6919_v38  ;;  %v2531_v18 = vpop.permute.xlu1 %2530  ;;  %v7010_v38 = vld [vmem:[#allocation2] sm:$0xff] }
 0xcbf   :  { %v2536_v33 = vsel %vm865_vm2, %v2531_v18, 0 }
 0xcc0   :  { %v2383_v20 = vpack.c.bf16 %v2379_v11, %v2379_v11 }
 0xcc2   :  { %6384 = vmatmul.mubr.msk.bf16.vlgmr.msra.gmra.mrb[60].mxu1 %vm813_vm3, %v2383_v20 }
 0xcc3   :  { %6394 = vmatpush3.bf16.msra.mxu1 %v2536_v33  ;;  %6395 = vmatprep.mubr.msk.bf16.mxu1 %vm7357_vm0, %v7356_v43 }
 0xcc4   :  { %6399 = vmatprep.subr.bf16.mxu1 %v6784_v48 }
 0xcc5   :  { %v6929_v36 = vpop.eup %6928 }
 0xcc6   :  { %v2381_v37 = vmul.f32 %v6929_v36, %v6921_v21  ;;  %v7012_v21 = vld [vmem:[#allocation2 + $0x10] sm:$0xff] }
 0xcc8   :  { %v2385_v39 = vpack.c.bf16 %v2381_v37, %v2381_v37 }
 0xcca   :  { %6396 = vmatmul.mubr.msk.bf16.vlgmr.msra.gmra.mrb[64].mxu1 %vm813_vm3, %v2385_v39 }
 0xccb   :  { %6400 = vmatpush3.bf16.msra.mxu1 %v6784_v48  ;;  %v6794_v48 = vld [vmem:[#allocation14 + $0x10] sm:$0xff]  }
 0xccc   :  { %6401 = vmatprep.subr.bf16.mxu1 %v6785_v19 }
 0xccf   :  { %6402 = vmatpush3.bf16.msra.mxu1 %v6785_v19  ;;  %v6795_v19 = vld [vmem:[#allocation16 + $0x30] sm:$0xff]  }
 0xcd0   :  { %6427 = vmatprep.subr.bf16.mxu1 %v6786_v22 }
 0xd04   :  { %v2428_v42 = vpop.f32.mrb[68].mxu0 }
 0xd05   :  { %v6379_v29 = vpop.f32.mrb[69].mxu0 }
 0xd06   :  { %v2431_v50 = vpop.f32.mrb[70].mxu0 }
 0xd07   :  { %v6380_v51 = vpop.f32.mrb[71].mxu0 }
 0xd0c   :  { %v2524_v40 = vpop.f32.mrb[72].mxu0 }
 0xd0d   :  { %v6391_v41 = vpop.f32.mrb[73].mxu0 }
 0xd0e   :  { %v2527_v44 = vpop.f32.mrb[74].mxu0  ;;  %v6791_v41 = vld [vmem:[#allocation16 + $0x20] sm:$0xff]  }
 0xd0f   :  { %v6392_v47 = vpop.f32.mrb[75].mxu0  ;;  %v6792_v44 = vld [vmem:[#allocation14 + $0x8] sm:$0xff]  }
 0xd10   :  { %v6793_v47 = vld [vmem:[#allocation16 + $0x28] sm:$0xff]  }
 0xd95   :  { %v2476_v25 = vpop.f32.mrb[60].mxu1 }
 0xd96   :  { %v2578_v52 = vpack.c.bf16 %v2476_v25, %v2428_v42  ;;  %v6385_v53 = vpop.f32.mrb[61].mxu1  ;;  %v6796_v25 = vld [vmem:[#allocation14 + $0x18] sm:$0xff]  }
 0xd97   :  { %v2479_v54 = vpop.f32.mrb[62].mxu1  ;;  %v6798_v53 = vld [vmem:[#allocation8] sm:$0xff]  }
 0xd98   :  { %v6386_v55 = vpop.f32.mrb[63].mxu1  ;;  %6403 = vmatprep.mubr.msk.bf16.mxu1 %vm628_vm1, %v2578_v52  ;;  %v6797_v52 = vld [vmem:[#allocation16 + $0x38] sm:$0xff]   ;;  %v6799_v54 = vld [vmem:[#allocation14 + $0x20] sm:$0xff]  }
 0xd99   :  { %v6800_v55 = vld [vmem:[#allocation8 + $0x8] sm:$0xff]  }
 0xd9d   :  { %v2572_v57 = vpop.f32.mrb[64].mxu1 }
 0xd9e   :  { %v2579_v59 = vpack.c.bf16 %v2572_v57, %v2524_v40  ;;  %v6397_v60 = vpop.f32.mrb[65].mxu1  ;;  %v6790_v40 = vld [vmem:[#allocation14] sm:$0xff]   ;;  %v6801_v57 = vld [vmem:[#allocation14 + $0x28] sm:$0xff]  }
 0xd9f   :  { %v2575_v61 = vpop.f32.mrb[66].mxu1  ;;  %6407 = vmatprep.subr.bf16.mxu0 %v6790_v40  ;;  %v6803_v60 = vld [vmem:[#allocation14 + $0x30] sm:$0xff]  }
 0xda0   :  { %v6398_v62 = vpop.f32.mrb[67].mxu1  ;;  %6404 = vmatmul.mubr.msk.bf16.vlgmr.msra.gmra.mrb[36].mxu1 %vm628_vm1, %v2579_v59  ;;  %6408 = vmatpush3.bf16.msra.mxu0 %v6790_v40  ;;  %v6802_v59 = vld [vmem:[#allocation8 + $0x10] sm:$0xff]   ;;  %v6804_v61 = vld [vmem:[#allocation8 + $0x18] sm:$0xff]   ;;  %v6807_v40 = vld [vmem:[#allocation17 + $0x8] sm:$0xff]  }
 0xda1   :  { %6428 = vmatpush3.bf16.msra.mxu1 %v6786_v22  ;;  %6409 = vmatprep.subr.bf16.mxu0 %v6792_v44  ;;  %v6805_v62 = vld [vmem:[#allocation14 + $0x38] sm:$0xff]   ;;  %v5780_v22 = vld [vmem:[%s8488_s23] ss:$0 sm:$0xff] }
 0xda2   :  { %6429 = vmatprep.subr.bf16.mxu1 %v6787_v6  ;;  %6443 = vmatprep.mubr.bf16.mxu1 %v6798_v53 }
 0xda4   :  { %6410 = vmatpush3.bf16.msra.mxu0 %v6792_v44  ;;  %v6815_v44 = vld [vmem:[#allocation5 + $0x8] sm:$0xff]  }
 0xda5   :  { %6430 = vmatpush3.bf16.msra.mxu1 %v6787_v6  ;;  %6411 = vmatprep.subr.bf16.mxu0 %v6794_v48 }
 0xda6   :  { %6431 = vmatprep.subr.bf16.mxu1 %v6788_v26 }
 0xda8   :  { %6412 = vmatpush3.bf16.msra.mxu0 %v6794_v48  ;;  %v6817_v48 = vld [vmem:[#allocation5 + $0x18] sm:$0xff]  }
 0xda9   :  { %6432 = vmatpush3.bf16.msra.mxu1 %v6788_v26  ;;  %6413 = vmatprep.subr.bf16.mxu0 %v6796_v25 }
 0xdaa   :  { %6433 = vmatprep.subr.bf16.mxu1 %v6789_v31 }
 0xdac   :  { %6414 = vmatpush3.bf16.msra.mxu0 %v6796_v25 }
 0xdad   :  { %6434 = vmatpush3.bf16.msra.mxu1 %v6789_v31  ;;  %6415 = vmatprep.subr.bf16.mxu0 %v6799_v54 }
 0xdae   :  { %6435 = vmatprep.subr.bf16.mxu1 %v6791_v41 }
 0xdb0   :  { %6416 = vmatpush3.bf16.msra.mxu0 %v6799_v54 }
 0xdb1   :  { %6436 = vmatpush3.bf16.msra.mxu1 %v6791_v41  ;;  %6417 = vmatprep.subr.bf16.mxu0 %v6801_v57  ;;  %v6810_v41 = vld [vmem:[#allocation17 + $0x20] sm:$0xff]  }
 0xdb2   :  { %6437 = vmatprep.subr.bf16.mxu1 %v6793_v47 }
 0xdb4   :  { %6418 = vmatpush3.bf16.msra.mxu0 %v6801_v57 }
 0xdb5   :  { %6438 = vmatpush3.bf16.msra.mxu1 %v6793_v47  ;;  %6419 = vmatprep.subr.bf16.mxu0 %v6803_v60  ;;  %v6816_v47 = vld [vmem:[#allocation5 + $0x10] sm:$0xff]  }
 0xdb6   :  { %6439 = vmatprep.subr.bf16.mxu1 %v6795_v19 }
 0xdb8   :  { %6420 = vmatpush3.bf16.msra.mxu0 %v6803_v60 }
 0xdb9   :  { %6440 = vmatpush3.bf16.msra.mxu1 %v6795_v19  ;;  %6421 = vmatprep.subr.bf16.mxu0 %v6805_v62  ;;  %v5794_v19 = vld [vmem:[%s8482_s17] ss:$0 sm:$0xff] }
 0xdba   :  { %6441 = vmatprep.subr.bf16.mxu1 %v6797_v52 }
 0xdbc   :  { %6422 = vmatpush3.bf16.msra.mxu0 %v6805_v62 }
 0xdbd   :  { %6442 = vmatpush3.bf16.msra.mxu1 %v6797_v52 }
 0xdbe   :  { %6475 = vmatprep.subr.bf16.mxu1 %v7356_v43 }
 0xdc0   :  { %6444 = vmatmul.mubr.bf16.vlgmr.msra.gmra.mrb[68].mxu1 %v6800_v55 }
 0xdc1   :  { %6447 = vmatprep.mubr.bf16.mxu1 %v6802_v59 }
 0xdc8   :  { %6448 = vmatmul.mubr.bf16.gmra.mrb[72].mxu1 %v6804_v61 }
 0xdc9   :  { %6477 = vmatprep.mubr.msk.bf16.mxu1 %vm7357_vm0, %v7356_v43 }
 0xe73   :  { %v6405_v1 = vpop.f32.mrb[36].mxu1 }
 0xe74   :  { %v2632_v2 = vpop.f32.mrb[37].mxu1  ;;  %v2660_v9 = vadd.f32 %v6405_v1, %v5778_v63 }
 0xe75   :  { %v2658_v3 = vadd.f32 %v5778_v63, %v2632_v2  ;;  %v6406_v4 = vpop.f32.mrb[38].mxu1 }
 0xe76   :  { %v2635_v7 = vpop.f32.mrb[39].mxu1  ;;  %v2661_v17 = vadd.f32 %v6406_v4, %v5778_v63  ;;  %v2664_v56 = vadd.f32 %v7012_v21, %v2660_v9 }
 0xe77   :  { %v2659_v30 = vadd.f32 %v5778_v63, %v2635_v7  ;;  %v2662_v12 = vadd.f32 %v7010_v38, %v2658_v3  ;;  %v6806_v63 = vld [vmem:[#allocation17] sm:$0xff]  }
 0xe78   :  { %v2665_v58 = vadd.f32 %v7013_v5, %v2661_v17  ;;  %6451 = vmatprep.subr.bf16.mxu0 %v6806_v63 }
 0xe79   :  { %2668 = vadd.xlane.f32.xlu0 %v2662_v12  ;;  %v2663_v13 = vadd.f32 %v7011_v28, %v2659_v30 }
 0xe7b   :  { %2670 = vadd.xlane.f32.xlu1 %v2663_v13 }
 0xe7d   :  { %2672 = vadd.xlane.f32.xlu0 %v2664_v56 }
 0xe81   :  { %2674 = vadd.xlane.f32.xlu0 %v2665_v58 }
 0xe93   :  { %v6445_v25 = vpop.f32.mrb[68].mxu1 }
 0xe94   :  { %v3017_v52 = vadd.f32 %v6445_v25, %v5794_v19  ;;  %v3008_v53 = vpop.f32.mrb[69].mxu1 }
 0xe95   :  { %v3009_v54 = vadd.f32 %v5794_v19, %v3008_v53  ;;  %v6446_v55 = vpop.f32.mrb[70].mxu1 }
 0xe96   :  { %v3020_v57 = vadd.f32 %v6446_v55, %v5794_v19  ;;  %v3011_v59 = vpop.f32.mrb[71].mxu1 }
 0xe97   :  { %v3012_v60 = vadd.f32 %v5794_v19, %v3011_v59 }
 0xe98   :  { %v8115_v61 = vpack.c.bf16 %v3020_v57, %v3017_v52 }
 0xe99   :  { %v8117_v62 = vpack.c.bf16 %v3012_v60, %v3009_v54 }
 0xf06   :  { %v2669_v8 = vpop.xlane.xlu0 %2668 }
 0xf07   :  { %v2677_v14 = vmul.f32 0.0078125, %v2669_v8 }
 0xf08   :  { %v2671_v32 = vpop.xlane.xlu1 %2670 }
 0xf09   :  { %v8060_v10 = vsub.f32 %v2662_v12, %v2677_v14  ;;  %v2678_v15 = vmul.f32 0.0078125, %v2671_v32 }
 0xf0a   :  { %v2673_v11 = vpop.xlane.xlu0 %2672 }
 0xf0b   :  { %v8062_v18 = vsub.f32 %v2663_v13, %v2678_v15  ;;  %v2679_v20 = vmul.f32 0.0078125, %v2673_v11  ;;  %v2685_v33 = vmul.f32 %v8060_v10, %v8060_v10 }
 0xf0d   :  { %v8066_v36 = vsub.f32 %v2664_v56, %v2679_v20  ;;  %2689 = vadd.xlane.f32.xlu0 %v2685_v33  ;;  %v2686_v37 = vmul.f32 %v8062_v18, %v8062_v18  ;;  %v5779_v56 = vld [vmem:[%s8487_s22] ss:$0 sm:$0xff] }
 0xf0e   :  { %v2675_v39 = vpop.xlane.xlu0 %2674 }
 0xf0f   :  { %v2680_v42 = vmul.f32 0.0078125, %v2675_v39  ;;  %2691 = vadd.xlane.f32.xlu1 %v2686_v37  ;;  %v2687_v29 = vmul.f32 %v8066_v36, %v8066_v36 }
 0xf11   :  { %v8072_v50 = vsub.f32 %v2665_v58, %v2680_v42  ;;  %2693 = vadd.xlane.f32.xlu0 %v2687_v29 }
 0xf13   :  { %v2688_v51 = vmul.f32 %v8072_v50, %v8072_v50 }
 0xf15   :  { %2695 = vadd.xlane.f32.xlu1 %v2688_v51 }
 0xf9a   :  { %v2690_v1 = vpop.xlane.xlu0 %2689 }
 0xf9b   :  { %v2697_v2 = vmul.f32 0.0078125, %v2690_v1  ;;  %v3235_v1 = vsel %vm628_vm1, %v8117_v62, 0 }
 0xf9c   :  { %v2692_v3 = vpop.xlane.xlu1 %2691  ;;  %6476 = vmatpush3.bf16.xpose.msra.mxu1 %v3235_v1 }
 0xf9d   :  { %v2701_v4 = vadd.f32 1e-05, %v2697_v2  ;;  %v2698_v7 = vmul.f32 0.0078125, %v2692_v3  ;;  %6481 = vmatprep.subr.bf16.mxu1 %v7356_v43 }
 0xf9e   :  { %v2694_v9 = vpop.xlane.xlu0 %2693 }
 0xf9f   :  { %6930 = vrsqrt.f32 %v2701_v4  ;;  %v2702_v30 = vadd.f32 1e-05, %v2698_v7  ;;  %v2699_v38 = vmul.f32 0.0078125, %v2694_v9 }
 0xfa1   :  { %6932 = vrsqrt.f32 %v2702_v30  ;;  %v2703_v12 = vadd.f32 1e-05, %v2699_v38 }
 0xfa2   :  { %v2696_v28 = vpop.xlane.xlu1 %2695 }
 0xfa3   :  { %6934 = vrsqrt.f32 %v2703_v12  ;;  %v2700_v13 = vmul.f32 0.0078125, %v2696_v28 }
 0xfa5   :  { %v2704_v17 = vadd.f32 1e-05, %v2700_v13 }
 0xfa7   :  { %6936 = vrsqrt.f32 %v2704_v17  ;;  %v5781_v17 = vld [vmem:[%s8481_s16] ss:$0 sm:$0xff] }
 0xfa9   :  { %v6931_v21 = vpop.eup %6930 }
 0xfaa   :  { %v2709_v5 = vmul.f32 %v6931_v21, %v8060_v10 }
 0xfab   :  { %v6933_v58 = vpop.eup %6932 }
 0xfac   :  { %v2710_v6 = vmul.f32 %v6933_v58, %v8062_v18  ;;  %v2719_v26 = vmul.f32 %v5779_v56, %v2709_v5 }
 0xfad   :  { %v6935_v31 = vpop.eup %6934 }
 0xfae   :  { %v2711_v8 = vmul.f32 %v6935_v31, %v8066_v36  ;;  %v2720_v14 = vmul.f32 %v5779_v56, %v2710_v6  ;;  %v8088_v32 = vadd.f32 %v5780_v22, %v2719_v26 }
 0xfb0   :  { %v8090_v15 = vadd.f32 %v5780_v22, %v2720_v14  ;;  %v2721_v11 = vmul.f32 %v5779_v56, %v2711_v8  ;;  %v2733_v33 = vadd.f32 %v5924_v23, %v8088_v32  ;;  %v6814_v23 = vld [vmem:[#allocation5] sm:$0xff]   ;;  %v3281_v8 = vsel %vm628_vm1, %v8115_v61, 0 }
 0xfb1   :  { %v6937_v20 = vpop.eup %6936 }
 0xfb2   :  { %v2712_v10 = vmul.f32 %v6937_v20, %v8072_v50  ;;  %v2734_v18 = vadd.f32 %v5925_v24, %v8090_v15  ;;  %v8099_v36 = vadd.f32 %v5780_v22, %v2721_v11  ;;  %v6809_v24 = vld [vmem:[#allocation17 + $0x18] sm:$0xff]  }
 0xfb4   :  { %v2737_v37 = vpack.c.bf16 %v2734_v18, %v2733_v33  ;;  %v2722_v39 = vmul.f32 %v5779_v56, %v2712_v10  ;;  %v2735_v29 = vadd.f32 %v5928_v34, %v8099_v36  ;;  %v6811_v34 = vld [vmem:[#allocation17 + $0x28] sm:$0xff]   ;;  %v5807_v18 = vld [vmem:[%s8483_s18] ss:$0 sm:$0xff] }
 0xfb6   :  { %6423 = vmatprep.mubr.bf16.mxu0 %v2737_v37  ;;  %v8101_v42 = vadd.f32 %v5780_v22, %v2722_v39 }
 0xfb8   :  { %v2736_v50 = vadd.f32 %v5929_v35, %v8101_v42  ;;  %v6813_v35 = vld [vmem:[#allocation17 + $0x38] sm:$0xff]  }
 0xfba   :  { %v2738_v51 = vpack.c.bf16 %v2736_v50, %v2735_v29 }
 0xfbc   :  { %6424 = vmatmul.mubr.bf16.vlgmr.msra.gmra.mrb[76].mxu0 %v2738_v51 }
 0xfbd   :  { %6452 = vmatpush3.bf16.msra.mxu0 %v6806_v63  ;;  %6467 = vmatprep.mubr.bf16.mxu0 %v6814_v23  ;;  %v6449_v63 = vpop.f32.mrb[72].mxu1 }
 0xfbe   :  { %6453 = vmatprep.subr.bf16.mxu0 %v6807_v40  ;;  %v3033_v2 = vadd.f32 %v6449_v63, %v5794_v19  ;;  %v3024_v3 = vpop.f32.mrb[73].mxu1 }
 0xfbf   :  { %v3025_v4 = vadd.f32 %v5794_v19, %v3024_v3  ;;  %v6450_v7 = vpop.f32.mrb[74].mxu1 }
 0xfc0   :  { %v3036_v9 = vadd.f32 %v6450_v7, %v5794_v19  ;;  %v3027_v12 = vpop.f32.mrb[75].mxu1 }
 0xfc1   :  { %6454 = vmatpush3.bf16.msra.mxu0 %v6807_v40  ;;  %v3028_v28 = vadd.f32 %v5794_v19, %v3027_v12 }
 0xfc2   :  { %6455 = vmatprep.subr.bf16.mxu0 %v6808_v16  ;;  %v8122_v30 = vpack.c.bf16 %v3036_v9, %v3033_v2 }
 0xfc3   :  { %v8127_v13 = vpack.c.bf16 %v3028_v28, %v3025_v4 }
 0xfc4   :  { %v3373_v38 = vsel %vm628_vm1, %v8122_v30, 0 }
 0xfc5   :  { %6456 = vmatpush3.bf16.msra.mxu0 %v6808_v16  ;;  %v3327_v20 = vsel %vm628_vm1, %v8127_v13, 0 }
 0xfc6   :  { %6457 = vmatprep.subr.bf16.mxu0 %v6809_v24 }
 0xfc9   :  { %6458 = vmatpush3.bf16.msra.mxu0 %v6809_v24 }
 0xfca   :  { %6459 = vmatprep.subr.bf16.mxu0 %v6810_v41 }
 0xfcd   :  { %6460 = vmatpush3.bf16.msra.mxu0 %v6810_v41 }
 0xfce   :  { %6461 = vmatprep.subr.bf16.mxu0 %v6811_v34 }
 0xfd1   :  { %6462 = vmatpush3.bf16.msra.mxu0 %v6811_v34 }
 0xfd2   :  { %6463 = vmatprep.subr.bf16.mxu0 %v6812_v27 }
 0xfd5   :  { %6464 = vmatpush3.bf16.msra.mxu0 %v6812_v27 }
 0xfd6   :  { %6465 = vmatprep.subr.bf16.mxu0 %v6813_v35 }
 0xfd9   :  { %6466 = vmatpush3.bf16.msra.mxu0 %v6813_v35 }
 0xfda   :  { %6493 = vmatprep.subr.bf16.mxu0 %v7356_v43 }
 0xfdc   :  { %6468 = vmatmul.mubr.bf16.vlgmr.msra.gmra.mrb[80].mxu0 %v6815_v44 }
 0xfdd   :  { %6471 = vmatprep.mubr.bf16.mxu0 %v6816_v47 }
 0xfe2   :  { %6494 = vmatpush3.bf16.xpose.msra.mxu0 %v3373_v38 }
 0xfe3   :  { %6505 = vmatprep.subr.bf16.mxu0 %v7356_v43 }
 0xfe4   :  { %6472 = vmatmul.mubr.bf16.gmra.mrb[84].mxu0 %v6817_v48 }
 0xfe5   :  { %6495 = vmatprep.mubr.msk.bf16.mxu0 %vm7357_vm0, %v7356_v43 }
0x108f   :  { %v6425_v21 = vpop.f32.mrb[76].mxu0 }
0x1090   :  { %v2844_v56 = vpop.f32.mrb[77].mxu0  ;;  %v2853_v10 = vadd.f32 %v6425_v21, %v5781_v17 }
0x1091   :  { %v2845_v5 = vadd.f32 %v5781_v17, %v2844_v56  ;;  %v6426_v58 = vpop.f32.mrb[78].mxu0 }
0x1092   :  { %v2856_v22 = vadd.f32 %v6426_v58, %v5781_v17  ;;  %v2847_v6 = vpop.f32.mrb[79].mxu0  ;;  %v8156_v33 = vpack.c.bf16 %v2853_v10, %v2853_v10 }
0x1093   :  { %v8132_v26 = vpack.c.bf16 %v2845_v5, %v2845_v5  ;;  %v2848_v14 = vadd.f32 %v5781_v17, %v2847_v6 }
0x1094   :  { %v8134_v31 = vpack.c.bf16 %v2856_v22, %v2856_v22 }
0x1095   :  { %6478 = vmatmul.mubr.msk.bf16.vlgmr.msra.gmra.mrb[76].mxu1 %vm628_vm1, %v8132_v26  ;;  %v8147_v11 = vpack.c.bf16 %v2848_v14, %v2848_v14 }
0x1096   :  { %6482 = vmatpush3.bf16.xpose.msra.mxu1 %v3281_v8  ;;  %6496 = vmatmul.mubr.msk.bf16.vlgmr.msra.gmra.mrb[88].mxu0 %vm628_vm1, %v8134_v31 }
0x1097   :  { %6483 = vmatprep.mubr.msk.bf16.mxu1 %vm7357_vm0, %v7356_v43  ;;  %6487 = vmatprep.subr.bf16.mxu1 %v7356_v43 }
0x1098   :  { %6507 = vmatprep.mubr.msk.bf16.mxu0 %vm7357_vm0, %v7356_v43 }
0x109d   :  { %6484 = vmatmul.mubr.msk.bf16.vlgmr.msra.gmra.mrb[80].mxu1 %vm628_vm1, %v8147_v11 }
0x109e   :  { %6488 = vmatpush3.bf16.xpose.msra.mxu1 %v3327_v20  ;;  %6489 = vmatprep.mubr.msk.bf16.mxu1 %vm7357_vm0, %v7356_v43 }
0x109f   :  { %6499 = vmatprep.subr.bf16.mxu1 %v7356_v43 }
0x10a5   :  { %6490 = vmatmul.mubr.msk.bf16.vlgmr.msra.gmra.mrb[84].mxu1 %vm628_vm1, %v8156_v33 }
0x10a6   :  { %6501 = vmatprep.mubr.msk.bf16.mxu1 %vm7357_vm0, %v7356_v43 }
0x10af   :  { %v6469_v37 = vpop.f32.mrb[80].mxu0 }
0x10b0   :  { %v3189_v39 = vadd.f32 %v6469_v37, %v5807_v18  ;;  %v3180_v29 = vpop.f32.mrb[81].mxu0 }
0x10b1   :  { %v3181_v50 = vadd.f32 %v5807_v18, %v3180_v29  ;;  %v6470_v23 = vpop.f32.mrb[82].mxu0 }
0x10b2   :  { %v3192_v51 = vadd.f32 %v6470_v23, %v5807_v18  ;;  %v3183_v40 = vpop.f32.mrb[83].mxu0 }
0x10b3   :  { %v3184_v16 = vadd.f32 %v5807_v18, %v3183_v40 }
0x10b4   :  { %v8165_v24 = vpack.c.bf16 %v3192_v51, %v3189_v39 }
0x10b5   :  { %v8167_v41 = vpack.c.bf16 %v3184_v16, %v3181_v50 }
0x10b6   :  { %6506 = vmatpush3.bf16.msra.mxu0 %v8165_v24 }
0x10b7   :  { %v6473_v34 = vpop.f32.mrb[84].mxu0  ;;  %6500 = vmatpush3.bf16.msra.mxu1 %v8167_v41  ;;  %6517 = vmatprep.subr.bf16.mxu0 %v7356_v43 }
0x10b8   :  { %v3205_v27 = vadd.f32 %v6473_v34, %v5807_v18  ;;  %v3196_v35 = vpop.f32.mrb[85].mxu0  ;;  %6511 = vmatprep.subr.bf16.mxu1 %v7356_v43 }
0x10b9   :  { %v3197_v44 = vadd.f32 %v5807_v18, %v3196_v35  ;;  %v6474_v47 = vpop.f32.mrb[86].mxu0 }
0x10ba   :  { %v3208_v48 = vadd.f32 %v6474_v47, %v5807_v18  ;;  %v3199_v19 = vpop.f32.mrb[87].mxu0 }
0x10bb   :  { %v3200_v25 = vadd.f32 %v5807_v18, %v3199_v19 }
0x10bc   :  { %v8173_v52 = vpack.c.bf16 %v3208_v48, %v3205_v27 }
0x10bd   :  { %v8175_v53 = vpack.c.bf16 %v3200_v25, %v3197_v44 }
0x1168   :  { %v3271_v54 = vpop.f32.mrb[76].mxu1 }
0x1169   :  { %v6479_v55 = vpop.f32.mrb[77].mxu1  ;;  %v3409_v57 = vpop.f32.mrb[88].mxu0  ;;  %v3416_v59 = vsel %vm3415_vm4, %v3271_v54, -inf }
0x116a   :  { %v6497_v60 = vpop.f32.mrb[89].mxu0  ;;  %3417 = vmax.xlane.f32.xlu0 %v3416_v59  ;;  %v3274_v63 = vpop.f32.mrb[78].mxu1  ;;  %v3425_v28 = vsel %vm3415_vm4, %v3409_v57, -inf }
0x116b   :  { %v6480_v1 = vpop.f32.mrb[79].mxu1  ;;  %v3412_v2 = vpop.f32.mrb[90].mxu0 }
0x116c   :  { %v6498_v3 = vpop.f32.mrb[91].mxu0 }
0x1170   :  { %v3317_v4 = vpop.f32.mrb[80].mxu1 }
0x1171   :  { %v6485_v7 = vpop.f32.mrb[81].mxu1  ;;  %v3419_v9 = vsel %vm3415_vm4, %v3317_v4, -inf }
0x1172   :  { %3420 = vmax.xlane.f32.xlu1 %v3419_v9  ;;  %v3320_v38 = vpop.f32.mrb[82].mxu1 }
0x1173   :  { %v6486_v12 = vpop.f32.mrb[83].mxu1 }
0x1176   :  { %3426 = vmax.xlane.f32.xlu1 %v3425_v28 }
0x1178   :  { %v3363_v17 = vpop.f32.mrb[84].mxu1 }
0x1179   :  { %v6491_v21 = vpop.f32.mrb[85].mxu1  ;;  %v3422_v56 = vsel %vm3415_vm4, %v3363_v17, -inf }
0x117a   :  { %3423 = vmax.xlane.f32.xlu0 %v3422_v56  ;;  %v3366_v5 = vpop.f32.mrb[86].mxu1 }
0x117b   :  { %v6492_v58 = vpop.f32.mrb[87].mxu1 }
0x11f7   :  { %v3418_v22 = vpop.xlane.xlu0 %3417 }
0x11f8   :  { %v3428_v6 = vsub.f32 %v3271_v54, %v3418_v22 }
0x11fa   :  { %v3432_v8 = vmul.f32 1.442695, %v3428_v6 }
0x11fc   :  { %6938 = vpow2.f32 %v3432_v8 }
0x11ff   :  { %v3421_v14 = vpop.xlane.xlu1 %3420 }
0x1200   :  { %v3429_v20 = vsub.f32 %v3317_v4, %v3421_v14 }
0x1202   :  { %v3434_v39 = vmul.f32 1.442695, %v3429_v20 }
0x1203   :  { %v3427_v10 = vpop.xlane.xlu1 %3426 }
0x1204   :  { %v3431_v18 = vsub.f32 %v3409_v57, %v3427_v10 }
0x1206   :  { %v6939_v37 = vpop.eup %6938  ;;  %v3438_v29 = vmul.f32 1.442695, %v3431_v18 }
0x1207   :  { %v3424_v50 = vpop.xlane.xlu0 %3423  ;;  %v3440_v23 = vsel %vm3415_vm4, %v6939_v37, 0.0 }
0x1208   :  { %6940 = vpow2.f32 %v3438_v29  ;;  %v3430_v51 = vsub.f32 %v3363_v17, %v3424_v50  ;;  %3441 = vadd.xlane.f32.xlu0 %v3440_v23 }
0x1209   :  { %6942 = vpow2.f32 %v3434_v39 }
0x120a   :  { %v3436_v40 = vmul.f32 1.442695, %v3430_v51 }
0x120c   :  { %6944 = vpow2.f32 %v3436_v40 }
0x1212   :  { %v6941_v16 = vpop.eup %6940 }
0x1213   :  { %v3449_v34 = vsel %vm3415_vm4, %v6941_v16, 0.0  ;;  %v6943_v27 = vpop.eup %6942 }
0x1214   :  { %3450 = vadd.xlane.f32.xlu1 %v3449_v34  ;;  %v3443_v44 = vsel %vm3415_vm4, %v6943_v27, 0.0 }
0x1216   :  { %v6945_v35 = vpop.eup %6944 }
0x1217   :  { %v3446_v47 = vsel %vm3415_vm4, %v6945_v35, 0.0 }
0x1218   :  { %3444 = vadd.xlane.f32.xlu1 %v3443_v44  ;;  %3447 = vadd.xlane.f32.xlu0 %v3446_v47 }
0x1229   :  { %3692 = vrot.lane.b32.xlu1 %v8115_v61, %s7358_s14 }
0x122d   :  { %3638 = vrot.lane.b32.xlu1 %v8132_v26, %s7358_s14 }
0x122e   :  { %3641 = vrot.lane.b32.xlu0 %v8117_v62, %s7358_s14 }
0x1231   :  { %3689 = vrot.lane.b32.xlu1 %v8147_v11, %s7358_s14 }
0x1232   :  { %3743 = vrot.lane.b32.xlu0 %v8127_v13, %s7358_s14 }
0x1235   :  { %3794 = vrot.lane.b32.xlu1 %v8122_v30, %s7358_s14 }
0x1236   :  { %3740 = vrot.lane.b32.xlu0 %v8156_v33, %s7358_s14 }
0x1239   :  { %3791 = vrot.lane.b32.xlu1 %v8134_v31, %s7358_s14 }
0x1295   :  { %v3442_v48 = vpop.xlane.xlu0 %3441 }
0x1296   :  { %6946 = vrcp.f32 %v3442_v48 }
0x12a0   :  { %v6947_v19 = vpop.eup %6946 }
0x12a1   :  { %v3456_v25 = vmul.f32 %v6947_v19, %v6939_v37  ;;  %v3451_v54 = vpop.xlane.xlu1 %3450 }
0x12a3   :  { %v3460_v55 = vpack.c.bf16 %v3456_v25, %v3456_v25 }
0x12a5   :  { %v3445_v57 = vpop.xlane.xlu1 %3444  ;;  %6502 = vmatmul.mubr.msk.bf16.vlgmr.msra.gmra.mrb[88].mxu1 %vm3415_vm4, %v3460_v55  ;;  %v3448_v59 = vpop.xlane.xlu0 %3447 }
0x12a6   :  { %6948 = vrcp.f32 %v3445_v57  ;;  %6512 = vmatpush3.bf16.msra.mxu1 %v8175_v53  ;;  %6513 = vmatprep.mubr.msk.bf16.mxu1 %vm7357_vm0, %v7356_v43 }
0x12a7   :  { %6950 = vrcp.f32 %v3448_v59  ;;  %6523 = vmatprep.subr.bf16.mxu1 %v7356_v43 }
0x12a8   :  { %6952 = vrcp.f32 %v3451_v54 }
0x12a9   :  { %v3693_v2 = vpop.permute.xlu1 %3692  ;;  %v3642_v4 = vpop.permute.xlu0 %3641 }
0x12aa   :  { %v3647_v12 = vsel %vm628_vm1, %v3642_v4, 0  ;;  %v3698_v58 = vsel %vm628_vm1, %v3693_v2, 0 }
0x12ad   :  { %v3639_v17 = vpop.permute.xlu1 %3638  ;;  %v3744_v21 = vpop.permute.xlu0 %3743 }
0x12ae   :  { %v3749_v22 = vsel %vm628_vm1, %v3744_v21, 0 }
0x12b0   :  { %v6949_v60 = vpop.eup %6948 }
0x12b1   :  { %v6951_v63 = vpop.eup %6950  ;;  %v3457_v1 = vmul.f32 %v6949_v60, %v6943_v27  ;;  %v3690_v5 = vpop.permute.xlu1 %3689 }
0x12b2   :  { %v3458_v3 = vmul.f32 %v6951_v63, %v6945_v35  ;;  %v6953_v9 = vpop.eup %6952  ;;  %v3741_v8 = vpop.permute.xlu0 %3740 }
0x12b3   :  { %v3461_v7 = vpack.c.bf16 %v3457_v1, %v3457_v1  ;;  %v3459_v28 = vmul.f32 %v6953_v9, %v6941_v16 }
0x12b4   :  { %v3462_v38 = vpack.c.bf16 %v3458_v3, %v3458_v3 }
0x12b5   :  { %6508 = vmatmul.mubr.msk.bf16.vlgmr.msra.gmra.mrb[92].mxu0 %vm3415_vm4, %v3461_v7  ;;  %v3463_v56 = vpack.c.bf16 %v3459_v28, %v3459_v28  ;;  %v3795_v6 = vpop.permute.xlu1 %3794 }
0x12b6   :  { %6518 = vmatpush3.bf16.msra.mxu0 %v8173_v52  ;;  %6514 = vmatmul.mubr.msk.bf16.vlgmr.msra.gmra.mrb[92].mxu1 %vm3415_vm4, %v3462_v38  ;;  %v3800_v14 = vsel %vm628_vm1, %v3795_v6, 0 }
0x12b7   :  { %6524 = vmatpush3.bf16.xpose.msra.mxu1 %v3647_v12  ;;  %6519 = vmatprep.mubr.msk.bf16.mxu0 %vm7357_vm0, %v7356_v43 }
0x12b8   :  { %6525 = vmatprep.mubr.msk.bf16.mxu1 %vm7357_vm0, %v7356_v43  ;;  %6535 = vmatprep.subr.bf16.mxu1 %v7356_v43 }
0x12b9   :  { %6529 = vmatprep.subr.bf16.mxu0 %v7356_v43  ;;  %v3792_v20 = vpop.permute.xlu1 %3791 }
0x12bd   :  { %6520 = vmatmul.mubr.msk.bf16.vlgmr.msra.gmra.mrb[96].mxu0 %vm3415_vm4, %v3463_v56 }
0x12be   :  { %6526 = vmatmul.mubr.msk.bf16.vlgmr.msra.gmra.mrb[96].mxu1 %vm628_vm1, %v3639_v17  ;;  %6531 = vmatprep.mubr.msk.bf16.mxu0 %vm7357_vm0, %v7356_v43 }
0x12bf   :  { %6536 = vmatpush3.bf16.xpose.msra.mxu1 %v3749_v22  ;;  %6530 = vmatpush3.bf16.xpose.msra.mxu0 %v3698_v58 }
0x12c0   :  { %6537 = vmatprep.mubr.msk.bf16.mxu1 %vm7357_vm0, %v7356_v43  ;;  %6541 = vmatprep.subr.bf16.mxu0 %v7356_v43 }
0x12c1   :  { %6547 = vmatprep.subr.bf16.mxu1 %v7356_v43 }
0x12c6   :  { %6532 = vmatmul.mubr.msk.bf16.vlgmr.msra.gmra.mrb[100].mxu0 %vm628_vm1, %v3690_v5  ;;  %6538 = vmatmul.mubr.msk.bf16.vlgmr.msra.gmra.mrb[100].mxu1 %vm628_vm1, %v3741_v8 }
0x12c7   :  { %6542 = vmatpush3.bf16.xpose.msra.mxu0 %v3800_v14  ;;  %6543 = vmatprep.mubr.msk.bf16.mxu0 %vm7357_vm0, %v7356_v43 }
0x12c8   :  { %6553 = vmatprep.subr.bf16.mxu0 %v7356_v43  ;;  %6549 = vmatprep.mubr.msk.bf16.mxu1 %vm7357_vm0, %v7356_v43 }
0x12ce   :  { %6544 = vmatmul.mubr.msk.bf16.vlgmr.msra.gmra.mrb[104].mxu0 %vm628_vm1, %v3792_v20 }
0x12cf   :  { %6555 = vmatprep.mubr.msk.bf16.mxu0 %vm7357_vm0, %v7356_v43 }
0x1378   :  { %v8237_v10 = vpop.f32.mrb[88].mxu1 }
0x1379   :  { %v6503_v18 = vpop.f32.mrb[89].mxu1 }
0x137a   :  { %v3504_v37 = vpop.f32.mrb[90].mxu1 }
0x137b   :  { %v6504_v39 = vpop.f32.mrb[91].mxu1 }
0x1388   :  { %v8239_v29 = vpop.f32.mrb[92].mxu0 }
0x1389   :  { %v3636_v50 = vpack.c.bf16 %v8239_v29, %v8237_v10  ;;  %v8243_v23 = vpop.f32.mrb[92].mxu1  ;;  %v6509_v51 = vpop.f32.mrb[93].mxu0 }
0x138a   :  { %v6515_v40 = vpop.f32.mrb[93].mxu1  ;;  %v3547_v16 = vpop.f32.mrb[94].mxu0 }
0x138b   :  { %v3590_v34 = vpop.f32.mrb[94].mxu1  ;;  %v6510_v27 = vpop.f32.mrb[95].mxu0 }
0x138c   :  { %v6516_v35 = vpop.f32.mrb[95].mxu1 }
0x1390   :  { %v8245_v44 = vpop.f32.mrb[96].mxu0 }
0x1391   :  { %v3637_v47 = vpack.c.bf16 %v8245_v44, %v8243_v23  ;;  %v3683_v48 = vpop.f32.mrb[96].mxu1  ;;  %v6521_v19 = vpop.f32.mrb[97].mxu0 }
0x1392   :  { %v6527_v25 = vpop.f32.mrb[97].mxu1  ;;  %v3633_v54 = vpop.f32.mrb[98].mxu0  ;;  %v3842_v55 = vsel %vm3415_vm4, %v3683_v48, -inf }
0x1393   :  { %3843 = vmax.xlane.f32.xlu0 %v3842_v55  ;;  %v3686_v57 = vpop.f32.mrb[98].mxu1  ;;  %v6522_v59 = vpop.f32.mrb[99].mxu0 }
0x1394   :  { %v6528_v60 = vpop.f32.mrb[99].mxu1 }
0x1399   :  { %v3734_v63 = vpop.f32.mrb[100].mxu0  ;;  %v3785_v1 = vpop.f32.mrb[100].mxu1 }
0x139a   :  { %v6533_v2 = vpop.f32.mrb[101].mxu0  ;;  %v6539_v3 = vpop.f32.mrb[101].mxu1  ;;  %v3845_v4 = vsel %vm3415_vm4, %v3734_v63, -inf  ;;  %v3848_v7 = vsel %vm3415_vm4, %v3785_v1, -inf }
0x139b   :  { %3846 = vmax.xlane.f32.xlu1 %v3845_v4  ;;  %v3737_v9 = vpop.f32.mrb[102].mxu0  ;;  %3849 = vmax.xlane.f32.xlu0 %v3848_v7  ;;  %v3788_v38 = vpop.f32.mrb[102].mxu1 }
0x139c   :  { %v6534_v12 = vpop.f32.mrb[103].mxu0  ;;  %v6540_v28 = vpop.f32.mrb[103].mxu1 }
0x13a1   :  { %v3836_v17 = vpop.f32.mrb[104].mxu0 }
0x13a2   :  { %v6545_v21 = vpop.f32.mrb[105].mxu0  ;;  %v3851_v56 = vsel %vm3415_vm4, %v3836_v17, -inf }
0x13a3   :  { %v3839_v5 = vpop.f32.mrb[106].mxu0  ;;  %3852 = vmax.xlane.f32.xlu0 %v3851_v56 }
0x13a4   :  { %v6546_v58 = vpop.f32.mrb[107].mxu0 }
0x1420   :  { %v3844_v22 = vpop.xlane.xlu0 %3843 }
0x1421   :  { %v3854_v6 = vsub.f32 %v3683_v48, %v3844_v22 }
0x1423   :  { %v3858_v8 = vmul.f32 1.442695, %v3854_v6 }
0x1425   :  { %6954 = vpow2.f32 %v3858_v8 }
0x1428   :  { %v3847_v14 = vpop.xlane.xlu1 %3846  ;;  %v3850_v20 = vpop.xlane.xlu0 %3849 }
0x1429   :  { %v3855_v18 = vsub.f32 %v3734_v63, %v3847_v14  ;;  %v3856_v37 = vsub.f32 %v3785_v1, %v3850_v20 }
0x142b   :  { %v3860_v39 = vmul.f32 1.442695, %v3855_v18  ;;  %v3862_v51 = vmul.f32 1.442695, %v3856_v37 }
0x142d   :  { %6956 = vpow2.f32 %v3860_v39 }
0x142e   :  { %6958 = vpow2.f32 %v3862_v51 }
0x142f   :  { %v6955_v40 = vpop.eup %6954 }
0x1430   :  { %v3866_v16 = vsel %vm3415_vm4, %v6955_v40, 0.0  ;;  %v3853_v19 = vpop.xlane.xlu0 %3852 }
0x1431   :  { %3867 = vadd.xlane.f32.xlu0 %v3866_v16  ;;  %v3857_v25 = vsub.f32 %v3836_v17, %v3853_v19 }
0x1433   :  { %v3864_v54 = vmul.f32 1.442695, %v3857_v25 }
0x1435   :  { %6960 = vpow2.f32 %v3864_v54 }
0x1437   :  { %v6957_v34 = vpop.eup %6956 }
0x1438   :  { %v6959_v27 = vpop.eup %6958  ;;  %v3869_v35 = vsel %vm3415_vm4, %v6957_v34, 0.0 }
0x1439   :  { %3870 = vadd.xlane.f32.xlu1 %v3869_v35  ;;  %v3872_v48 = vsel %vm3415_vm4, %v6959_v27, 0.0  ;;  %v6819_v35 = vld [vmem:[#allocation19 + $0x18] sm:$0xff]  }
0x143a   :  { %3873 = vadd.xlane.f32.xlu0 %v3872_v48  ;;  %v6820_v48 = vld [vmem:[#allocation19] sm:$0xff]  }
0x143f   :  { %v6961_v55 = vpop.eup %6960 }
0x1440   :  { %v3875_v57 = vsel %vm3415_vm4, %v6961_v55, 0.0 }
0x144a   :  { %3938 = vrot.lane.b32.xlu1 %v8165_v24, %s7358_s14 }
0x144e   :  { %3985 = vrot.lane.b32.xlu1 %v8175_v53, %s7358_s14 }
0x1450   :  { %3891 = vrot.lane.b32.xlu0 %v8167_v41, %s7358_s14 }
0x1454   :  { %4216 = vrot.lane.b32.xlu0 %v8117_v62, %s8530_s9 }
0x1458   :  { %4266 = vrot.lane.b32.xlu0 %v8115_v61, %s8530_s9 }
0x145c   :  { %4316 = vrot.lane.b32.xlu0 %v8127_v13, %s8530_s9 }
0x1460   :  { %4314 = vrot.lane.b32.xlu0 %v8156_v33, %s8530_s9 }
0x1472   :  { %3876 = vadd.xlane.f32.xlu1 %v3875_v57 }
0x1483   :  { %4032 = vrot.lane.b32.xlu1 %v8173_v52, %s7358_s14 }
0x1487   :  { %4214 = vrot.lane.b32.xlu1 %v8132_v26, %s8530_s9 }
0x148b   :  { %4264 = vrot.lane.b32.xlu1 %v8147_v11, %s8530_s9 }
0x148f   :  { %4366 = vrot.lane.b32.xlu1 %v8122_v30, %s8530_s9 }
0x1493   :  { %4364 = vrot.lane.b32.xlu1 %v8134_v31, %s8530_s9 }
0x14be   :  { %v3868_v59 = vpop.xlane.xlu0 %3867 }
0x14bf   :  { %6962 = vrcp.f32 %v3868_v59 }
0x14c6   :  { %v3871_v60 = vpop.xlane.xlu1 %3870 }
0x14c7   :  { %6964 = vrcp.f32 %v3871_v60  ;;  %v3874_v63 = vpop.xlane.xlu0 %3873 }
0x14c8   :  { %6966 = vrcp.f32 %v3874_v63 }
0x14c9   :  { %v6963_v1 = vpop.eup %6962 }
0x14ca   :  { %v3882_v2 = vmul.f32 %v6963_v1, %v6955_v40  ;;  %v3939_v3 = vpop.permute.xlu1 %3938 }
0x14cb   :  { %v3892_v4 = vpop.permute.xlu0 %3891  ;;  %6554 = vmatpush3.bf16.msra.mxu0 %v3939_v3 }
0x14cc   :  { %6548 = vmatpush3.bf16.msra.mxu1 %v3892_v4  ;;  %v3886_v7 = vpack.c.bf16 %v3882_v2, %v3882_v2  ;;  %6565 = vmatprep.subr.bf16.mxu0 %v7356_v43 }
0x14cd   :  { %6559 = vmatprep.subr.bf16.mxu1 %v7356_v43 }
0x14ce   :  { %v3986_v9 = vpop.permute.xlu1 %3985 }
0x14cf   :  { %6550 = vmatmul.mubr.msk.bf16.vlgmr.msra.gmra.mrb[104].mxu1 %vm3415_vm4, %v3886_v7  ;;  %v4217_v8 = vpop.permute.xlu0 %4216 }
0x14d0   :  { %6560 = vmatpush3.bf16.msra.mxu1 %v3986_v9  ;;  %6561 = vmatprep.mubr.msk.bf16.mxu1 %vm7357_vm0, %v7356_v43  ;;  %v4222_v20 = vsel %vm628_vm1, %v4217_v8, 0 }
0x14d1   :  { %v6965_v38 = vpop.eup %6964 }
0x14d2   :  { %v6967_v12 = vpop.eup %6966  ;;  %v3883_v28 = vmul.f32 %v6965_v38, %v6957_v34 }
0x14d3   :  { %v3884_v17 = vmul.f32 %v6967_v12, %v6959_v27  ;;  %v4267_v37 = vpop.permute.xlu0 %4266  ;;  %v6818_v27 = vld [vmem:[#allocation19 + $0x10] sm:$0xff]  }
0x14d4   :  { %v3887_v21 = vpack.c.bf16 %v3883_v28, %v3883_v28  ;;  %v4272_v51 = vsel %vm628_vm1, %v4267_v37, 0  ;;  %6571 = vmatprep.subr.bf16.mxu1 %v6818_v27  ;;  %v6821_v28 = vld [vmem:[#allocation19 + $0x8] sm:$0xff]  }
0x14d5   :  { %v3888_v56 = vpack.c.bf16 %v3884_v17, %v3884_v17 }
0x14d6   :  { %6556 = vmatmul.mubr.msk.bf16.vlgmr.msra.gmra.mrb[108].mxu0 %vm3415_vm4, %v3887_v21 }
0x14d7   :  { %6562 = vmatmul.mubr.msk.bf16.vlgmr.msra.gmra.mrb[108].mxu1 %vm3415_vm4, %v3888_v56  ;;  %6567 = vmatprep.mubr.msk.bf16.mxu0 %vm7357_vm0, %v7356_v43  ;;  %v4317_v8 = vpop.permute.xlu0 %4316 }
0x14d8   :  { %6572 = vmatpush3.bf16.msra.mxu1 %v6818_v27  ;;  %v4322_v10 = vsel %vm628_vm1, %v4317_v8, 0 }
0x14d9   :  { %6573 = vmatprep.subr.bf16.mxu1 %v6819_v35 }
0x14db   :  { %v4315_v37 = vpop.permute.xlu0 %4314 }
0x14dc   :  { %6574 = vmatpush3.bf16.msra.mxu1 %v6819_v35 }
0x14dd   :  { %6579 = vmatprep.subr.bf16.mxu1 %v6820_v48 }
0x14ff   :  { %v3877_v5 = vpop.xlane.xlu1 %3876 }
0x1500   :  { %6968 = vrcp.f32 %v3877_v5 }
0x1503   :  { %v4033_v58 = vpop.permute.xlu1 %4032 }
0x1504   :  { %6566 = vmatpush3.bf16.msra.mxu0 %v4033_v58 }
0x1505   :  { %6587 = vmatprep.subr.bf16.mxu0 %v7356_v43 }
0x1507   :  { %v4215_v18 = vpop.permute.xlu1 %4214 }
0x150a   :  { %v6969_v22 = vpop.eup %6968 }
0x150b   :  { %v3885_v6 = vmul.f32 %v6969_v22, %v6961_v55  ;;  %v4265_v39 = vpop.permute.xlu1 %4264 }
0x150d   :  { %v3889_v14 = vpack.c.bf16 %v3885_v6, %v3885_v6 }
0x150f   :  { %6568 = vmatmul.mubr.msk.bf16.vlgmr.msra.gmra.mrb[112].mxu0 %vm3415_vm4, %v3889_v14  ;;  %v4367_v40 = vpop.permute.xlu1 %4366 }
0x1510   :  { %6588 = vmatpush3.bf16.xpose.msra.mxu0 %v4222_v20  ;;  %6589 = vmatprep.mubr.msk.bf16.mxu0 %vm7357_vm0, %v7356_v43  ;;  %v4372_v16 = vsel %vm628_vm1, %v4367_v40, 0 }
0x1511   :  { %6593 = vmatprep.subr.bf16.mxu0 %v7356_v43 }
0x1513   :  { %v4365_v34 = vpop.permute.xlu1 %4364 }
0x1517   :  { %6590 = vmatmul.mubr.msk.bf16.vlgmr.msra.gmra.mrb[116].mxu0 %vm628_vm1, %v4215_v18 }
0x1518   :  { %6594 = vmatpush3.bf16.xpose.msra.mxu0 %v4272_v51  ;;  %6595 = vmatprep.mubr.msk.bf16.mxu0 %vm7357_vm0, %v7356_v43 }
0x1519   :  { %6605 = vmatprep.subr.bf16.mxu0 %v7356_v43 }
0x151f   :  { %6596 = vmatmul.mubr.msk.bf16.vlgmr.msra.gmra.mrb[120].mxu0 %vm628_vm1, %v4265_v39 }
0x1520   :  { %6606 = vmatpush3.bf16.xpose.msra.mxu0 %v4372_v16  ;;  %6607 = vmatprep.mubr.msk.bf16.mxu0 %vm7357_vm0, %v7356_v43 }
0x1521   :  { %6617 = vmatprep.subr.bf16.mxu0 %v7356_v43 }
0x1527   :  { %6608 = vmatmul.mubr.msk.bf16.vlgmr.msra.gmra.mrb[124].mxu0 %vm628_vm1, %v4365_v34 }
0x1528   :  { %6619 = vmatprep.mubr.msk.bf16.mxu0 %vm7357_vm0, %v7356_v43 }
0x15a2   :  { %v3931_v19 = vpop.f32.mrb[104].mxu1 }
0x15a3   :  { %v6551_v25 = vpop.f32.mrb[105].mxu1 }
0x15a4   :  { %v3934_v54 = vpop.f32.mrb[106].mxu1 }
0x15a5   :  { %v6552_v55 = vpop.f32.mrb[107].mxu1 }
0x15a9   :  { %v3978_v57 = vpop.f32.mrb[108].mxu0 }
0x15aa   :  { %v4078_v59 = vpack.c.bf16 %v3978_v57, %v3931_v19  ;;  %v4025_v60 = vpop.f32.mrb[108].mxu1  ;;  %v6557_v63 = vpop.f32.mrb[109].mxu0 }
0x15ab   :  { %v6563_v1 = vpop.f32.mrb[109].mxu1  ;;  %v3981_v2 = vpop.f32.mrb[110].mxu0 }
0x15ac   :  { %v4028_v3 = vpop.f32.mrb[110].mxu1  ;;  %v6558_v4 = vpop.f32.mrb[111].mxu0  ;;  %6575 = vmatprep.mubr.msk.bf16.mxu1 %vm628_vm1, %v4078_v59 }
0x15ad   :  { %v6564_v7 = vpop.f32.mrb[111].mxu1 }
0x15e2   :  { %v4072_v9 = vpop.f32.mrb[112].mxu0 }
0x15e3   :  { %v4079_v38 = vpack.c.bf16 %v4072_v9, %v4025_v60  ;;  %v6569_v12 = vpop.f32.mrb[113].mxu0 }
0x15e4   :  { %v4075_v17 = vpop.f32.mrb[114].mxu0 }
0x15e5   :  { %v6570_v21 = vpop.f32.mrb[115].mxu0  ;;  %6576 = vmatmul.mubr.msk.bf16.vlgmr.msra.gmra.mrb[112].mxu1 %vm628_vm1, %v4079_v38 }
0x15e6   :  { %6580 = vmatpush3.bf16.msra.mxu1 %v6820_v48  ;;  %6583 = vmatprep.mubr.msk.bf16.mxu1 %vm628_vm1, %v3636_v50 }
0x15e7   :  { %6581 = vmatprep.subr.bf16.mxu1 %v6821_v28 }
0x15ea   :  { %6582 = vmatpush3.bf16.msra.mxu1 %v6821_v28  ;;  %v4258_v56 = vpop.f32.mrb[116].mxu0 }
0x15eb   :  { %v6591_v5 = vpop.f32.mrb[117].mxu0  ;;  %v4414_v58 = vsel %vm3415_vm4, %v4258_v56, -inf  ;;  %6599 = vmatprep.subr.bf16.mxu1 %v7356_v43 }
0x15ec   :  { %4415 = vmax.xlane.f32.xlu0 %v4414_v58  ;;  %v4261_v22 = vpop.f32.mrb[118].mxu0 }
0x15ed   :  { %v6592_v6 = vpop.f32.mrb[119].mxu0 }
0x15f1   :  { %6584 = vmatmul.mubr.msk.bf16.vlgmr.msra.gmra.mrb[112].mxu1 %vm628_vm1, %v3637_v47 }
0x15f2   :  { %v4308_v29 = vpop.f32.mrb[120].mxu0  ;;  %6601 = vmatprep.mubr.msk.bf16.mxu1 %vm7357_vm0, %v7356_v43 }
0x15f3   :  { %6600 = vmatpush3.bf16.xpose.msra.mxu1 %v4322_v10  ;;  %v6597_v50 = vpop.f32.mrb[121].mxu0  ;;  %v4417_v14 = vsel %vm3415_vm4, %v4308_v29, -inf }
0x15f4   :  { %4418 = vmax.xlane.f32.xlu1 %v4417_v14  ;;  %v4311_v20 = vpop.f32.mrb[122].mxu0  ;;  %6611 = vmatprep.subr.bf16.mxu1 %v7356_v43 }
0x15f5   :  { %v6598_v18 = vpop.f32.mrb[123].mxu0 }
0x15fa   :  { %6602 = vmatmul.mubr.msk.bf16.vlgmr.msra.gmra.mrb[116].mxu1 %vm628_vm1, %v4315_v37  ;;  %v4408_v23 = vpop.f32.mrb[124].mxu0 }
0x15fb   :  { %v6609_v44 = vpop.f32.mrb[125].mxu0  ;;  %6613 = vmatprep.mubr.msk.bf16.mxu1 %vm7357_vm0, %v7356_v43  ;;  %v4423_v60 = vsel %vm3415_vm4, %v4408_v23, -inf }
0x15fc   :  { %v4411_v47 = vpop.f32.mrb[126].mxu0 }
0x15fd   :  { %v6610_v39 = vpop.f32.mrb[127].mxu0 }
0x1679   :  { %v4416_v35 = vpop.xlane.xlu0 %4415 }
0x167a   :  { %v4426_v48 = vsub.f32 %v4258_v56, %v4416_v35 }
0x167c   :  { %v4430_v19 = vmul.f32 1.442695, %v4426_v48 }
0x1681   :  { %v4419_v51 = vpop.xlane.xlu1 %4418 }
0x1682   :  { %v4427_v40 = vsub.f32 %v4308_v29, %v4419_v51 }
0x1684   :  { %v4432_v16 = vmul.f32 1.442695, %v4427_v40  ;;  %v6822_v40 = vld [vmem:[#allocation19 + $0x20] sm:$0xff]  }
0x1686   :  { %6970 = vpow2.f32 %v4432_v16  ;;  %v6823_v16 = vld [vmem:[#allocation19 + $0x28] sm:$0xff]  }
0x1687   :  { %6972 = vpow2.f32 %v4430_v19 }
0x1690   :  { %v6971_v34 = vpop.eup %6970 }
0x1691   :  { %v4441_v27 = vsel %vm3415_vm4, %v6971_v34, 0.0  ;;  %v6973_v63 = vpop.eup %6972 }
0x1692   :  { %4442 = vadd.xlane.f32.xlu1 %v4441_v27  ;;  %v4438_v1 = vsel %vm3415_vm4, %v6973_v63, 0.0 }
0x16cd   :  { %v4358_v25 = vpop.f32.mrb[116].mxu1 }
0x16ce   :  { %v6603_v54 = vpop.f32.mrb[117].mxu1  ;;  %v4420_v55 = vsel %vm3415_vm4, %v4358_v25, -inf }
0x16cf   :  { %4421 = vmax.xlane.f32.xlu0 %v4420_v55  ;;  %v4361_v57 = vpop.f32.mrb[118].mxu1 }
0x16d0   :  { %v6604_v59 = vpop.f32.mrb[119].mxu1 }
0x16d3   :  { %4424 = vmax.xlane.f32.xlu0 %v4423_v60 }
0x16d7   :  { %4439 = vadd.xlane.f32.xlu0 %v4438_v1 }
0x175c   :  { %v4422_v2 = vpop.xlane.xlu0 %4421 }
0x175d   :  { %v4428_v3 = vsub.f32 %v4358_v25, %v4422_v2 }
0x175f   :  { %v4434_v4 = vmul.f32 1.442695, %v4428_v3 }
0x1760   :  { %v4425_v7 = vpop.xlane.xlu0 %4424 }
0x1761   :  { %6974 = vpow2.f32 %v4434_v4  ;;  %v4429_v9 = vsub.f32 %v4408_v23, %v4425_v7 }
0x1763   :  { %v4436_v38 = vmul.f32 1.442695, %v4429_v9 }
0x1765   :  { %6976 = vpow2.f32 %v4436_v38 }
0x176b   :  { %v6975_v12 = vpop.eup %6974 }
0x176c   :  { %v4444_v28 = vsel %vm3415_vm4, %v6975_v12, 0.0 }
0x176d   :  { %4445 = vadd.xlane.f32.xlu0 %v4444_v28 }
0x176f   :  { %v6977_v17 = vpop.eup %6976 }
0x1770   :  { %v4447_v21 = vsel %vm3415_vm4, %v6977_v17, 0.0 }
0x1771   :  { %4448 = vadd.xlane.f32.xlu1 %v4447_v21 }
0x1782   :  { %4508 = vrot.lane.b32.xlu1 %v8165_v24, %s8530_s9 }
0x1783   :  { %4462 = vrot.lane.b32.xlu0 %v8167_v41, %s8530_s9 }
0x1786   :  { %4554 = vrot.lane.b32.xlu1 %v8175_v53, %s8530_s9 }
0x1787   :  { %4721 = vrot.lane.b32.xlu0 %v8117_v62, %s7359_s28  ;;  %v4440_v62 = vpop.xlane.xlu0 %4439 }
0x1788   :  { %6978 = vrcp.f32 %v4440_v62 }
0x178a   :  { %4600 = vrot.lane.b32.xlu1 %v8173_v52, %s8530_s9 }
0x178b   :  { %4719 = vrot.lane.b32.xlu0 %v8132_v26, %s7359_s28  ;;  %v4443_v26 = vpop.xlane.xlu1 %4442 }
0x178c   :  { %6980 = vrcp.f32 %v4443_v26 }
0x178e   :  { %4771 = vrot.lane.b32.xlu1 %v8115_v61, %s7359_s28 }
0x178f   :  { %4821 = vrot.lane.b32.xlu0 %v8127_v13, %s7359_s28 }
0x1792   :  { %4769 = vrot.lane.b32.xlu1 %v8147_v11, %s7359_s28  ;;  %v6979_v61 = vpop.eup %6978 }
0x1793   :  { %4819 = vrot.lane.b32.xlu0 %v8156_v33, %s7359_s28  ;;  %v4454_v13 = vmul.f32 %v6979_v61, %v6973_v63 }
0x1795   :  { %v4458_v22 = vpack.c.bf16 %v4454_v13, %v4454_v13 }
0x1796   :  { %4871 = vrot.lane.b32.xlu1 %v8122_v30, %s7359_s28  ;;  %v6981_v5 = vpop.eup %6980 }
0x1797   :  { %v4455_v33 = vmul.f32 %v6981_v5, %v6971_v34 }
0x179a   :  { %4869 = vrot.lane.b32.xlu1 %v8134_v31, %s7359_s28  ;;  %v4459_v31 = vpack.c.bf16 %v4455_v33, %v4455_v33 }
0x17fa   :  { %v4446_v56 = vpop.xlane.xlu0 %4445 }
0x17fb   :  { %6982 = vrcp.f32 %v4446_v56 }
0x17fe   :  { %v4449_v58 = vpop.xlane.xlu1 %4448  ;;  %v4463_v11 = vpop.permute.xlu0 %4462 }
0x17ff   :  { %6984 = vrcp.f32 %v4449_v58  ;;  %6612 = vmatpush3.bf16.msra.mxu1 %v4463_v11 }
0x1800   :  { %6623 = vmatprep.subr.bf16.mxu1 %v7356_v43 }
0x1802   :  { %v4509_v30 = vpop.permute.xlu1 %4508  ;;  %6614 = vmatmul.mubr.msk.bf16.vlgmr.msra.gmra.mrb[120].mxu1 %vm3415_vm4, %v4458_v22  ;;  %v4722_v18 = vpop.permute.xlu0 %4721 }
0x1803   :  { %6618 = vmatpush3.bf16.msra.mxu0 %v4509_v30  ;;  %6625 = vmatprep.mubr.msk.bf16.mxu1 %vm7357_vm0, %v7356_v43  ;;  %v4727_v44 = vsel %vm628_vm1, %v4722_v18, 0 }
0x1804   :  { %6629 = vmatprep.subr.bf16.mxu0 %v7356_v43 }
0x1805   :  { %v6983_v6 = vpop.eup %6982 }
0x1806   :  { %v4456_v8 = vmul.f32 %v6983_v6, %v6975_v12  ;;  %6620 = vmatmul.mubr.msk.bf16.vlgmr.msra.gmra.mrb[128].mxu0 %vm3415_vm4, %v4459_v31  ;;  %v4555_v10 = vpop.permute.xlu1 %4554  ;;  %v4720_v23 = vpop.permute.xlu0 %4719 }
0x1807   :  { %6624 = vmatpush3.bf16.msra.mxu1 %v4555_v10  ;;  %6631 = vmatprep.mubr.msk.bf16.mxu0 %vm7357_vm0, %v7356_v43 }
0x1808   :  { %v4460_v29 = vpack.c.bf16 %v4456_v8, %v4456_v8  ;;  %6635 = vmatprep.subr.bf16.mxu1 %v6822_v40 }
0x1809   :  { %v6985_v50 = vpop.eup %6984 }
0x180a   :  { %v4457_v14 = vmul.f32 %v6985_v50, %v6977_v17  ;;  %v4601_v20 = vpop.permute.xlu1 %4600  ;;  %6626 = vmatmul.mubr.msk.bf16.vlgmr.msra.gmra.mrb[124].mxu1 %vm3415_vm4, %v4460_v29  ;;  %v4822_v47 = vpop.permute.xlu0 %4821 }
0x180b   :  { %6630 = vmatpush3.bf16.msra.mxu0 %v4601_v20  ;;  %v4827_v39 = vsel %vm628_vm1, %v4822_v47, 0  ;;  %6636 = vmatpush3.bf16.msra.mxu1 %v6822_v40 }
0x180c   :  { %v4461_v37 = vpack.c.bf16 %v4457_v14, %v4457_v14  ;;  %6643 = vmatprep.subr.bf16.mxu0 %v7356_v43  ;;  %6637 = vmatprep.subr.bf16.mxu1 %v6823_v16 }
0x180e   :  { %6632 = vmatmul.mubr.msk.bf16.vlgmr.msra.gmra.mrb[132].mxu0 %vm3415_vm4, %v4461_v37  ;;  %v4820_v51 = vpop.permute.xlu0 %4819  ;;  %v4772_v59 = vpop.permute.xlu1 %4771 }
0x180f   :  { %6645 = vmatprep.mubr.msk.bf16.mxu0 %vm7357_vm0, %v7356_v43  ;;  %6638 = vmatpush3.bf16.msra.mxu1 %v6823_v16  ;;  %v4777_v12 = vsel %vm628_vm1, %v4772_v59, 0 }
0x1810   :  { %6649 = vmatprep.subr.bf16.mxu1 %v7356_v43 }
0x1812   :  { %v4770_v9 = vpop.permute.xlu1 %4769 }
0x1814   :  { %6644 = vmatpush3.bf16.xpose.msra.mxu0 %v4727_v44 }
0x1815   :  { %6655 = vmatprep.subr.bf16.mxu0 %v7356_v43 }
0x1816   :  { %v4872_v17 = vpop.permute.xlu1 %4871 }
0x1817   :  { %v4877_v21 = vsel %vm628_vm1, %v4872_v17, 0 }
0x181a   :  { %v4870_v5 = vpop.permute.xlu1 %4869 }
0x181b   :  { %6646 = vmatmul.mubr.msk.bf16.vlgmr.msra.gmra.mrb[136].mxu0 %vm628_vm1, %v4720_v23 }
0x181c   :  { %6656 = vmatpush3.bf16.xpose.msra.mxu0 %v4827_v39  ;;  %6657 = vmatprep.mubr.msk.bf16.mxu0 %vm7357_vm0, %v7356_v43 }
0x181d   :  { %6667 = vmatprep.subr.bf16.mxu0 %v7356_v43 }
0x1823   :  { %6658 = vmatmul.mubr.msk.bf16.vlgmr.msra.gmra.mrb[140].mxu0 %vm628_vm1, %v4820_v51 }
0x1824   :  { %6669 = vmatprep.mubr.msk.bf16.mxu0 %vm7357_vm0, %v7356_v43 }
0x18d5   :  { %v4502_v34 = vpop.f32.mrb[120].mxu1 }
0x18d6   :  { %v6615_v27 = vpop.f32.mrb[121].mxu1 }
0x18d7   :  { %v4505_v35 = vpop.f32.mrb[122].mxu1 }
0x18d8   :  { %v6616_v48 = vpop.f32.mrb[123].mxu1 }
0x18d9   :  { %v4548_v19 = vpop.f32.mrb[128].mxu0 }
0x18da   :  { %v4646_v25 = vpack.c.bf16 %v4548_v19, %v4502_v34  ;;  %v6621_v54 = vpop.f32.mrb[129].mxu0 }
0x18db   :  { %v4551_v55 = vpop.f32.mrb[130].mxu0 }
0x18dc   :  { %v6622_v57 = vpop.f32.mrb[131].mxu0  ;;  %6639 = vmatprep.mubr.msk.bf16.mxu1 %vm628_vm1, %v4646_v25 }
0x18dd   :  { %v4594_v60 = vpop.f32.mrb[124].mxu1 }
0x18de   :  { %v6627_v63 = vpop.f32.mrb[125].mxu1 }
0x18df   :  { %v4597_v1 = vpop.f32.mrb[126].mxu1 }
0x18e0   :  { %v6628_v2 = vpop.f32.mrb[127].mxu1 }
0x18e1   :  { %v4640_v3 = vpop.f32.mrb[132].mxu0 }
0x18e2   :  { %v4647_v4 = vpack.c.bf16 %v4640_v3, %v4594_v60  ;;  %v6633_v7 = vpop.f32.mrb[133].mxu0 }
0x18e3   :  { %v4643_v38 = vpop.f32.mrb[134].mxu0 }
0x18e4   :  { %v6634_v28 = vpop.f32.mrb[135].mxu0  ;;  %6640 = vmatmul.mubr.msk.bf16.vlgmr.msra.gmra.mrb[112].mxu1 %vm628_vm1, %v4647_v4 }
0x18e5   :  { %6650 = vmatpush3.bf16.xpose.msra.mxu1 %v4777_v12  ;;  %6651 = vmatprep.mubr.msk.bf16.mxu1 %vm7357_vm0, %v7356_v43 }
0x18e6   :  { %6661 = vmatprep.subr.bf16.mxu1 %v7356_v43 }
0x18ec   :  { %6652 = vmatmul.mubr.msk.bf16.vlgmr.msra.gmra.mrb[128].mxu1 %vm628_vm1, %v4770_v9 }
0x18ed   :  { %6662 = vmatpush3.bf16.xpose.msra.mxu1 %v4877_v21  ;;  %6663 = vmatprep.mubr.msk.bf16.mxu1 %vm7357_vm0, %v7356_v43 }
0x18ee   :  { %v4763_v62 = vpop.f32.mrb[136].mxu0  ;;  %6673 = vmatprep.subr.bf16.mxu1 %v7356_v43 }
0x18ef   :  { %v6647_v26 = vpop.f32.mrb[137].mxu0  ;;  %v4919_v61 = vsel %vm3415_vm4, %v4763_v62, -inf }
0x18f0   :  { %4920 = vmax.xlane.f32.xlu0 %v4919_v61  ;;  %v4766_v56 = vpop.f32.mrb[138].mxu0 }
0x18f1   :  { %v6648_v13 = vpop.f32.mrb[139].mxu0 }
0x18f4   :  { %6664 = vmatmul.mubr.msk.bf16.vlgmr.msra.gmra.mrb[132].mxu1 %vm628_vm1, %v4870_v5 }
0x18f5   :  { %6675 = vmatprep.mubr.msk.bf16.mxu1 %vm7357_vm0, %v7356_v43 }
0x18f6   :  { %v4863_v58 = vpop.f32.mrb[140].mxu0 }
0x18f7   :  { %v6659_v11 = vpop.f32.mrb[141].mxu0  ;;  %v4925_v33 = vsel %vm3415_vm4, %v4863_v58, -inf }
0x18f8   :  { %4926 = vmax.xlane.f32.xlu0 %v4925_v33  ;;  %v4866_v22 = vpop.f32.mrb[142].mxu0 }
0x18f9   :  { %v6660_v30 = vpop.f32.mrb[143].mxu0 }
0x197d   :  { %v4921_v31 = vpop.xlane.xlu0 %4920 }
0x197e   :  { %v4931_v6 = vsub.f32 %v4763_v62, %v4921_v31 }
0x1980   :  { %v4935_v10 = vmul.f32 1.442695, %v4931_v6 }
0x1982   :  { %6986 = vpow2.f32 %v4935_v10  ;;  %v6824_v10 = vld [vmem:[#allocation19 + $0x30] sm:$0xff]  }
0x1985   :  { %v4927_v8 = vpop.xlane.xlu0 %4926 }
0x1986   :  { %v4933_v29 = vsub.f32 %v4863_v58, %v4927_v8 }
0x1988   :  { %v4939_v50 = vmul.f32 1.442695, %v4933_v29  ;;  %v6825_v29 = vld [vmem:[#allocation19 + $0x38] sm:$0xff]  }
0x198a   :  { %6988 = vpow2.f32 %v4939_v50  ;;  %v6828_v50 = vld [vmem:[#allocation20 + $0x4] ss:$8 sps:$4 sm:$0xff]  }
0x198c   :  { %v6987_v51 = vpop.eup %6986 }
0x198d   :  { %v4943_v34 = vsel %vm3415_vm4, %v6987_v51, 0.0 }
0x1994   :  { %v6989_v27 = vpop.eup %6988 }
0x1995   :  { %v4949_v35 = vsel %vm3415_vm4, %v6989_v27, 0.0 }
0x19bf   :  { %v4813_v14 = vpop.f32.mrb[128].mxu1 }
0x19c0   :  { %v6653_v20 = vpop.f32.mrb[129].mxu1  ;;  %v4922_v18 = vsel %vm3415_vm4, %v4813_v14, -inf }
0x19c1   :  { %4923 = vmax.xlane.f32.xlu1 %v4922_v18  ;;  %v4816_v37 = vpop.f32.mrb[130].mxu1  ;;  %v6829_v20 = vld [vmem:[#allocation20 + $0x10] ss:$8 sps:$4 sm:$0xff]   ;;  %v6834_v18 = vld [vmem:[#allocation20 + $0x24] ss:$8 sps:$4 sm:$0xff]  }
0x19c2   :  { %v6654_v23 = vpop.f32.mrb[131].mxu1  ;;  %v6832_v37 = vld [vmem:[#allocation20 + $0x20] ss:$8 sps:$4 sm:$0xff]  }
0x19c3   :  { %v6837_v23 = vld [vmem:[#allocation20 + $0x34] ss:$8 sps:$4 sm:$0xff]  }
0x19c7   :  { %v4913_v44 = vpop.f32.mrb[132].mxu1 }
0x19c8   :  { %v6665_v47 = vpop.f32.mrb[133].mxu1  ;;  %v4928_v39 = vsel %vm3415_vm4, %v4913_v44, -inf }
0x19c9   :  { %4929 = vmax.xlane.f32.xlu0 %v4928_v39  ;;  %v4916_v40 = vpop.f32.mrb[134].mxu1  ;;  %v6840_v47 = vld [vmem:[#allocation20 + $0x44] ss:$8 sps:$4 sm:$0xff]   ;;  %v6838_v39 = vld [vmem:[#allocation20 + $0x40] ss:$8 sps:$4 sm:$0xff]  }
0x19ca   :  { %v6666_v16 = vpop.f32.mrb[135].mxu1  ;;  %v6841_v40 = vld [vmem:[#allocation20 + $0x50] ss:$8 sps:$4 sm:$0xff]  }
0x19cd   :  { %4944 = vadd.xlane.f32.xlu0 %v4943_v34 }
0x19d1   :  { %4950 = vadd.xlane.f32.xlu0 %v4949_v35 }
0x19d2   :  { %5013 = vrot.lane.b32.xlu1 %v8165_v24, %s7359_s28 }
0x19d6   :  { %5059 = vrot.lane.b32.xlu1 %v8175_v53, %s7359_s28 }
0x19e7   :  { %4967 = vrot.lane.b32.xlu0 %v8167_v41, %s7359_s28 }
0x1a4e   :  { %v4924_v48 = vpop.xlane.xlu1 %4923 }
0x1a4f   :  { %v4932_v19 = vsub.f32 %v4813_v14, %v4924_v48  ;;  %v6831_v14 = vld [vmem:[#allocation20 + $0x14] ss:$8 sps:$4 sm:$0xff]  }
0x1a51   :  { %v4937_v25 = vmul.f32 1.442695, %v4932_v19 }
0x1a52   :  { %v5014_v54 = vpop.permute.xlu1 %5013 }
0x1a53   :  { %6990 = vpow2.f32 %v4937_v25  ;;  %6674 = vmatpush3.bf16.msra.mxu1 %v5014_v54 }
0x1a54   :  { %6685 = vmatprep.subr.bf16.mxu1 %v7356_v43 }
0x1a56   :  { %v4930_v55 = vpop.xlane.xlu0 %4929  ;;  %v5060_v38 = vpop.permute.xlu1 %5059 }
0x1a57   :  { %v4934_v57 = vsub.f32 %v4913_v44, %v4930_v55  ;;  %v6835_v44 = vld [vmem:[#allocation20 + $0x30] ss:$8 sps:$4 sm:$0xff]  }
0x1a59   :  { %v4941_v59 = vmul.f32 1.442695, %v4934_v57 }
0x1a5a   :  { %v4945_v60 = vpop.xlane.xlu0 %4944 }
0x1a5b   :  { %6992 = vpow2.f32 %v4941_v59  ;;  %v6846_v59 = vld [vmem:[#allocation20 + $0x64] ss:$8 sps:$4 sm:$0xff]  }
0x1a5c   :  { %6994 = vrcp.f32 %v4945_v60  ;;  %v6844_v60 = vld [vmem:[#allocation20 + $0x60] ss:$8 sps:$4 sm:$0xff]  }
0x1a5d   :  { %v6991_v24 = vpop.eup %6990 }
0x1a5e   :  { %v4951_v63 = vpop.xlane.xlu0 %4950  ;;  %v4946_v53 = vsel %vm3415_vm4, %v6991_v24, 0.0 }
0x1a5f   :  { %4947 = vadd.xlane.f32.xlu1 %v4946_v53  ;;  %6996 = vrcp.f32 %v4951_v63  ;;  %v6847_v63 = vld [vmem:[#allocation20 + $0x70] ss:$8 sps:$4 sm:$0xff]   ;;  %v6850_v53 = vld [vmem:[#allocation22 + $0x40] sm:$0xff]  }
0x1a62   :  { %v4968_v41 = vpop.permute.xlu0 %4967 }
0x1a63   :  { %6668 = vmatpush3.bf16.msra.mxu0 %v4968_v41  ;;  %v6851_v41 = vld [vmem:[#allocation22] sm:$0xff]  }
0x1a64   :  { %6679 = vmatprep.subr.bf16.mxu0 %v7356_v43 }
0x1a65   :  { %v6993_v1 = vpop.eup %6992 }
0x1a66   :  { %v6995_v2 = vpop.eup %6994  ;;  %v4952_v3 = vsel %vm3415_vm4, %v6993_v1, 0.0 }
0x1a67   :  { %v4959_v4 = vmul.f32 %v6995_v2, %v6987_v51  ;;  %4953 = vadd.xlane.f32.xlu1 %v4952_v3  ;;  %v6843_v51 = vld [vmem:[#allocation20 + $0x54] ss:$8 sps:$4 sm:$0xff]   ;;  %v6853_v2 = vld [vmem:[#allocation22 + $0x8] sm:$0xff]  }
0x1a68   :  { %v6854_v3 = vld [vmem:[#allocation22 + $0x50] sm:$0xff]  }
0x1a69   :  { %v4963_v7 = vpack.c.bf16 %v4959_v4, %v4959_v4  ;;  %v6997_v9 = vpop.eup %6996  ;;  %v6855_v4 = vld [vmem:[#allocation22 + $0x10] sm:$0xff]  }
0x1a6a   :  { %v4961_v12 = vmul.f32 %v6997_v9, %v6989_v27  ;;  %v6857_v9 = vld [vmem:[#allocation22 + $0x18] sm:$0xff]  }
0x1a6b   :  { %6670 = vmatmul.mubr.msk.bf16.vlgmr.msra.gmra.mrb[144].mxu0 %vm3415_vm4, %v4963_v7  ;;  %v6856_v7 = vld [vmem:[#allocation22 + $0x58] sm:$0xff]  }
0x1a6c   :  { %6680 = vmatpush3.bf16.msra.mxu0 %v5060_v38  ;;  %6681 = vmatprep.mubr.msk.bf16.mxu0 %vm7357_vm0, %v7356_v43  ;;  %v4965_v28 = vpack.c.bf16 %v4961_v12, %v4961_v12  ;;  %v6858_v38 = vld [vmem:[#allocation22 + $0x60] sm:$0xff]  }
0x1a6d   :  { %5345 = vmatprep.subr.bf16.mxu0 %v6828_v50  ;;  %v6859_v12 = vld [vmem:[#allocation22 + $0x20] sm:$0xff]  }
0x1a73   :  { %6682 = vmatmul.mubr.msk.bf16.vlgmr.msra.gmra.mrb[148].mxu0 %vm3415_vm4, %v4965_v28  ;;  %v6860_v28 = vld [vmem:[#allocation22 + $0x68] sm:$0xff]  }
0x1a74   :  { %5377 = vmatprep.mubr.bf16.mxu0 %v7355_v0 }
0x1a78   :  { %5105 = vrot.lane.b32.xlu1 %v8173_v52, %s7359_s28 }
0x1aec   :  { %v4948_v17 = vpop.xlane.xlu1 %4947 }
0x1aed   :  { %6998 = vrcp.f32 %v4948_v17 }
0x1af4   :  { %v4954_v21 = vpop.xlane.xlu1 %4953 }
0x1af5   :  { %7000 = vrcp.f32 %v4954_v21  ;;  %v5868_v21 = vld [vmem:[%s8484_s19] ss:$0 sm:$0xff] }
0x1af7   :  { %v6999_v62 = vpop.eup %6998 }
0x1af8   :  { %v4960_v26 = vmul.f32 %v6999_v62, %v6991_v24  ;;  %v5106_v56 = vpop.permute.xlu1 %5105  ;;  %v6849_v24 = vld [vmem:[#allocation20 + $0x74] ss:$8 sps:$4 sm:$0xff]  }
0x1afa   :  { %v4964_v61 = vpack.c.bf16 %v4960_v26, %v4960_v26 }
0x1afc   :  { %6676 = vmatmul.mubr.msk.bf16.vlgmr.msra.gmra.mrb[136].mxu1 %vm3415_vm4, %v4964_v61 }
0x1afd   :  { %6686 = vmatpush3.bf16.msra.mxu1 %v5106_v56  ;;  %6687 = vmatprep.mubr.msk.bf16.mxu1 %vm7357_vm0, %v7356_v43  ;;  %v6826_v43 = vld [vmem:[#allocation20] ss:$8 sps:$4 sm:$0xff]  }
0x1afe   :  { %6691 = vmatprep.subr.bf16.mxu1 %v6824_v10  ;;  %5346 = vmatpush1.bf16.msra.mxu0 %v6826_v43 }
0x1aff   :  { %v7001_v13 = vpop.eup %7000  ;;  %5347 = vmatprep.subr.bf16.mxu0 %v6831_v14 }
0x1b00   :  { %v4962_v5 = vmul.f32 %v7001_v13, %v6993_v1  ;;  %v6852_v1 = vld [vmem:[#allocation22 + $0x48] sm:$0xff]  }
0x1b02   :  { %v4966_v58 = vpack.c.bf16 %v4962_v5, %v4962_v5  ;;  %5348 = vmatpush1.bf16.msra.mxu0 %v6829_v20 }
0x1b03   :  { %5349 = vmatprep.subr.bf16.mxu0 %v6834_v18 }
0x1b04   :  { %6688 = vmatmul.mubr.msk.bf16.vlgmr.msra.gmra.mrb[140].mxu1 %vm3415_vm4, %v4966_v58 }
0x1b05   :  { %6692 = vmatpush3.bf16.msra.mxu1 %v6824_v10 }
0x1b06   :  { %6693 = vmatprep.subr.bf16.mxu1 %v6825_v29  ;;  %5350 = vmatpush1.bf16.msra.mxu0 %v6832_v37 }
0x1b07   :  { %5351 = vmatprep.subr.bf16.mxu0 %v6837_v23 }
0x1b09   :  { %6694 = vmatpush3.bf16.msra.mxu1 %v6825_v29 }
0x1b0a   :  { %5352 = vmatpush1.bf16.msra.mxu0 %v6835_v44  ;;  %6135 = vmatprep.subr.bf16.mxu1 %v6850_v53 }
0x1b0b   :  { %5353 = vmatprep.subr.bf16.mxu0 %v6840_v47 }
0x1b0e   :  { %5354 = vmatpush1.bf16.msra.mxu0 %v6838_v39 }
0x1b0f   :  { %5355 = vmatprep.subr.bf16.mxu0 %v6843_v51 }
0x1b12   :  { %5356 = vmatpush1.bf16.msra.mxu0 %v6841_v40 }
0x1b13   :  { %5357 = vmatprep.subr.bf16.mxu0 %v6846_v59 }
0x1b16   :  { %5358 = vmatpush1.bf16.msra.mxu0 %v6844_v60 }
0x1b17   :  { %5359 = vmatprep.subr.bf16.mxu0 %v6849_v24 }
0x1b1a   :  { %5360 = vmatpush1.bf16.msra.mxu0 %v6847_v63  ;;  %v5885_v63 = vld [vmem:[%s8486_s21] ss:$0 sm:$0xff] }
0x1b3e   :  { %v5007_v52 = vpop.f32.mrb[144].mxu0 }
0x1b3f   :  { %v6671_v11 = vpop.f32.mrb[145].mxu0 }
0x1b40   :  { %v5010_v33 = vpop.f32.mrb[146].mxu0 }
0x1b41   :  { %v6672_v22 = vpop.f32.mrb[147].mxu0  ;;  %v6861_v33 = vld [vmem:[#allocation22 + $0x28] sm:$0xff]  }
0x1b42   :  { %v6862_v22 = vld [vmem:[#allocation22 + $0x70] sm:$0xff]  }
0x1b46   :  { %v5099_v30 = vpop.f32.mrb[148].mxu0 }
0x1b47   :  { %v6683_v31 = vpop.f32.mrb[149].mxu0 }
0x1b48   :  { %v5102_v6 = vpop.f32.mrb[150].mxu0  ;;  %v6864_v31 = vld [vmem:[#allocation22 + $0x78] sm:$0xff]  }
0x1b49   :  { %v6684_v8 = vpop.f32.mrb[151].mxu0  ;;  %v6865_v6 = vld [vmem:[#allocation22 + $0x38] sm:$0xff]  }
0x1b4a   :  { %v5253_v8 = vld [vmem:[%s8485_s20] sm:$0x3] }
0x1b4b   :  { %v5258_v10 = vrot.slane %v5253_v8, %v299_v49 }
0x1bcf   :  { %v5053_v16 = vpop.f32.mrb[136].mxu1 }
0x1bd0   :  { %v5151_v34 = vpack.c.bf16 %v5053_v16, %v5007_v52  ;;  %v6677_v27 = vpop.f32.mrb[137].mxu1 }
0x1bd1   :  { %v5056_v35 = vpop.f32.mrb[138].mxu1 }
0x1bd2   :  { %v6678_v48 = vpop.f32.mrb[139].mxu1  ;;  %6695 = vmatprep.mubr.msk.bf16.mxu1 %vm628_vm1, %v5151_v34 }
0x1bd7   :  { %v5145_v19 = vpop.f32.mrb[140].mxu1 }
0x1bd8   :  { %v5152_v25 = vpack.c.bf16 %v5145_v19, %v5099_v30  ;;  %v6689_v54 = vpop.f32.mrb[141].mxu1  ;;  %v6863_v30 = vld [vmem:[#allocation22 + $0x30] sm:$0xff]  }
0x1bd9   :  { %v5148_v55 = vpop.f32.mrb[142].mxu1 }
0x1bda   :  { %v6690_v57 = vpop.f32.mrb[143].mxu1  ;;  %6696 = vmatmul.mubr.msk.bf16.vlgmr.msra.gmra.mrb[112].mxu1 %vm628_vm1, %v5152_v25 }
0x1bdb   :  { %6136 = vmatpush3.bf16.msra.mxu1 %v6851_v41 }
0x1bdc   :  { %6137 = vmatprep.subr.bf16.mxu1 %v6852_v1 }
0x1bdf   :  { %6138 = vmatpush3.bf16.msra.mxu1 %v6853_v2 }
0x1be0   :  { %6139 = vmatprep.subr.bf16.mxu1 %v6854_v3 }
0x1be3   :  { %6140 = vmatpush3.bf16.msra.mxu1 %v6855_v4 }
0x1be4   :  { %6141 = vmatprep.subr.bf16.mxu1 %v6856_v7 }
0x1be7   :  { %6142 = vmatpush3.bf16.msra.mxu1 %v6857_v9 }
0x1be8   :  { %6143 = vmatprep.subr.bf16.mxu1 %v6858_v38 }
0x1beb   :  { %6144 = vmatpush3.bf16.msra.mxu1 %v6859_v12 }
0x1bec   :  { %6145 = vmatprep.subr.bf16.mxu1 %v6860_v28 }
0x1bef   :  { %6146 = vmatpush3.bf16.msra.mxu1 %v6861_v33 }
0x1bf0   :  { %6147 = vmatprep.subr.bf16.mxu1 %v6862_v22 }
0x1bf3   :  { %6148 = vmatpush3.bf16.msra.mxu1 %v6863_v30 }
0x1bf4   :  { %6149 = vmatprep.subr.bf16.mxu1 %v6864_v31 }
0x1bf7   :  { %6150 = vmatpush3.bf16.msra.mxu1 %v6865_v6 }
0x1cad   :  { %v6697_v17 = vpop.f32.mrb[112].mxu1 }
0x1cae   :  { %v5205_v62 = vpop.f32.mrb[113].mxu1  ;;  %v5233_v61 = vadd.f32 %v6697_v17, %v5868_v21 }
0x1caf   :  { %v6698_v26 = vpop.f32.mrb[114].mxu1  ;;  %v5231_v5 = vadd.f32 %v5868_v21, %v5205_v62 }
0x1cb0   :  { %v5234_v56 = vadd.f32 %v6698_v26, %v5868_v21  ;;  %v5208_v13 = vpop.f32.mrb[115].mxu1 }
0x1cb1   :  { %v5232_v58 = vadd.f32 %v5868_v21, %v5208_v13 }
0x1cb2   :  { %v5236_v52 = vpack.c.bf16 %v5234_v56, %v5233_v61 }
0x1cb3   :  { %v5235_v11 = vpack.c.bf16 %v5232_v58, %v5231_v5 }
0x1cb5   :  { %5378 = vmatmul.mubr.bf16.vlgmr.msra.gmra.mrb[152].mxu0 %v5235_v11 }
0x1cb6   :  { %5387 = vmatprep.mubr.bf16.mxu0 %v7355_v0  ;;  %v5262_v0 = vrot.slane %v5253_v8, %v303_v46 }
0x1cbd   :  { %5388 = vmatmul.mubr.bf16.gmra.mrb[156].mxu0 %v5236_v52 }
0x1d88   :  { %v5379_v29 = vpop.f32.mrb[152].mxu0 }
0x1d89   :  { %v5380_v43 = vadd.f32 %v5379_v29, %v5258_v10  ;;  %v5381_v50 = vpop.f32.mrb[153].mxu0 }
0x1d8a   :  { %v5382_v14 = vadd.f32 %v5381_v50, %v5262_v0  ;;  %v5383_v20 = vpop.f32.mrb[154].mxu0 }
0x1d8b   :  { %v5384_v18 = vadd.f32 %v5383_v20, %v5258_v10  ;;  %v5385_v37 = vpop.f32.mrb[155].mxu0  ;;  %v5398_v44 = vmax.f32 %v5380_v43, 0.0 }
0x1d8c   :  { %v5386_v23 = vadd.f32 %v5385_v37, %v5262_v0  ;;  %v5399_v39 = vmax.f32 %v5382_v14, 0.0 }
0x1d8d   :  { %v5400_v47 = vmax.f32 %v5384_v18, 0.0 }
0x1d8e   :  { %v5401_v51 = vmax.f32 %v5386_v23, 0.0 }
0x1d8f   :  { %v5406_v40 = vpack.c.bf16 %v5400_v47, %v5398_v44 }
0x1d90   :  { %v5407_v16 = vpack.c.bf16 %v5401_v51, %v5399_v39  ;;  %v5389_v34 = vpop.f32.mrb[156].mxu0 }
0x1d91   :  { %v5390_v27 = vadd.f32 %v5389_v34, %v5258_v10  ;;  %v5391_v49 = vpop.f32.mrb[157].mxu0  ;;  %v5902_v34 = vld [vmem:[%s8536_s24] ss:$0 sm:$0xff] }
0x1d92   :  { %v5392_v35 = vadd.f32 %v5391_v49, %v5262_v0  ;;  %v5393_v45 = vpop.f32.mrb[158].mxu0  ;;  %5577 = vmatprep.mubr.bf16.mxu1 %v5407_v16 }
0x1d93   :  { %v5394_v46 = vadd.f32 %v5393_v45, %v5258_v10  ;;  %v5395_v48 = vpop.f32.mrb[159].mxu0  ;;  %5578 = vmatmul.mubr.bf16.vlgmr.msra.gmra.mrb[144].mxu1 %v5406_v40  ;;  %v5402_v25 = vmax.f32 %v5390_v27, 0.0 }
0x1d94   :  { %v5396_v19 = vadd.f32 %v5395_v48, %v5262_v0  ;;  %v5403_v55 = vmax.f32 %v5392_v35, 0.0  ;;  %v5903_v35 = vld [vmem:[%s8537_s25] ss:$0 sm:$0xff] }
0x1d95   :  { %v5404_v54 = vmax.f32 %v5394_v46, 0.0 }
0x1d96   :  { %v5405_v57 = vmax.f32 %v5396_v19, 0.0 }
0x1d97   :  { %v5408_v59 = vpack.c.bf16 %v5404_v54, %v5402_v25 }
0x1d98   :  { %v5409_v60 = vpack.c.bf16 %v5405_v57, %v5403_v55 }
0x1d9a   :  { %5585 = vmatprep.mubr.bf16.mxu1 %v5409_v60 }
0x1d9b   :  { %5586 = vmatmul.mubr.bf16.gmra.mrb[148].mxu1 %v5408_v59 }
0x1e66   :  { %v6151_v24 = vpop.f32.mrb[144].mxu1 }
0x1e67   :  { %v6152_v53 = vpop.f32.mrb[145].mxu1 }
0x1e68   :  { %v6153_v41 = vadd.f32 %v6152_v53, %v6151_v24  ;;  %v6154_v1 = vpop.f32.mrb[146].mxu1 }
0x1e69   :  { %v6155_v2 = vpop.f32.mrb[147].mxu1 }
0x1e6a   :  { %v5580_v3 = vadd.f32 %v6153_v41, %v5885_v63  ;;  %v6156_v4 = vadd.f32 %v6155_v2, %v6154_v1 }
0x1e6c   :  { %v5583_v7 = vadd.f32 %v6156_v4, %v5885_v63  ;;  %v5594_v9 = vadd.f32 %v5580_v3, %v8088_v32 }
0x1e6e   :  { %v6157_v38 = vpop.f32.mrb[148].mxu1  ;;  %5600 = vadd.xlane.f32.xlu0 %v5594_v9  ;;  %v5595_v12 = vadd.f32 %v5583_v7, %v8090_v15 }
0x1e6f   :  { %v6158_v28 = vpop.f32.mrb[149].mxu1 }
0x1e70   :  { %v6159_v17 = vadd.f32 %v6158_v28, %v6157_v38  ;;  %v6160_v21 = vpop.f32.mrb[150].mxu1  ;;  %5602 = vadd.xlane.f32.xlu1 %v5595_v12 }
0x1e71   :  { %v6161_v62 = vpop.f32.mrb[151].mxu1 }
0x1e72   :  { %v5588_v26 = vadd.f32 %v6159_v17, %v5885_v63  ;;  %v6162_v61 = vadd.f32 %v6161_v62, %v6160_v21 }
0x1e74   :  { %v5591_v56 = vadd.f32 %v6162_v61, %v5885_v63  ;;  %v5596_v13 = vadd.f32 %v5588_v26, %v8099_v36 }
0x1e76   :  { %5604 = vadd.xlane.f32.xlu0 %v5596_v13  ;;  %v5597_v5 = vadd.f32 %v5591_v56, %v8101_v42 }
0x1e7a   :  { %5606 = vadd.xlane.f32.xlu0 %v5597_v5 }
0x1efb   :  { %v5601_v58 = vpop.xlane.xlu0 %5600 }
0x1efc   :  { %v5608_v32 = vmul.f32 0.0078125, %v5601_v58 }
0x1efd   :  { %v5603_v52 = vpop.xlane.xlu1 %5602 }
0x1efe   :  { %v5612_v11 = vsub.f32 %v5594_v9, %v5608_v32  ;;  %v5609_v33 = vmul.f32 0.0078125, %v5603_v52 }
0x1f00   :  { %v5613_v15 = vsub.f32 %v5595_v12, %v5609_v33  ;;  %v5616_v22 = vmul.f32 %v5612_v11, %v5612_v11 }
0x1f02   :  { %5620 = vadd.xlane.f32.xlu0 %v5616_v22  ;;  %v5617_v30 = vmul.f32 %v5613_v15, %v5613_v15 }
0x1f03   :  { %v5605_v31 = vpop.xlane.xlu0 %5604 }
0x1f04   :  { %v5610_v6 = vmul.f32 0.0078125, %v5605_v31  ;;  %5622 = vadd.xlane.f32.xlu1 %v5617_v30 }
0x1f06   :  { %v5614_v8 = vsub.f32 %v5596_v13, %v5610_v6 }
0x1f07   :  { %v5607_v10 = vpop.xlane.xlu0 %5606 }
0x1f08   :  { %v5611_v0 = vmul.f32 0.0078125, %v5607_v10  ;;  %v5618_v36 = vmul.f32 %v5614_v8, %v5614_v8 }
0x1f0a   :  { %v5615_v29 = vsub.f32 %v5597_v5, %v5611_v0  ;;  %5624 = vadd.xlane.f32.xlu0 %v5618_v36 }
0x1f0c   :  { %v5619_v42 = vmul.f32 %v5615_v29, %v5615_v29 }
0x1f0e   :  { %5626 = vadd.xlane.f32.xlu1 %v5619_v42 }
0x1f8f   :  { %v5621_v43 = vpop.xlane.xlu0 %5620 }
0x1f90   :  { %v5628_v50 = vmul.f32 0.0078125, %v5621_v43 }
0x1f91   :  { %v5623_v14 = vpop.xlane.xlu1 %5622 }
0x1f92   :  { %v5632_v20 = vadd.f32 1e-05, %v5628_v50  ;;  %v5629_v18 = vmul.f32 0.0078125, %v5623_v14 }
0x1f94   :  { %7002 = vrsqrt.f32 %v5632_v20  ;;  %v5633_v37 = vadd.f32 1e-05, %v5629_v18 }
0x1f96   :  { %7004 = vrsqrt.f32 %v5633_v37 }
0x1f97   :  { %v5625_v23 = vpop.xlane.xlu0 %5624 }
0x1f98   :  { %v5630_v44 = vmul.f32 0.0078125, %v5625_v23 }
0x1f9a   :  { %v5634_v47 = vadd.f32 1e-05, %v5630_v44 }
0x1f9b   :  { %v5627_v39 = vpop.xlane.xlu1 %5626 }
0x1f9c   :  { %7006 = vrsqrt.f32 %v5634_v47  ;;  %v5631_v51 = vmul.f32 0.0078125, %v5627_v39 }
0x1f9e   :  { %v7003_v40 = vpop.eup %7002  ;;  %v5635_v16 = vadd.f32 1e-05, %v5631_v51 }
0x1f9f   :  { %v5640_v27 = vmul.f32 %v7003_v40, %v5612_v11 }
0x1fa0   :  { %v7005_v49 = vpop.eup %7004  ;;  %7008 = vrsqrt.f32 %v5635_v16 }
0x1fa1   :  { %v5641_v45 = vmul.f32 %v7005_v49, %v5613_v15  ;;  %v5650_v46 = vmul.f32 %v5902_v34, %v5640_v27 }
0x1fa3   :  { %v5651_v48 = vmul.f32 %v5902_v34, %v5641_v45  ;;  %v5660_v19 = vadd.f32 %v5903_v35, %v5650_v46 }
0x1fa5   :  { %v5661_v25 = vadd.f32 %v5903_v35, %v5651_v48  ;;  %5664 = vst [vmem:[#allocation23] sm:$0xff] %v5660_v19 }
0x1fa6   :  { %v7007_v54 = vpop.eup %7006 }
0x1fa7   :  { %v5642_v55 = vmul.f32 %v7007_v54, %v5614_v8  ;;  %5665 = vst [vmem:[#allocation23 + $0x8] sm:$0xff] %v5661_v25 }
0x1fa9   :  { %v5652_v57 = vmul.f32 %v5902_v34, %v5642_v55 }
0x1faa   :  { %v7009_v59 = vpop.eup %7008 }
0x1fab   :  { %v5643_v60 = vmul.f32 %v7009_v59, %v5615_v29  ;;  %v5662_v24 = vadd.f32 %v5903_v35, %v5652_v57 }
0x1fad   :  { %v5653_v63 = vmul.f32 %v5902_v34, %v5643_v60  ;;  %5666 = vst [vmem:[#allocation23 + $0x10] sm:$0xff] %v5662_v24 }
0x1faf   :  { %v5663_v53 = vadd.f32 %v5903_v35, %v5653_v63 }
0x1fb1   :  { %5667 = vst [vmem:[#allocation23 + $0x18] sm:$0xff] %v5663_v53 }
0x1fb2   :  { %7311 = shalt.err (!%p7308_p10)
}
0x1fb3   :  { %s8538_s28 = sld [smem:[#allocation45_spill]] }
0x1fb9   :  { %s7312_s29 = scalar_lea.hbm %s8538_s28, 512 }
0x1fba   :  { %p7313_p11 = scmp.ne.s32.totalorder %s8538_s28, %s7312_s29  ;;  %p7316_p12 = scmp.lt.u32.totalorder %s7312_s29, %s8538_s28 }
0x1fbc   :  { %p7318_p13 = pnand %p7316_p12, %p7313_p11 }
0x1fbe   :  { %7321 = shalt.err (!%p7318_p13)
}
0x1fbf   :  { %s8539_s2 = smov 128  }
0x1fc0   :  { %5679 = dma.vmem_to_hbm [thread:$0]  %s5674_s1, 512, %s8538_s28, [#allocation4], %s8539_s2, %s8539_s2, %s7348_s0  }
0x1fc1   :  { %7336 = dma.done.wait [#allocation4], 512  }
0x1fc2   :  { %7337 = vsyncadd [#allocation4], 4294966784 }
0x1fc3   :  { %5683 = vsyncpa [#allocation3], 1 }
0x1fc4   :  { %5684 = vsyncpa [#allocation6], 1 }
0x1fc5   :  { %5685 = vsyncpa [#allocation9], 1 }
0x1fc6   :  { %5686 = vsyncpa [#allocation12], 1 }
0x1fc7   :  { %5687 = vsyncpa [#allocation15], 1 }
0x1fc8   :  { %5688 = vsyncpa [#allocation18], 1 }
0x1fc9   :  { %5689 = vsyncpa [#allocation21], 1 }
0x1fca   :  { %5690 = vsyncpa [#allocation4], 1 }

</bundles_post_ra>
